<compile_context>
chip_gen: v7x
topology: tpu7x:2x2x1
jax: 0.10.0
libtpu: 0.0.40
codegen_flags: <defaults>
</compile_context>

<pallas_src>
import functools

import jax
import jax.numpy as jnp
from jax import lax
from jax.experimental import pallas as pl
from jax.experimental.pallas import tpu as pltpu


def _round_up(x, m):
    return ((x + m - 1) // m) * m


# -----------------------------------------------------------------------------
# Fused kernel: per grid step (one chunk of t_chunk time steps)
#   Phase 1: gx = x_chunk @ W_ih + (b_ih + b_hh)          (one MXU matmul)
#   Phase 2: t_chunk unrolled LSTM steps, h/c carried in VMEM scratch
#   Phase 3: heads_chunk = h_chunk @ [W_pitch|W_step|W_dur] + b  (one matmul)
# -----------------------------------------------------------------------------
def _fused_lstm_kernel(x_ref, wih_ref, bg_ref, whh_ref, wh_ref, bh_ref,
                       out_ref, h_ref, c_ref, gx_ref, hbuf_ref, *,
                       t_chunk, b_pad, h_pad):
    @pl.when(pl.program_id(0) == 0)
    def _():
        h_ref[...] = jnp.zeros_like(h_ref)
        c_ref[...] = jnp.zeros_like(c_ref)

    # Phase 1 (fused per chunk): one big lane-dense matmul; result parked in
    # VMEM scratch so it does not live in vregs across the unrolled loop.
    gx_ref[...] = (
        jnp.dot(x_ref[...], wih_ref[...], preferred_element_type=jnp.float32)
        + bg_ref[...])

    h = h_ref[...]
    c = c_ref[...]
    mm_dtype = whh_ref.dtype

    # Phase 2: fully-unrolled recurrence (static trip count => static slices).
    # whh_ref is deliberately re-read inside each dot (no vreg hoist/spill).
    for t in range(t_chunk):
        gates = gx_ref[t * b_pad:(t + 1) * b_pad, :] + jnp.dot(
            h.astype(mm_dtype), whh_ref[...],
            preferred_element_type=jnp.float32)
        # PyTorch gate ordering [i, f, g, o]; slices are 128-lane aligned.
        i_g = jax.nn.sigmoid(gates[:, 0 * h_pad:1 * h_pad])
        f_g = jax.nn.sigmoid(gates[:, 1 * h_pad:2 * h_pad])
        g_g = jnp.tanh(gates[:, 2 * h_pad:3 * h_pad])
        o_g = jax.nn.sigmoid(gates[:, 3 * h_pad:4 * h_pad])
        c = f_g * c + i_g * g_g
        h = o_g * jnp.tanh(c)
        hbuf_ref[t * b_pad:(t + 1) * b_pad, :] = h.astype(hbuf_ref.dtype)

    h_ref[...] = h
    c_ref[...] = c

    # Phase 3 (fused epilogue): all three Linear heads in ONE matmul against
    # the concatenated, lane-padded weight.  h_seq never touches HBM.
    out_ref[...] = (
        jnp.dot(hbuf_ref[...], wh_ref[...], preferred_element_type=jnp.float32)
        + bh_ref[...]).astype(out_ref.dtype)


def lstm_model_forward(x, params, *, t_chunk=16, matmul_dtype=jnp.float32):
    """x: (S, B, I) float32. Returns dict with 'pitch', 'step', 'duration'."""
    S, B, I = x.shape
    H = params["w_hh"].shape[1]          # w_hh: (4H, H)
    O = params["w_pitch"].shape[0]       # w_pitch: (O, H)

    B_pad = _round_up(B, 8)
    H_pad = _round_up(H, 128)
    S_pad = _round_up(S, t_chunk)
    N_heads = _round_up(O + 2, 128)
    CH = t_chunk * B_pad                 # rows per grid step (chunk)

    # ---- weight repacking (per-gate padding preserves [i,f,g,o] order) ------
    def pad_gates_t(w):                  # (4H, D) -> (D, 4*H_pad), transposed
        d = w.shape[1]
        wt = w.T.reshape(d, 4, H)
        wt = jnp.pad(wt, ((0, 0), (0, 0), (0, H_pad - H)))
        return wt.reshape(d, 4 * H_pad)

    wih_p = pad_gates_t(params["w_ih"]).astype(matmul_dtype)        # (I, 4H_pad)
    whh_p = jnp.pad(pad_gates_t(params["w_hh"]),
                    ((0, H_pad - H), (0, 0))).astype(matmul_dtype)  # (H_pad, 4H_pad)
    b_gates = (params["b_ih"] + params["b_hh"]).reshape(4, H)
    b_gates = jnp.pad(b_gates, ((0, 0), (0, H_pad - H))
                      ).reshape(1, 4 * H_pad).astype(jnp.float32)

    w_heads = jnp.concatenate(
        [params["w_pitch"].T, params["w_step"].T, params["w_dur"].T], axis=1)
    w_heads = jnp.pad(w_heads, ((0, H_pad - H), (0, N_heads - (O + 2)))
                      ).astype(matmul_dtype)                        # (H_pad, N_heads)
    b_heads = jnp.concatenate(
        [params["b_pitch"], params["b_step"], params["b_dur"]])
    b_heads = jnp.pad(b_heads, (0, N_heads - (O + 2))
                      ).reshape(1, N_heads).astype(jnp.float32)

    # ---- pad & flatten activations (seq-major, batch-minor rows) ------------
    x_p = jnp.pad(x, ((0, S_pad - S), (0, B_pad - B), (0, 0)))
    x2d = x_p.reshape(S_pad * B_pad, I).astype(matmul_dtype)

    # ---- explicit VMEM budget (blocks x buffer count + scratch, capped for
    #      v7x's 64 MiB physical VMEM) ---------------------------------------
    mm_bytes = jnp.dtype(matmul_dtype).itemsize
    need = (
        2 * CH * I * mm_bytes +            # x chunk (double-buffered)
        2 * CH * N_heads * 4 +             # heads chunk out (double-buffered)
        I * 4 * H_pad * mm_bytes +         # W_ih           (single-buffered)
        4 * H_pad * 4 +                    # gate bias      (single-buffered)
        H_pad * 4 * H_pad * mm_bytes +     # W_hh           (single-buffered)
        H_pad * N_heads * mm_bytes +       # W_heads        (single-buffered)
        N_heads * 4 +                      # heads bias     (single-buffered)
        2 * B_pad * H_pad * 4 +            # h, c carries
        CH * 4 * H_pad * 4 +               # gx scratch
        CH * H_pad * mm_bytes)             # h-seq scratch
    vmem_bytes = int(min(64 << 20, max(16 << 20, 1.5 * need)))

    def _const_spec(shape):
        # Constant-index block: single-buffered (double-buffering buys nothing).
        return pl.BlockSpec(shape, lambda s: (0,) * len(shape),
                            pipeline_mode=pl.Buffered(1))

    kernel = functools.partial(_fused_lstm_kernel, t_chunk=t_chunk,
                               b_pad=B_pad, h_pad=H_pad)

    out2d = pl.pallas_call(
        kernel,
        out_shape=jax.ShapeDtypeStruct((S_pad * B_pad, N_heads), jnp.float32),
        grid_spec=pltpu.PrefetchScalarGridSpec(
            num_scalar_prefetch=0,
            grid=(S_pad // t_chunk,),
            in_specs=[
                pl.BlockSpec((CH, I), lambda s: (s, 0)),       # x chunk
                _const_spec((I, 4 * H_pad)),                   # W_ih
                _const_spec((1, 4 * H_pad)),                   # b_ih + b_hh
                _const_spec((H_pad, 4 * H_pad)),               # W_hh
                _const_spec((H_pad, N_heads)),                 # fused head W
                _const_spec((1, N_heads)),                     # fused head b
            ],
            out_specs=pl.BlockSpec((CH, N_heads), lambda s: (s, 0)),
            scratch_shapes=[
                pltpu.VMEM((B_pad, H_pad), jnp.float32),       # h carry
                pltpu.VMEM((B_pad, H_pad), jnp.float32),       # c carry
                pltpu.VMEM((CH, 4 * H_pad), jnp.float32),      # gates_x chunk
                pltpu.VMEM((CH, H_pad), matmul_dtype),         # h-seq chunk
            ],
        ),
        compiler_params=pltpu.CompilerParams(
            dimension_semantics=("arbitrary",),                # true recurrence
            vmem_limit_bytes=vmem_bytes,
        ),
    )(x2d, wih_p, b_gates, whh_p, w_heads, b_heads)

    heads = out2d.reshape(S_pad, B_pad, N_heads)[:S, :B]
    return {
        "pitch": heads[..., :O],
        "step": heads[..., O:O + 1],
        "duration": heads[..., O + 1:O + 2],
    }


# -----------------------------------------------------------------------------
# Pure-JAX reference matching PyTorch nn.LSTM + Linear semantics.
# -----------------------------------------------------------------------------
def _reference_forward(x, params):
    S, B, I = x.shape
    H = params["w_hh"].shape[1]
    wih_t = params["w_ih"].T
    whh_t = params["w_hh"].T
    b = params["b_ih"] + params["b_hh"]

    def step_fn(carry, x_t):
        h, c = carry
        gates = x_t @ wih_t + h @ whh_t + b
        i_g = jax.nn.sigmoid(gates[:, 0 * H:1 * H])
        f_g = jax.nn.sigmoid(gates[:, 1 * H:2 * H])
        g_g = jnp.tanh(gates[:, 2 * H:3 * H])
        o_g = jax.nn.sigmoid(gates[:, 3 * H:4 * H])
        c_new = f_g * c + i_g * g_g
        h_new = o_g * jnp.tanh(c_new)
        return (h_new, c_new), h_new

    h0 = jnp.zeros((B, H), jnp.float32)
    c0 = jnp.zeros((B, H), jnp.float32)
    _, hs = lax.scan(step_fn, (h0, c0), x)         # (S, B, H)
    pitch = hs @ params["w_pitch"].T + params["b_pitch"]
    step = hs @ params["w_step"].T + params["b_step"]
    dur = hs @ params["w_dur"].T + params["b_dur"]
    return {"pitch": pitch, "step": step, "duration": dur}


def _init_params(key, input_size, hidden_size, output_size):
    """Deterministic uniform(-1/sqrt(H), 1/sqrt(H)) init (PyTorch-style shapes)."""
    ks = jax.random.split(key, 10)
    s = 1.0 / jnp.sqrt(hidden_size)
    u = lambda k, shape: jax.random.uniform(k, shape, jnp.float32, -s, s)
    return {
        "w_ih": u(ks[0], (4 * hidden_size, input_size)),
        "w_hh": u(ks[1], (4 * hidden_size, hidden_size)),
        "b_ih": u(ks[2], (4 * hidden_size,)),
        "b_hh": u(ks[3], (4 * hidden_size,)),
        "w_pitch": u(ks[4], (output_size, hidden_size)),
        "b_pitch": u(ks[5], (output_size,)),
        "w_step": u(ks[6], (1, hidden_size)),
        "b_step": u(ks[7], (1,)),
        "w_dur": u(ks[8], (1, hidden_size)),
        "b_dur": u(ks[9], (1,)),
    }


if __name__ == "__main__":
    S, B, I, H, O = 8, 4, 16, 32, 16   # seq, batch, input, hidden, output

    key = jax.random.PRNGKey(0)
    k_x, k_p = jax.random.split(key)
    x = jax.random.normal(k_x, (S, B, I), jnp.float32)
    params = _init_params(k_p, I, H, O)

    ref = _reference_forward(x, params)

    # f32 matmul path: faithful to the PyTorch module numerics.
    out_f32 = lstm_model_forward(x, params, t_chunk=16,
                                 matmul_dtype=jnp.float32)
    out_f32 = jax.tree_util.tree_map(jax.block_until_ready, out_f32)
    for name in ("pitch", "step", "duration"):
        assert out_f32[name].shape == ref[name].shape, name
        assert jnp.allclose(out_f32[name], ref[name], atol=1e-5, rtol=1e-5), name

    # bf16 matmul-input path (f32 accumulation, f32 carries/nonlinearities):
    # the v6e/v7x-preferred configuration; relaxed tolerance.
    out_bf16 = lstm_model_forward(x, params, t_chunk=16,
                                  matmul_dtype=jnp.bfloat16)
    out_bf16 = jax.tree_util.tree_map(jax.block_until_ready, out_bf16)
    for name in ("pitch", "step", "duration"):
        assert out_bf16[name].shape == ref[name].shape, name
        assert jnp.allclose(out_bf16[name], ref[name], atol=5e-2, rtol=5e-2), name

    print("KERNEL_OK")
</pallas_src>

<mosaic_0001>
module attributes {stable_mosaic.version = 11 : i64} {
  func.func @_fused_lstm_kernel(%arg0: i32, %arg1: memref<128x16xf32, #tpu.memory_space<vmem>>, %arg2: memref<16x512xf32, #tpu.memory_space<vmem>>, %arg3: memref<1x512xf32, #tpu.memory_space<vmem>>, %arg4: memref<128x512xf32, #tpu.memory_space<vmem>>, %arg5: memref<128x128xf32, #tpu.memory_space<vmem>>, %arg6: memref<1x128xf32, #tpu.memory_space<vmem>>, %arg7: memref<128x128xf32, #tpu.memory_space<vmem>>, %arg8: memref<8x128xf32, #tpu.memory_space<vmem>>, %arg9: memref<8x128xf32, #tpu.memory_space<vmem>>, %arg10: memref<128x512xf32, #tpu.memory_space<vmem>>, %arg11: memref<128x128xf32, #tpu.memory_space<vmem>>) attributes {dimension_semantics = [#tpu.dimension_semantics<arbitrary>], iteration_bounds = array<i64: 1>, scalar_prefetch = 0 : i64, scratch_operands = 4 : i64, tpu.core_type = #tpu.core_type<tc>, window_params = [{transform_indices = @transform_0, window_bounds = array<i64: 128, 16>}, {pipeline_mode = #tpu.pipeline_mode<synchronous>, transform_indices = @transform_1, window_bounds = array<i64: 16, 512>}, {pipeline_mode = #tpu.pipeline_mode<synchronous>, transform_indices = @transform_2, window_bounds = array<i64: 1, 512>}, {pipeline_mode = #tpu.pipeline_mode<synchronous>, transform_indices = @transform_3, window_bounds = array<i64: 128, 512>}, {pipeline_mode = #tpu.pipeline_mode<synchronous>, transform_indices = @transform_4, window_bounds = array<i64: 128, 128>}, {pipeline_mode = #tpu.pipeline_mode<synchronous>, transform_indices = @transform_5, window_bounds = array<i64: 1, 128>}, {transform_indices = @transform_6, window_bounds = array<i64: 128, 128>}]} {
    %c0_i32 = arith.constant 0 : i32
    %0 = arith.cmpi eq, %arg0, %c0_i32 : i32
    %1 = arith.extui %0 : i1 to i32
    %c0_i32_0 = arith.constant 0 : i32
    %2 = arith.cmpi ne, %1, %c0_i32_0 : i32
    scf.if %2 {
      %cst_170 = arith.constant 0.000000e+00 : f32
      %501 = vector.broadcast %cst_170 : f32 to vector<8x128xf32>
      %c0_171 = arith.constant 0 : index
      %c0_172 = arith.constant 0 : index
      %502 = vector.load %arg8[%c0_171, %c0_172] : memref<8x128xf32, #tpu.memory_space<vmem>>, vector<8x128xf32>
      tpu.vector_store %arg8[%c0_171, %c0_172], %501 {strides = array<i32>} : memref<8x128xf32, #tpu.memory_space<vmem>>, vector<8x128xf32>,
      %cst_173 = arith.constant 0.000000e+00 : f32
      %503 = vector.broadcast %cst_173 : f32 to vector<8x128xf32>
      %c0_174 = arith.constant 0 : index
      %c0_175 = arith.constant 0 : index
      %504 = vector.load %arg9[%c0_174, %c0_175] : memref<8x128xf32, #tpu.memory_space<vmem>>, vector<8x128xf32>
      tpu.vector_store %arg9[%c0_174, %c0_175], %503 {strides = array<i32>} : memref<8x128xf32, #tpu.memory_space<vmem>>, vector<8x128xf32>,
    } else {
    }
    %c0 = arith.constant 0 : index
    %c0_1 = arith.constant 0 : index
    %3 = vector.load %arg1[%c0, %c0_1] : memref<128x16xf32, #tpu.memory_space<vmem>>, vector<128x16xf32>
    %c0_2 = arith.constant 0 : index
    %c0_3 = arith.constant 0 : index
    %4 = vector.load %arg2[%c0_2, %c0_3] : memref<16x512xf32, #tpu.memory_space<vmem>>, vector<16x512xf32>
    %cst = arith.constant dense<0.000000e+00> : vector<128x512xf32>
    %5 = tpu.matmul %3, %4, %cst {dimension_numbers = #tpu.dot_dimension_numbers<[1], [0], [0], [1], [0, 0, 1, 1], [], []>} : vector<128x16xf32>, vector<16x512xf32>, vector<128x512xf32> -> vector<128x512xf32>
    %c0_4 = arith.constant 0 : index
    %c0_5 = arith.constant 0 : index
    %6 = vector.load %arg3[%c0_4, %c0_5] : memref<1x512xf32, #tpu.memory_space<vmem>>, vector<1x512xf32>
    %7 = vector.broadcast %6 : vector<1x512xf32> to vector<128x512xf32>
    %8 = arith.addf %5, %7 : vector<128x512xf32>
    %c0_6 = arith.constant 0 : index
    %c0_7 = arith.constant 0 : index
    %9 = vector.load %arg10[%c0_6, %c0_7] : memref<128x512xf32, #tpu.memory_space<vmem>>, vector<128x512xf32>
    tpu.vector_store %arg10[%c0_6, %c0_7], %8 {strides = array<i32>} : memref<128x512xf32, #tpu.memory_space<vmem>>, vector<128x512xf32>,
    %c0_8 = arith.constant 0 : index
    %c0_9 = arith.constant 0 : index
    %10 = vector.load %arg8[%c0_8, %c0_9] : memref<8x128xf32, #tpu.memory_space<vmem>>, vector<8x128xf32>
    %c0_10 = arith.constant 0 : index
    %c0_11 = arith.constant 0 : index
    %11 = vector.load %arg9[%c0_10, %c0_11] : memref<8x128xf32, #tpu.memory_space<vmem>>, vector<8x128xf32>
    %c0_12 = arith.constant 0 : index
    %c0_13 = arith.constant 0 : index
    %12 = vector.load %arg10[%c0_12, %c0_13] : memref<128x512xf32, #tpu.memory_space<vmem>>, vector<8x512xf32>
    %c0_14 = arith.constant 0 : index
    %c0_15 = arith.constant 0 : index
    %13 = vector.load %arg4[%c0_14, %c0_15] : memref<128x512xf32, #tpu.memory_space<vmem>>, vector<128x512xf32>
    %cst_16 = arith.constant dense<0.000000e+00> : vector<8x512xf32>
    %14 = tpu.matmul %10, %13, %cst_16 {dimension_numbers = #tpu.dot_dimension_numbers<[1], [0], [0], [1], [0, 0, 1, 1], [], []>} : vector<8x128xf32>, vector<128x512xf32>, vector<8x512xf32> -> vector<8x512xf32>
    %15 = arith.addf %12, %14 : vector<8x512xf32>
    %16 = vector.extract_strided_slice %15 {offsets = [0, 0], sizes = [8, 128], strides = [1, 1]} : vector<8x512xf32> to vector<8x128xf32>
    %17 = arith.negf %16 : vector<8x128xf32>
    %18 = math.exp %17 : vector<8x128xf32>
    %cst_17 = arith.constant 1.000000e+00 : f32
    %19 = vector.broadcast %cst_17 : f32 to vector<8x128xf32>
    %20 = arith.addf %19, %18 : vector<8x128xf32>
    %21 = arith.divf %19, %20 : vector<8x128xf32>
    %22 = vector.extract_strided_slice %15 {offsets = [0, 128], sizes = [8, 128], strides = [1, 1]} : vector<8x512xf32> to vector<8x128xf32>
    %23 = arith.negf %22 : vector<8x128xf32>
    %24 = math.exp %23 : vector<8x128xf32>
    %cst_18 = arith.constant 1.000000e+00 : f32
    %25 = vector.broadcast %cst_18 : f32 to vector<8x128xf32>
    %26 = arith.addf %25, %24 : vector<8x128xf32>
    %27 = arith.divf %25, %26 : vector<8x128xf32>
    %28 = vector.extract_strided_slice %15 {offsets = [0, 256], sizes = [8, 128], strides = [1, 1]} : vector<8x512xf32> to vector<8x128xf32>
    %29 = math.tanh %28 : vector<8x128xf32>
    %30 = vector.extract_strided_slice %15 {offsets = [0, 384], sizes = [8, 128], strides = [1, 1]} : vector<8x512xf32> to vector<8x128xf32>
    %31 = arith.negf %30 : vector<8x128xf32>
    %32 = math.exp %31 : vector<8x128xf32>
    %cst_19 = arith.constant 1.000000e+00 : f32
    %33 = vector.broadcast %cst_19 : f32 to vector<8x128xf32>
    %34 = arith.addf %33, %32 : vector<8x128xf32>
    %35 = arith.divf %33, %34 : vector<8x128xf32>
    %36 = arith.mulf %27, %11 : vector<8x128xf32>
    %37 = arith.mulf %21, %29 : vector<8x128xf32>
    %38 = arith.addf %36, %37 : vector<8x128xf32>
    %39 = math.tanh %38 : vector<8x128xf32>
    %40 = arith.mulf %35, %39 : vector<8x128xf32>
    %c0_20 = arith.constant 0 : index
    %c0_21 = arith.constant 0 : index
    %41 = vector.load %arg11[%c0_20, %c0_21] : memref<128x128xf32, #tpu.memory_space<vmem>>, vector<8x128xf32>
    tpu.vector_store %arg11[%c0_20, %c0_21], %40 {strides = array<i32>} : memref<128x128xf32, #tpu.memory_space<vmem>>, vector<8x128xf32>,
    %c8 = arith.constant 8 : index
    %c0_22 = arith.constant 0 : index
    %42 = vector.load %arg10[%c8, %c0_22] : memref<128x512xf32, #tpu.memory_space<vmem>>, vector<8x512xf32>
    %c0_23 = arith.constant 0 : index
    %c0_24 = arith.constant 0 : index
    %43 = vector.load %arg4[%c0_23, %c0_24] : memref<128x512xf32, #tpu.memory_space<vmem>>, vector<128x512xf32>
    %cst_25 = arith.constant dense<0.000000e+00> : vector<8x512xf32>
    %44 = tpu.matmul %40, %43, %cst_25 {dimension_numbers = #tpu.dot_dimension_numbers<[1], [0], [0], [1], [0, 0, 1, 1], [], []>} : vector<8x128xf32>, vector<128x512xf32>, vector<8x512xf32> -> vector<8x512xf32>
    %45 = arith.addf %42, %44 : vector<8x512xf32>
    %46 = vector.extract_strided_slice %45 {offsets = [0, 0], sizes = [8, 128], strides = [1, 1]} : vector<8x512xf32> to vector<8x128xf32>
    %47 = arith.negf %46 : vector<8x128xf32>
    %48 = math.exp %47 : vector<8x128xf32>
    %cst_26 = arith.constant 1.000000e+00 : f32
    %49 = vector.broadcast %cst_26 : f32 to vector<8x128xf32>
    %50 = arith.addf %49, %48 : vector<8x128xf32>
    %51 = arith.divf %49, %50 : vector<8x128xf32>
    %52 = vector.extract_strided_slice %45 {offsets = [0, 128], sizes = [8, 128], strides = [1, 1]} : vector<8x512xf32> to vector<8x128xf32>
    %53 = arith.negf %52 : vector<8x128xf32>
    %54 = math.exp %53 : vector<8x128xf32>
    %cst_27 = arith.constant 1.000000e+00 : f32
    %55 = vector.broadcast %cst_27 : f32 to vector<8x128xf32>
    %56 = arith.addf %55, %54 : vector<8x128xf32>
    %57 = arith.divf %55, %56 : vector<8x128xf32>
    %58 = vector.extract_strided_slice %45 {offsets = [0, 256], sizes = [8, 128], strides = [1, 1]} : vector<8x512xf32> to vector<8x128xf32>
    %59 = math.tanh %58 : vector<8x128xf32>
    %60 = vector.extract_strided_slice %45 {offsets = [0, 384], sizes = [8, 128], strides = [1, 1]} : vector<8x512xf32> to vector<8x128xf32>
    %61 = arith.negf %60 : vector<8x128xf32>
    %62 = math.exp %61 : vector<8x128xf32>
    %cst_28 = arith.constant 1.000000e+00 : f32
    %63 = vector.broadcast %cst_28 : f32 to vector<8x128xf32>
    %64 = arith.addf %63, %62 : vector<8x128xf32>
    %65 = arith.divf %63, %64 : vector<8x128xf32>
    %66 = arith.mulf %57, %38 : vector<8x128xf32>
    %67 = arith.mulf %51, %59 : vector<8x128xf32>
    %68 = arith.addf %66, %67 : vector<8x128xf32>
    %69 = math.tanh %68 : vector<8x128xf32>
    %70 = arith.mulf %65, %69 : vector<8x128xf32>
    %c8_29 = arith.constant 8 : index
    %c0_30 = arith.constant 0 : index
    %71 = vector.load %arg11[%c8_29, %c0_30] : memref<128x128xf32, #tpu.memory_space<vmem>>, vector<8x128xf32>
    tpu.vector_store %arg11[%c8_29, %c0_30], %70 {strides = array<i32>} : memref<128x128xf32, #tpu.memory_space<vmem>>, vector<8x128xf32>,
    %c16 = arith.constant 16 : index
    %c0_31 = arith.constant 0 : index
    %72 = vector.load %arg10[%c16, %c0_31] : memref<128x512xf32, #tpu.memory_space<vmem>>, vector<8x512xf32>
    %c0_32 = arith.constant 0 : index
    %c0_33 = arith.constant 0 : index
    %73 = vector.load %arg4[%c0_32, %c0_33] : memref<128x512xf32, #tpu.memory_space<vmem>>, vector<128x512xf32>
    %cst_34 = arith.constant dense<0.000000e+00> : vector<8x512xf32>
    %74 = tpu.matmul %70, %73, %cst_34 {dimension_numbers = #tpu.dot_dimension_numbers<[1], [0], [0], [1], [0, 0, 1, 1], [], []>} : vector<8x128xf32>, vector<128x512xf32>, vector<8x512xf32> -> vector<8x512xf32>
    %75 = arith.addf %72, %74 : vector<8x512xf32>
    %76 = vector.extract_strided_slice %75 {offsets = [0, 0], sizes = [8, 128], strides = [1, 1]} : vector<8x512xf32> to vector<8x128xf32>
    %77 = arith.negf %76 : vector<8x128xf32>
    %78 = math.exp %77 : vector<8x128xf32>
    %cst_35 = arith.constant 1.000000e+00 : f32
    %79 = vector.broadcast %cst_35 : f32 to vector<8x128xf32>
    %80 = arith.addf %79, %78 : vector<8x128xf32>
    %81 = arith.divf %79, %80 : vector<8x128xf32>
    %82 = vector.extract_strided_slice %75 {offsets = [0, 128], sizes = [8, 128], strides = [1, 1]} : vector<8x512xf32> to vector<8x128xf32>
    %83 = arith.negf %82 : vector<8x128xf32>
    %84 = math.exp %83 : vector<8x128xf32>
    %cst_36 = arith.constant 1.000000e+00 : f32
    %85 = vector.broadcast %cst_36 : f32 to vector<8x128xf32>
    %86 = arith.addf %85, %84 : vector<8x128xf32>
    %87 = arith.divf %85, %86 : vector<8x128xf32>
    %88 = vector.extract_strided_slice %75 {offsets = [0, 256], sizes = [8, 128], strides = [1, 1]} : vector<8x512xf32> to vector<8x128xf32>
    %89 = math.tanh %88 : vector<8x128xf32>
    %90 = vector.extract_strided_slice %75 {offsets = [0, 384], sizes = [8, 128], strides = [1, 1]} : vector<8x512xf32> to vector<8x128xf32>
    %91 = arith.negf %90 : vector<8x128xf32>
    %92 = math.exp %91 : vector<8x128xf32>
    %cst_37 = arith.constant 1.000000e+00 : f32
    %93 = vector.broadcast %cst_37 : f32 to vector<8x128xf32>
    %94 = arith.addf %93, %92 : vector<8x128xf32>
    %95 = arith.divf %93, %94 : vector<8x128xf32>
    %96 = arith.mulf %87, %68 : vector<8x128xf32>
    %97 = arith.mulf %81, %89 : vector<8x128xf32>
    %98 = arith.addf %96, %97 : vector<8x128xf32>
    %99 = math.tanh %98 : vector<8x128xf32>
    %100 = arith.mulf %95, %99 : vector<8x128xf32>
    %c16_38 = arith.constant 16 : index
    %c0_39 = arith.constant 0 : index
    %101 = vector.load %arg11[%c16_38, %c0_39] : memref<128x128xf32, #tpu.memory_space<vmem>>, vector<8x128xf32>
    tpu.vector_store %arg11[%c16_38, %c0_39], %100 {strides = array<i32>} : memref<128x128xf32, #tpu.memory_space<vmem>>, vector<8x128xf32>,
    %c24 = arith.constant 24 : index
    %c0_40 = arith.constant 0 : index
    %102 = vector.load %arg10[%c24, %c0_40] : memref<128x512xf32, #tpu.memory_space<vmem>>, vector<8x512xf32>
    %c0_41 = arith.constant 0 : index
    %c0_42 = arith.constant 0 : index
    %103 = vector.load %arg4[%c0_41, %c0_42] : memref<128x512xf32, #tpu.memory_space<vmem>>, vector<128x512xf32>
    %cst_43 = arith.constant dense<0.000000e+00> : vector<8x512xf32>
    %104 = tpu.matmul %100, %103, %cst_43 {dimension_numbers = #tpu.dot_dimension_numbers<[1], [0], [0], [1], [0, 0, 1, 1], [], []>} : vector<8x128xf32>, vector<128x512xf32>, vector<8x512xf32> -> vector<8x512xf32>
    %105 = arith.addf %102, %104 : vector<8x512xf32>
    %106 = vector.extract_strided_slice %105 {offsets = [0, 0], sizes = [8, 128], strides = [1, 1]} : vector<8x512xf32> to vector<8x128xf32>
    %107 = arith.negf %106 : vector<8x128xf32>
    %108 = math.exp %107 : vector<8x128xf32>
    %cst_44 = arith.constant 1.000000e+00 : f32
    %109 = vector.broadcast %cst_44 : f32 to vector<8x128xf32>
    %110 = arith.addf %109, %108 : vector<8x128xf32>
    %111 = arith.divf %109, %110 : vector<8x128xf32>
    %112 = vector.extract_strided_slice %105 {offsets = [0, 128], sizes = [8, 128], strides = [1, 1]} : vector<8x512xf32> to vector<8x128xf32>
    %113 = arith.negf %112 : vector<8x128xf32>
    %114 = math.exp %113 : vector<8x128xf32>
    %cst_45 = arith.constant 1.000000e+00 : f32
    %115 = vector.broadcast %cst_45 : f32 to vector<8x128xf32>
    %116 = arith.addf %115, %114 : vector<8x128xf32>
    %117 = arith.divf %115, %116 : vector<8x128xf32>
    %118 = vector.extract_strided_slice %105 {offsets = [0, 256], sizes = [8, 128], strides = [1, 1]} : vector<8x512xf32> to vector<8x128xf32>
    %119 = math.tanh %118 : vector<8x128xf32>
    %120 = vector.extract_strided_slice %105 {offsets = [0, 384], sizes = [8, 128], strides = [1, 1]} : vector<8x512xf32> to vector<8x128xf32>
    %121 = arith.negf %120 : vector<8x128xf32>
    %122 = math.exp %121 : vector<8x128xf32>
    %cst_46 = arith.constant 1.000000e+00 : f32
    %123 = vector.broadcast %cst_46 : f32 to vector<8x128xf32>
    %124 = arith.addf %123, %122 : vector<8x128xf32>
    %125 = arith.divf %123, %124 : vector<8x128xf32>
    %126 = arith.mulf %117, %98 : vector<8x128xf32>
    %127 = arith.mulf %111, %119 : vector<8x128xf32>
    %128 = arith.addf %126, %127 : vector<8x128xf32>
    %129 = math.tanh %128 : vector<8x128xf32>
    %130 = arith.mulf %125, %129 : vector<8x128xf32>
    %c24_47 = arith.constant 24 : index
    %c0_48 = arith.constant 0 : index
    %131 = vector.load %arg11[%c24_47, %c0_48] : memref<128x128xf32, #tpu.memory_space<vmem>>, vector<8x128xf32>
    tpu.vector_store %arg11[%c24_47, %c0_48], %130 {strides = array<i32>} : memref<128x128xf32, #tpu.memory_space<vmem>>, vector<8x128xf32>,
    %c32 = arith.constant 32 : index
    %c0_49 = arith.constant 0 : index
    %132 = vector.load %arg10[%c32, %c0_49] : memref<128x512xf32, #tpu.memory_space<vmem>>, vector<8x512xf32>
    %c0_50 = arith.constant 0 : index
    %c0_51 = arith.constant 0 : index
    %133 = vector.load %arg4[%c0_50, %c0_51] : memref<128x512xf32, #tpu.memory_space<vmem>>, vector<128x512xf32>
    %cst_52 = arith.constant dense<0.000000e+00> : vector<8x512xf32>
    %134 = tpu.matmul %130, %133, %cst_52 {dimension_numbers = #tpu.dot_dimension_numbers<[1], [0], [0], [1], [0, 0, 1, 1], [], []>} : vector<8x128xf32>, vector<128x512xf32>, vector<8x512xf32> -> vector<8x512xf32>
    %135 = arith.addf %132, %134 : vector<8x512xf32>
    %136 = vector.extract_strided_slice %135 {offsets = [0, 0], sizes = [8, 128], strides = [1, 1]} : vector<8x512xf32> to vector<8x128xf32>
    %137 = arith.negf %136 : vector<8x128xf32>
    %138 = math.exp %137 : vector<8x128xf32>
    %cst_53 = arith.constant 1.000000e+00 : f32
    %139 = vector.broadcast %cst_53 : f32 to vector<8x128xf32>
    %140 = arith.addf %139, %138 : vector<8x128xf32>
    %141 = arith.divf %139, %140 : vector<8x128xf32>
    %142 = vector.extract_strided_slice %135 {offsets = [0, 128], sizes = [8, 128], strides = [1, 1]} : vector<8x512xf32> to vector<8x128xf32>
    %143 = arith.negf %142 : vector<8x128xf32>
    %144 = math.exp %143 : vector<8x128xf32>
    %cst_54 = arith.constant 1.000000e+00 : f32
    %145 = vector.broadcast %cst_54 : f32 to vector<8x128xf32>
    %146 = arith.addf %145, %144 : vector<8x128xf32>
    %147 = arith.divf %145, %146 : vector<8x128xf32>
    %148 = vector.extract_strided_slice %135 {offsets = [0, 256], sizes = [8, 128], strides = [1, 1]} : vector<8x512xf32> to vector<8x128xf32>
    %149 = math.tanh %148 : vector<8x128xf32>
    %150 = vector.extract_strided_slice %135 {offsets = [0, 384], sizes = [8, 128], strides = [1, 1]} : vector<8x512xf32> to vector<8x128xf32>
    %151 = arith.negf %150 : vector<8x128xf32>
    %152 = math.exp %151 : vector<8x128xf32>
    %cst_55 = arith.constant 1.000000e+00 : f32
    %153 = vector.broadcast %cst_55 : f32 to vector<8x128xf32>
    %154 = arith.addf %153, %152 : vector<8x128xf32>
    %155 = arith.divf %153, %154 : vector<8x128xf32>
    %156 = arith.mulf %147, %128 : vector<8x128xf32>
    %157 = arith.mulf %141, %149 : vector<8x128xf32>
    %158 = arith.addf %156, %157 : vector<8x128xf32>
    %159 = math.tanh %158 : vector<8x128xf32>
    %160 = arith.mulf %155, %159 : vector<8x128xf32>
    %c32_56 = arith.constant 32 : index
    %c0_57 = arith.constant 0 : index
    %161 = vector.load %arg11[%c32_56, %c0_57] : memref<128x128xf32, #tpu.memory_space<vmem>>, vector<8x128xf32>
    tpu.vector_store %arg11[%c32_56, %c0_57], %160 {strides = array<i32>} : memref<128x128xf32, #tpu.memory_space<vmem>>, vector<8x128xf32>,
    %c40 = arith.constant 40 : index
    %c0_58 = arith.constant 0 : index
    %162 = vector.load %arg10[%c40, %c0_58] : memref<128x512xf32, #tpu.memory_space<vmem>>, vector<8x512xf32>
    %c0_59 = arith.constant 0 : index
    %c0_60 = arith.constant 0 : index
    %163 = vector.load %arg4[%c0_59, %c0_60] : memref<128x512xf32, #tpu.memory_space<vmem>>, vector<128x512xf32>
    %cst_61 = arith.constant dense<0.000000e+00> : vector<8x512xf32>
    %164 = tpu.matmul %160, %163, %cst_61 {dimension_numbers = #tpu.dot_dimension_numbers<[1], [0], [0], [1], [0, 0, 1, 1], [], []>} : vector<8x128xf32>, vector<128x512xf32>, vector<8x512xf32> -> vector<8x512xf32>
    %165 = arith.addf %162, %164 : vector<8x512xf32>
    %166 = vector.extract_strided_slice %165 {offsets = [0, 0], sizes = [8, 128], strides = [1, 1]} : vector<8x512xf32> to vector<8x128xf32>
    %167 = arith.negf %166 : vector<8x128xf32>
    %168 = math.exp %167 : vector<8x128xf32>
    %cst_62 = arith.constant 1.000000e+00 : f32
    %169 = vector.broadcast %cst_62 : f32 to vector<8x128xf32>
    %170 = arith.addf %169, %168 : vector<8x128xf32>
    %171 = arith.divf %169, %170 : vector<8x128xf32>
    %172 = vector.extract_strided_slice %165 {offsets = [0, 128], sizes = [8, 128], strides = [1, 1]} : vector<8x512xf32> to vector<8x128xf32>
    %173 = arith.negf %172 : vector<8x128xf32>
    %174 = math.exp %173 : vector<8x128xf32>
    %cst_63 = arith.constant 1.000000e+00 : f32
    %175 = vector.broadcast %cst_63 : f32 to vector<8x128xf32>
    %176 = arith.addf %175, %174 : vector<8x128xf32>
    %177 = arith.divf %175, %176 : vector<8x128xf32>
    %178 = vector.extract_strided_slice %165 {offsets = [0, 256], sizes = [8, 128], strides = [1, 1]} : vector<8x512xf32> to vector<8x128xf32>
    %179 = math.tanh %178 : vector<8x128xf32>
    %180 = vector.extract_strided_slice %165 {offsets = [0, 384], sizes = [8, 128], strides = [1, 1]} : vector<8x512xf32> to vector<8x128xf32>
    %181 = arith.negf %180 : vector<8x128xf32>
    %182 = math.exp %181 : vector<8x128xf32>
    %cst_64 = arith.constant 1.000000e+00 : f32
    %183 = vector.broadcast %cst_64 : f32 to vector<8x128xf32>
    %184 = arith.addf %183, %182 : vector<8x128xf32>
    %185 = arith.divf %183, %184 : vector<8x128xf32>
    %186 = arith.mulf %177, %158 : vector<8x128xf32>
    %187 = arith.mulf %171, %179 : vector<8x128xf32>
    %188 = arith.addf %186, %187 : vector<8x128xf32>
    %189 = math.tanh %188 : vector<8x128xf32>
    %190 = arith.mulf %185, %189 : vector<8x128xf32>
    %c40_65 = arith.constant 40 : index
    %c0_66 = arith.constant 0 : index
    %191 = vector.load %arg11[%c40_65, %c0_66] : memref<128x128xf32, #tpu.memory_space<vmem>>, vector<8x128xf32>
    tpu.vector_store %arg11[%c40_65, %c0_66], %190 {strides = array<i32>} : memref<128x128xf32, #tpu.memory_space<vmem>>, vector<8x128xf32>,
    %c48 = arith.constant 48 : index
    %c0_67 = arith.constant 0 : index
    %192 = vector.load %arg10[%c48, %c0_67] : memref<128x512xf32, #tpu.memory_space<vmem>>, vector<8x512xf32>
    %c0_68 = arith.constant 0 : index
    %c0_69 = arith.constant 0 : index
    %193 = vector.load %arg4[%c0_68, %c0_69] : memref<128x512xf32, #tpu.memory_space<vmem>>, vector<128x512xf32>
    %cst_70 = arith.constant dense<0.000000e+00> : vector<8x512xf32>
    %194 = tpu.matmul %190, %193, %cst_70 {dimension_numbers = #tpu.dot_dimension_numbers<[1], [0], [0], [1], [0, 0, 1, 1], [], []>} : vector<8x128xf32>, vector<128x512xf32>, vector<8x512xf32> -> vector<8x512xf32>
    %195 = arith.addf %192, %194 : vector<8x512xf32>
    %196 = vector.extract_strided_slice %195 {offsets = [0, 0], sizes = [8, 128], strides = [1, 1]} : vector<8x512xf32> to vector<8x128xf32>
    %197 = arith.negf %196 : vector<8x128xf32>
    %198 = math.exp %197 : vector<8x128xf32>
    %cst_71 = arith.constant 1.000000e+00 : f32
    %199 = vector.broadcast %cst_71 : f32 to vector<8x128xf32>
    %200 = arith.addf %199, %198 : vector<8x128xf32>
    %201 = arith.divf %199, %200 : vector<8x128xf32>
    %202 = vector.extract_strided_slice %195 {offsets = [0, 128], sizes = [8, 128], strides = [1, 1]} : vector<8x512xf32> to vector<8x128xf32>
    %203 = arith.negf %202 : vector<8x128xf32>
    %204 = math.exp %203 : vector<8x128xf32>
    %cst_72 = arith.constant 1.000000e+00 : f32
    %205 = vector.broadcast %cst_72 : f32 to vector<8x128xf32>
    %206 = arith.addf %205, %204 : vector<8x128xf32>
    %207 = arith.divf %205, %206 : vector<8x128xf32>
    %208 = vector.extract_strided_slice %195 {offsets = [0, 256], sizes = [8, 128], strides = [1, 1]} : vector<8x512xf32> to vector<8x128xf32>
    %209 = math.tanh %208 : vector<8x128xf32>
    %210 = vector.extract_strided_slice %195 {offsets = [0, 384], sizes = [8, 128], strides = [1, 1]} : vector<8x512xf32> to vector<8x128xf32>
    %211 = arith.negf %210 : vector<8x128xf32>
    %212 = math.exp %211 : vector<8x128xf32>
    %cst_73 = arith.constant 1.000000e+00 : f32
    %213 = vector.broadcast %cst_73 : f32 to vector<8x128xf32>
    %214 = arith.addf %213, %212 : vector<8x128xf32>
    %215 = arith.divf %213, %214 : vector<8x128xf32>
    %216 = arith.mulf %207, %188 : vector<8x128xf32>
    %217 = arith.mulf %201, %209 : vector<8x128xf32>
    %218 = arith.addf %216, %217 : vector<8x128xf32>
    %219 = math.tanh %218 : vector<8x128xf32>
    %220 = arith.mulf %215, %219 : vector<8x128xf32>
    %c48_74 = arith.constant 48 : index
    %c0_75 = arith.constant 0 : index
    %221 = vector.load %arg11[%c48_74, %c0_75] : memref<128x128xf32, #tpu.memory_space<vmem>>, vector<8x128xf32>
    tpu.vector_store %arg11[%c48_74, %c0_75], %220 {strides = array<i32>} : memref<128x128xf32, #tpu.memory_space<vmem>>, vector<8x128xf32>,
    %c56 = arith.constant 56 : index
    %c0_76 = arith.constant 0 : index
    %222 = vector.load %arg10[%c56, %c0_76] : memref<128x512xf32, #tpu.memory_space<vmem>>, vector<8x512xf32>
    %c0_77 = arith.constant 0 : index
    %c0_78 = arith.constant 0 : index
    %223 = vector.load %arg4[%c0_77, %c0_78] : memref<128x512xf32, #tpu.memory_space<vmem>>, vector<128x512xf32>
    %cst_79 = arith.constant dense<0.000000e+00> : vector<8x512xf32>
    %224 = tpu.matmul %220, %223, %cst_79 {dimension_numbers = #tpu.dot_dimension_numbers<[1], [0], [0], [1], [0, 0, 1, 1], [], []>} : vector<8x128xf32>, vector<128x512xf32>, vector<8x512xf32> -> vector<8x512xf32>
    %225 = arith.addf %222, %224 : vector<8x512xf32>
    %226 = vector.extract_strided_slice %225 {offsets = [0, 0], sizes = [8, 128], strides = [1, 1]} : vector<8x512xf32> to vector<8x128xf32>
    %227 = arith.negf %226 : vector<8x128xf32>
    %228 = math.exp %227 : vector<8x128xf32>
    %cst_80 = arith.constant 1.000000e+00 : f32
    %229 = vector.broadcast %cst_80 : f32 to vector<8x128xf32>
    %230 = arith.addf %229, %228 : vector<8x128xf32>
    %231 = arith.divf %229, %230 : vector<8x128xf32>
    %232 = vector.extract_strided_slice %225 {offsets = [0, 128], sizes = [8, 128], strides = [1, 1]} : vector<8x512xf32> to vector<8x128xf32>
    %233 = arith.negf %232 : vector<8x128xf32>
    %234 = math.exp %233 : vector<8x128xf32>
    %cst_81 = arith.constant 1.000000e+00 : f32
    %235 = vector.broadcast %cst_81 : f32 to vector<8x128xf32>
    %236 = arith.addf %235, %234 : vector<8x128xf32>
    %237 = arith.divf %235, %236 : vector<8x128xf32>
    %238 = vector.extract_strided_slice %225 {offsets = [0, 256], sizes = [8, 128], strides = [1, 1]} : vector<8x512xf32> to vector<8x128xf32>
    %239 = math.tanh %238 : vector<8x128xf32>
    %240 = vector.extract_strided_slice %225 {offsets = [0, 384], sizes = [8, 128], strides = [1, 1]} : vector<8x512xf32> to vector<8x128xf32>
    %241 = arith.negf %240 : vector<8x128xf32>
    %242 = math.exp %241 : vector<8x128xf32>
    %cst_82 = arith.constant 1.000000e+00 : f32
    %243 = vector.broadcast %cst_82 : f32 to vector<8x128xf32>
    %244 = arith.addf %243, %242 : vector<8x128xf32>
    %245 = arith.divf %243, %244 : vector<8x128xf32>
    %246 = arith.mulf %237, %218 : vector<8x128xf32>
    %247 = arith.mulf %231, %239 : vector<8x128xf32>
    %248 = arith.addf %246, %247 : vector<8x128xf32>
    %249 = math.tanh %248 : vector<8x128xf32>
    %250 = arith.mulf %245, %249 : vector<8x128xf32>
    %c56_83 = arith.constant 56 : index
    %c0_84 = arith.constant 0 : index
    %251 = vector.load %arg11[%c56_83, %c0_84] : memref<128x128xf32, #tpu.memory_space<vmem>>, vector<8x128xf32>
    tpu.vector_store %arg11[%c56_83, %c0_84], %250 {strides = array<i32>} : memref<128x128xf32, #tpu.memory_space<vmem>>, vector<8x128xf32>,
    %c64 = arith.constant 64 : index
    %c0_85 = arith.constant 0 : index
    %252 = vector.load %arg10[%c64, %c0_85] : memref<128x512xf32, #tpu.memory_space<vmem>>, vector<8x512xf32>
    %c0_86 = arith.constant 0 : index
    %c0_87 = arith.constant 0 : index
    %253 = vector.load %arg4[%c0_86, %c0_87] : memref<128x512xf32, #tpu.memory_space<vmem>>, vector<128x512xf32>
    %cst_88 = arith.constant dense<0.000000e+00> : vector<8x512xf32>
    %254 = tpu.matmul %250, %253, %cst_88 {dimension_numbers = #tpu.dot_dimension_numbers<[1], [0], [0], [1], [0, 0, 1, 1], [], []>} : vector<8x128xf32>, vector<128x512xf32>, vector<8x512xf32> -> vector<8x512xf32>
    %255 = arith.addf %252, %254 : vector<8x512xf32>
    %256 = vector.extract_strided_slice %255 {offsets = [0, 0], sizes = [8, 128], strides = [1, 1]} : vector<8x512xf32> to vector<8x128xf32>
    %257 = arith.negf %256 : vector<8x128xf32>
    %258 = math.exp %257 : vector<8x128xf32>
    %cst_89 = arith.constant 1.000000e+00 : f32
    %259 = vector.broadcast %cst_89 : f32 to vector<8x128xf32>
    %260 = arith.addf %259, %258 : vector<8x128xf32>
    %261 = arith.divf %259, %260 : vector<8x128xf32>
    %262 = vector.extract_strided_slice %255 {offsets = [0, 128], sizes = [8, 128], strides = [1, 1]} : vector<8x512xf32> to vector<8x128xf32>
    %263 = arith.negf %262 : vector<8x128xf32>
    %264 = math.exp %263 : vector<8x128xf32>
    %cst_90 = arith.constant 1.000000e+00 : f32
    %265 = vector.broadcast %cst_90 : f32 to vector<8x128xf32>
    %266 = arith.addf %265, %264 : vector<8x128xf32>
    %267 = arith.divf %265, %266 : vector<8x128xf32>
    %268 = vector.extract_strided_slice %255 {offsets = [0, 256], sizes = [8, 128], strides = [1, 1]} : vector<8x512xf32> to vector<8x128xf32>
    %269 = math.tanh %268 : vector<8x128xf32>
    %270 = vector.extract_strided_slice %255 {offsets = [0, 384], sizes = [8, 128], strides = [1, 1]} : vector<8x512xf32> to vector<8x128xf32>
    %271 = arith.negf %270 : vector<8x128xf32>
    %272 = math.exp %271 : vector<8x128xf32>
    %cst_91 = arith.constant 1.000000e+00 : f32
    %273 = vector.broadcast %cst_91 : f32 to vector<8x128xf32>
    %274 = arith.addf %273, %272 : vector<8x128xf32>
    %275 = arith.divf %273, %274 : vector<8x128xf32>
    %276 = arith.mulf %267, %248 : vector<8x128xf32>
    %277 = arith.mulf %261, %269 : vector<8x128xf32>
    %278 = arith.addf %276, %277 : vector<8x128xf32>
    %279 = math.tanh %278 : vector<8x128xf32>
    %280 = arith.mulf %275, %279 : vector<8x128xf32>
    %c64_92 = arith.constant 64 : index
    %c0_93 = arith.constant 0 : index
    %281 = vector.load %arg11[%c64_92, %c0_93] : memref<128x128xf32, #tpu.memory_space<vmem>>, vector<8x128xf32>
    tpu.vector_store %arg11[%c64_92, %c0_93], %280 {strides = array<i32>} : memref<128x128xf32, #tpu.memory_space<vmem>>, vector<8x128xf32>,
    %c72 = arith.constant 72 : index
    %c0_94 = arith.constant 0 : index
    %282 = vector.load %arg10[%c72, %c0_94] : memref<128x512xf32, #tpu.memory_space<vmem>>, vector<8x512xf32>
    %c0_95 = arith.constant 0 : index
    %c0_96 = arith.constant 0 : index
    %283 = vector.load %arg4[%c0_95, %c0_96] : memref<128x512xf32, #tpu.memory_space<vmem>>, vector<128x512xf32>
    %cst_97 = arith.constant dense<0.000000e+00> : vector<8x512xf32>
    %284 = tpu.matmul %280, %283, %cst_97 {dimension_numbers = #tpu.dot_dimension_numbers<[1], [0], [0], [1], [0, 0, 1, 1], [], []>} : vector<8x128xf32>, vector<128x512xf32>, vector<8x512xf32> -> vector<8x512xf32>
    %285 = arith.addf %282, %284 : vector<8x512xf32>
    %286 = vector.extract_strided_slice %285 {offsets = [0, 0], sizes = [8, 128], strides = [1, 1]} : vector<8x512xf32> to vector<8x128xf32>
    %287 = arith.negf %286 : vector<8x128xf32>
    %288 = math.exp %287 : vector<8x128xf32>
    %cst_98 = arith.constant 1.000000e+00 : f32
    %289 = vector.broadcast %cst_98 : f32 to vector<8x128xf32>
    %290 = arith.addf %289, %288 : vector<8x128xf32>
    %291 = arith.divf %289, %290 : vector<8x128xf32>
    %292 = vector.extract_strided_slice %285 {offsets = [0, 128], sizes = [8, 128], strides = [1, 1]} : vector<8x512xf32> to vector<8x128xf32>
    %293 = arith.negf %292 : vector<8x128xf32>
    %294 = math.exp %293 : vector<8x128xf32>
    %cst_99 = arith.constant 1.000000e+00 : f32
    %295 = vector.broadcast %cst_99 : f32 to vector<8x128xf32>
    %296 = arith.addf %295, %294 : vector<8x128xf32>
    %297 = arith.divf %295, %296 : vector<8x128xf32>
    %298 = vector.extract_strided_slice %285 {offsets = [0, 256], sizes = [8, 128], strides = [1, 1]} : vector<8x512xf32> to vector<8x128xf32>
    %299 = math.tanh %298 : vector<8x128xf32>
    %300 = vector.extract_strided_slice %285 {offsets = [0, 384], sizes = [8, 128], strides = [1, 1]} : vector<8x512xf32> to vector<8x128xf32>
    %301 = arith.negf %300 : vector<8x128xf32>
    %302 = math.exp %301 : vector<8x128xf32>
    %cst_100 = arith.constant 1.000000e+00 : f32
    %303 = vector.broadcast %cst_100 : f32 to vector<8x128xf32>
    %304 = arith.addf %303, %302 : vector<8x128xf32>
    %305 = arith.divf %303, %304 : vector<8x128xf32>
    %306 = arith.mulf %297, %278 : vector<8x128xf32>
    %307 = arith.mulf %291, %299 : vector<8x128xf32>
    %308 = arith.addf %306, %307 : vector<8x128xf32>
    %309 = math.tanh %308 : vector<8x128xf32>
    %310 = arith.mulf %305, %309 : vector<8x128xf32>
    %c72_101 = arith.constant 72 : index
    %c0_102 = arith.constant 0 : index
    %311 = vector.load %arg11[%c72_101, %c0_102] : memref<128x128xf32, #tpu.memory_space<vmem>>, vector<8x128xf32>
    tpu.vector_store %arg11[%c72_101, %c0_102], %310 {strides = array<i32>} : memref<128x128xf32, #tpu.memory_space<vmem>>, vector<8x128xf32>,
    %c80 = arith.constant 80 : index
    %c0_103 = arith.constant 0 : index
    %312 = vector.load %arg10[%c80, %c0_103] : memref<128x512xf32, #tpu.memory_space<vmem>>, vector<8x512xf32>
    %c0_104 = arith.constant 0 : index
    %c0_105 = arith.constant 0 : index
    %313 = vector.load %arg4[%c0_104, %c0_105] : memref<128x512xf32, #tpu.memory_space<vmem>>, vector<128x512xf32>
    %cst_106 = arith.constant dense<0.000000e+00> : vector<8x512xf32>
    %314 = tpu.matmul %310, %313, %cst_106 {dimension_numbers = #tpu.dot_dimension_numbers<[1], [0], [0], [1], [0, 0, 1, 1], [], []>} : vector<8x128xf32>, vector<128x512xf32>, vector<8x512xf32> -> vector<8x512xf32>
    %315 = arith.addf %312, %314 : vector<8x512xf32>
    %316 = vector.extract_strided_slice %315 {offsets = [0, 0], sizes = [8, 128], strides = [1, 1]} : vector<8x512xf32> to vector<8x128xf32>
    %317 = arith.negf %316 : vector<8x128xf32>
    %318 = math.exp %317 : vector<8x128xf32>
    %cst_107 = arith.constant 1.000000e+00 : f32
    %319 = vector.broadcast %cst_107 : f32 to vector<8x128xf32>
    %320 = arith.addf %319, %318 : vector<8x128xf32>
    %321 = arith.divf %319, %320 : vector<8x128xf32>
    %322 = vector.extract_strided_slice %315 {offsets = [0, 128], sizes = [8, 128], strides = [1, 1]} : vector<8x512xf32> to vector<8x128xf32>
    %323 = arith.negf %322 : vector<8x128xf32>
    %324 = math.exp %323 : vector<8x128xf32>
    %cst_108 = arith.constant 1.000000e+00 : f32
    %325 = vector.broadcast %cst_108 : f32 to vector<8x128xf32>
    %326 = arith.addf %325, %324 : vector<8x128xf32>
    %327 = arith.divf %325, %326 : vector<8x128xf32>
    %328 = vector.extract_strided_slice %315 {offsets = [0, 256], sizes = [8, 128], strides = [1, 1]} : vector<8x512xf32> to vector<8x128xf32>
    %329 = math.tanh %328 : vector<8x128xf32>
    %330 = vector.extract_strided_slice %315 {offsets = [0, 384], sizes = [8, 128], strides = [1, 1]} : vector<8x512xf32> to vector<8x128xf32>
    %331 = arith.negf %330 : vector<8x128xf32>
    %332 = math.exp %331 : vector<8x128xf32>
    %cst_109 = arith.constant 1.000000e+00 : f32
    %333 = vector.broadcast %cst_109 : f32 to vector<8x128xf32>
    %334 = arith.addf %333, %332 : vector<8x128xf32>
    %335 = arith.divf %333, %334 : vector<8x128xf32>
    %336 = arith.mulf %327, %308 : vector<8x128xf32>
    %337 = arith.mulf %321, %329 : vector<8x128xf32>
    %338 = arith.addf %336, %337 : vector<8x128xf32>
    %339 = math.tanh %338 : vector<8x128xf32>
    %340 = arith.mulf %335, %339 : vector<8x128xf32>
    %c80_110 = arith.constant 80 : index
    %c0_111 = arith.constant 0 : index
    %341 = vector.load %arg11[%c80_110, %c0_111] : memref<128x128xf32, #tpu.memory_space<vmem>>, vector<8x128xf32>
    tpu.vector_store %arg11[%c80_110, %c0_111], %340 {strides = array<i32>} : memref<128x128xf32, #tpu.memory_space<vmem>>, vector<8x128xf32>,
    %c88 = arith.constant 88 : index
    %c0_112 = arith.constant 0 : index
    %342 = vector.load %arg10[%c88, %c0_112] : memref<128x512xf32, #tpu.memory_space<vmem>>, vector<8x512xf32>
    %c0_113 = arith.constant 0 : index
    %c0_114 = arith.constant 0 : index
    %343 = vector.load %arg4[%c0_113, %c0_114] : memref<128x512xf32, #tpu.memory_space<vmem>>, vector<128x512xf32>
    %cst_115 = arith.constant dense<0.000000e+00> : vector<8x512xf32>
    %344 = tpu.matmul %340, %343, %cst_115 {dimension_numbers = #tpu.dot_dimension_numbers<[1], [0], [0], [1], [0, 0, 1, 1], [], []>} : vector<8x128xf32>, vector<128x512xf32>, vector<8x512xf32> -> vector<8x512xf32>
    %345 = arith.addf %342, %344 : vector<8x512xf32>
    %346 = vector.extract_strided_slice %345 {offsets = [0, 0], sizes = [8, 128], strides = [1, 1]} : vector<8x512xf32> to vector<8x128xf32>
    %347 = arith.negf %346 : vector<8x128xf32>
    %348 = math.exp %347 : vector<8x128xf32>
    %cst_116 = arith.constant 1.000000e+00 : f32
    %349 = vector.broadcast %cst_116 : f32 to vector<8x128xf32>
    %350 = arith.addf %349, %348 : vector<8x128xf32>
    %351 = arith.divf %349, %350 : vector<8x128xf32>
    %352 = vector.extract_strided_slice %345 {offsets = [0, 128], sizes = [8, 128], strides = [1, 1]} : vector<8x512xf32> to vector<8x128xf32>
    %353 = arith.negf %352 : vector<8x128xf32>
    %354 = math.exp %353 : vector<8x128xf32>
    %cst_117 = arith.constant 1.000000e+00 : f32
    %355 = vector.broadcast %cst_117 : f32 to vector<8x128xf32>
    %356 = arith.addf %355, %354 : vector<8x128xf32>
    %357 = arith.divf %355, %356 : vector<8x128xf32>
    %358 = vector.extract_strided_slice %345 {offsets = [0, 256], sizes = [8, 128], strides = [1, 1]} : vector<8x512xf32> to vector<8x128xf32>
    %359 = math.tanh %358 : vector<8x128xf32>
    %360 = vector.extract_strided_slice %345 {offsets = [0, 384], sizes = [8, 128], strides = [1, 1]} : vector<8x512xf32> to vector<8x128xf32>
    %361 = arith.negf %360 : vector<8x128xf32>
    %362 = math.exp %361 : vector<8x128xf32>
    %cst_118 = arith.constant 1.000000e+00 : f32
    %363 = vector.broadcast %cst_118 : f32 to vector<8x128xf32>
    %364 = arith.addf %363, %362 : vector<8x128xf32>
    %365 = arith.divf %363, %364 : vector<8x128xf32>
    %366 = arith.mulf %357, %338 : vector<8x128xf32>
    %367 = arith.mulf %351, %359 : vector<8x128xf32>
    %368 = arith.addf %366, %367 : vector<8x128xf32>
    %369 = math.tanh %368 : vector<8x128xf32>
    %370 = arith.mulf %365, %369 : vector<8x128xf32>
    %c88_119 = arith.constant 88 : index
    %c0_120 = arith.constant 0 : index
    %371 = vector.load %arg11[%c88_119, %c0_120] : memref<128x128xf32, #tpu.memory_space<vmem>>, vector<8x128xf32>
    tpu.vector_store %arg11[%c88_119, %c0_120], %370 {strides = array<i32>} : memref<128x128xf32, #tpu.memory_space<vmem>>, vector<8x128xf32>,
    %c96 = arith.constant 96 : index
    %c0_121 = arith.constant 0 : index
    %372 = vector.load %arg10[%c96, %c0_121] : memref<128x512xf32, #tpu.memory_space<vmem>>, vector<8x512xf32>
    %c0_122 = arith.constant 0 : index
    %c0_123 = arith.constant 0 : index
    %373 = vector.load %arg4[%c0_122, %c0_123] : memref<128x512xf32, #tpu.memory_space<vmem>>, vector<128x512xf32>
    %cst_124 = arith.constant dense<0.000000e+00> : vector<8x512xf32>
    %374 = tpu.matmul %370, %373, %cst_124 {dimension_numbers = #tpu.dot_dimension_numbers<[1], [0], [0], [1], [0, 0, 1, 1], [], []>} : vector<8x128xf32>, vector<128x512xf32>, vector<8x512xf32> -> vector<8x512xf32>
    %375 = arith.addf %372, %374 : vector<8x512xf32>
    %376 = vector.extract_strided_slice %375 {offsets = [0, 0], sizes = [8, 128], strides = [1, 1]} : vector<8x512xf32> to vector<8x128xf32>
    %377 = arith.negf %376 : vector<8x128xf32>
    %378 = math.exp %377 : vector<8x128xf32>
    %cst_125 = arith.constant 1.000000e+00 : f32
    %379 = vector.broadcast %cst_125 : f32 to vector<8x128xf32>
    %380 = arith.addf %379, %378 : vector<8x128xf32>
    %381 = arith.divf %379, %380 : vector<8x128xf32>
    %382 = vector.extract_strided_slice %375 {offsets = [0, 128], sizes = [8, 128], strides = [1, 1]} : vector<8x512xf32> to vector<8x128xf32>
    %383 = arith.negf %382 : vector<8x128xf32>
    %384 = math.exp %383 : vector<8x128xf32>
    %cst_126 = arith.constant 1.000000e+00 : f32
    %385 = vector.broadcast %cst_126 : f32 to vector<8x128xf32>
    %386 = arith.addf %385, %384 : vector<8x128xf32>
    %387 = arith.divf %385, %386 : vector<8x128xf32>
    %388 = vector.extract_strided_slice %375 {offsets = [0, 256], sizes = [8, 128], strides = [1, 1]} : vector<8x512xf32> to vector<8x128xf32>
    %389 = math.tanh %388 : vector<8x128xf32>
    %390 = vector.extract_strided_slice %375 {offsets = [0, 384], sizes = [8, 128], strides = [1, 1]} : vector<8x512xf32> to vector<8x128xf32>
    %391 = arith.negf %390 : vector<8x128xf32>
    %392 = math.exp %391 : vector<8x128xf32>
    %cst_127 = arith.constant 1.000000e+00 : f32
    %393 = vector.broadcast %cst_127 : f32 to vector<8x128xf32>
    %394 = arith.addf %393, %392 : vector<8x128xf32>
    %395 = arith.divf %393, %394 : vector<8x128xf32>
    %396 = arith.mulf %387, %368 : vector<8x128xf32>
    %397 = arith.mulf %381, %389 : vector<8x128xf32>
    %398 = arith.addf %396, %397 : vector<8x128xf32>
    %399 = math.tanh %398 : vector<8x128xf32>
    %400 = arith.mulf %395, %399 : vector<8x128xf32>
    %c96_128 = arith.constant 96 : index
    %c0_129 = arith.constant 0 : index
    %401 = vector.load %arg11[%c96_128, %c0_129] : memref<128x128xf32, #tpu.memory_space<vmem>>, vector<8x128xf32>
    tpu.vector_store %arg11[%c96_128, %c0_129], %400 {strides = array<i32>} : memref<128x128xf32, #tpu.memory_space<vmem>>, vector<8x128xf32>,
    %c104 = arith.constant 104 : index
    %c0_130 = arith.constant 0 : index
    %402 = vector.load %arg10[%c104, %c0_130] : memref<128x512xf32, #tpu.memory_space<vmem>>, vector<8x512xf32>
    %c0_131 = arith.constant 0 : index
    %c0_132 = arith.constant 0 : index
    %403 = vector.load %arg4[%c0_131, %c0_132] : memref<128x512xf32, #tpu.memory_space<vmem>>, vector<128x512xf32>
    %cst_133 = arith.constant dense<0.000000e+00> : vector<8x512xf32>
    %404 = tpu.matmul %400, %403, %cst_133 {dimension_numbers = #tpu.dot_dimension_numbers<[1], [0], [0], [1], [0, 0, 1, 1], [], []>} : vector<8x128xf32>, vector<128x512xf32>, vector<8x512xf32> -> vector<8x512xf32>
    %405 = arith.addf %402, %404 : vector<8x512xf32>
    %406 = vector.extract_strided_slice %405 {offsets = [0, 0], sizes = [8, 128], strides = [1, 1]} : vector<8x512xf32> to vector<8x128xf32>
    %407 = arith.negf %406 : vector<8x128xf32>
    %408 = math.exp %407 : vector<8x128xf32>
    %cst_134 = arith.constant 1.000000e+00 : f32
    %409 = vector.broadcast %cst_134 : f32 to vector<8x128xf32>
    %410 = arith.addf %409, %408 : vector<8x128xf32>
    %411 = arith.divf %409, %410 : vector<8x128xf32>
    %412 = vector.extract_strided_slice %405 {offsets = [0, 128], sizes = [8, 128], strides = [1, 1]} : vector<8x512xf32> to vector<8x128xf32>
    %413 = arith.negf %412 : vector<8x128xf32>
    %414 = math.exp %413 : vector<8x128xf32>
    %cst_135 = arith.constant 1.000000e+00 : f32
    %415 = vector.broadcast %cst_135 : f32 to vector<8x128xf32>
    %416 = arith.addf %415, %414 : vector<8x128xf32>
    %417 = arith.divf %415, %416 : vector<8x128xf32>
    %418 = vector.extract_strided_slice %405 {offsets = [0, 256], sizes = [8, 128], strides = [1, 1]} : vector<8x512xf32> to vector<8x128xf32>
    %419 = math.tanh %418 : vector<8x128xf32>
    %420 = vector.extract_strided_slice %405 {offsets = [0, 384], sizes = [8, 128], strides = [1, 1]} : vector<8x512xf32> to vector<8x128xf32>
    %421 = arith.negf %420 : vector<8x128xf32>
    %422 = math.exp %421 : vector<8x128xf32>
    %cst_136 = arith.constant 1.000000e+00 : f32
    %423 = vector.broadcast %cst_136 : f32 to vector<8x128xf32>
    %424 = arith.addf %423, %422 : vector<8x128xf32>
    %425 = arith.divf %423, %424 : vector<8x128xf32>
    %426 = arith.mulf %417, %398 : vector<8x128xf32>
    %427 = arith.mulf %411, %419 : vector<8x128xf32>
    %428 = arith.addf %426, %427 : vector<8x128xf32>
    %429 = math.tanh %428 : vector<8x128xf32>
    %430 = arith.mulf %425, %429 : vector<8x128xf32>
    %c104_137 = arith.constant 104 : index
    %c0_138 = arith.constant 0 : index
    %431 = vector.load %arg11[%c104_137, %c0_138] : memref<128x128xf32, #tpu.memory_space<vmem>>, vector<8x128xf32>
    tpu.vector_store %arg11[%c104_137, %c0_138], %430 {strides = array<i32>} : memref<128x128xf32, #tpu.memory_space<vmem>>, vector<8x128xf32>,
    %c112 = arith.constant 112 : index
    %c0_139 = arith.constant 0 : index
    %432 = vector.load %arg10[%c112, %c0_139] : memref<128x512xf32, #tpu.memory_space<vmem>>, vector<8x512xf32>
    %c0_140 = arith.constant 0 : index
    %c0_141 = arith.constant 0 : index
    %433 = vector.load %arg4[%c0_140, %c0_141] : memref<128x512xf32, #tpu.memory_space<vmem>>, vector<128x512xf32>
    %cst_142 = arith.constant dense<0.000000e+00> : vector<8x512xf32>
    %434 = tpu.matmul %430, %433, %cst_142 {dimension_numbers = #tpu.dot_dimension_numbers<[1], [0], [0], [1], [0, 0, 1, 1], [], []>} : vector<8x128xf32>, vector<128x512xf32>, vector<8x512xf32> -> vector<8x512xf32>
    %435 = arith.addf %432, %434 : vector<8x512xf32>
    %436 = vector.extract_strided_slice %435 {offsets = [0, 0], sizes = [8, 128], strides = [1, 1]} : vector<8x512xf32> to vector<8x128xf32>
    %437 = arith.negf %436 : vector<8x128xf32>
    %438 = math.exp %437 : vector<8x128xf32>
    %cst_143 = arith.constant 1.000000e+00 : f32
    %439 = vector.broadcast %cst_143 : f32 to vector<8x128xf32>
    %440 = arith.addf %439, %438 : vector<8x128xf32>
    %441 = arith.divf %439, %440 : vector<8x128xf32>
    %442 = vector.extract_strided_slice %435 {offsets = [0, 128], sizes = [8, 128], strides = [1, 1]} : vector<8x512xf32> to vector<8x128xf32>
    %443 = arith.negf %442 : vector<8x128xf32>
    %444 = math.exp %443 : vector<8x128xf32>
    %cst_144 = arith.constant 1.000000e+00 : f32
    %445 = vector.broadcast %cst_144 : f32 to vector<8x128xf32>
    %446 = arith.addf %445, %444 : vector<8x128xf32>
    %447 = arith.divf %445, %446 : vector<8x128xf32>
    %448 = vector.extract_strided_slice %435 {offsets = [0, 256], sizes = [8, 128], strides = [1, 1]} : vector<8x512xf32> to vector<8x128xf32>
    %449 = math.tanh %448 : vector<8x128xf32>
    %450 = vector.extract_strided_slice %435 {offsets = [0, 384], sizes = [8, 128], strides = [1, 1]} : vector<8x512xf32> to vector<8x128xf32>
    %451 = arith.negf %450 : vector<8x128xf32>
    %452 = math.exp %451 : vector<8x128xf32>
    %cst_145 = arith.constant 1.000000e+00 : f32
    %453 = vector.broadcast %cst_145 : f32 to vector<8x128xf32>
    %454 = arith.addf %453, %452 : vector<8x128xf32>
    %455 = arith.divf %453, %454 : vector<8x128xf32>
    %456 = arith.mulf %447, %428 : vector<8x128xf32>
    %457 = arith.mulf %441, %449 : vector<8x128xf32>
    %458 = arith.addf %456, %457 : vector<8x128xf32>
    %459 = math.tanh %458 : vector<8x128xf32>
    %460 = arith.mulf %455, %459 : vector<8x128xf32>
    %c112_146 = arith.constant 112 : index
    %c0_147 = arith.constant 0 : index
    %461 = vector.load %arg11[%c112_146, %c0_147] : memref<128x128xf32, #tpu.memory_space<vmem>>, vector<8x128xf32>
    tpu.vector_store %arg11[%c112_146, %c0_147], %460 {strides = array<i32>} : memref<128x128xf32, #tpu.memory_space<vmem>>, vector<8x128xf32>,
    %c120 = arith.constant 120 : index
    %c0_148 = arith.constant 0 : index
    %462 = vector.load %arg10[%c120, %c0_148] : memref<128x512xf32, #tpu.memory_space<vmem>>, vector<8x512xf32>
    %c0_149 = arith.constant 0 : index
    %c0_150 = arith.constant 0 : index
    %463 = vector.load %arg4[%c0_149, %c0_150] : memref<128x512xf32, #tpu.memory_space<vmem>>, vector<128x512xf32>
    %cst_151 = arith.constant dense<0.000000e+00> : vector<8x512xf32>
    %464 = tpu.matmul %460, %463, %cst_151 {dimension_numbers = #tpu.dot_dimension_numbers<[1], [0], [0], [1], [0, 0, 1, 1], [], []>} : vector<8x128xf32>, vector<128x512xf32>, vector<8x512xf32> -> vector<8x512xf32>
    %465 = arith.addf %462, %464 : vector<8x512xf32>
    %466 = vector.extract_strided_slice %465 {offsets = [0, 0], sizes = [8, 128], strides = [1, 1]} : vector<8x512xf32> to vector<8x128xf32>
    %467 = arith.negf %466 : vector<8x128xf32>
    %468 = math.exp %467 : vector<8x128xf32>
    %cst_152 = arith.constant 1.000000e+00 : f32
    %469 = vector.broadcast %cst_152 : f32 to vector<8x128xf32>
    %470 = arith.addf %469, %468 : vector<8x128xf32>
    %471 = arith.divf %469, %470 : vector<8x128xf32>
    %472 = vector.extract_strided_slice %465 {offsets = [0, 128], sizes = [8, 128], strides = [1, 1]} : vector<8x512xf32> to vector<8x128xf32>
    %473 = arith.negf %472 : vector<8x128xf32>
    %474 = math.exp %473 : vector<8x128xf32>
    %cst_153 = arith.constant 1.000000e+00 : f32
    %475 = vector.broadcast %cst_153 : f32 to vector<8x128xf32>
    %476 = arith.addf %475, %474 : vector<8x128xf32>
    %477 = arith.divf %475, %476 : vector<8x128xf32>
    %478 = vector.extract_strided_slice %465 {offsets = [0, 256], sizes = [8, 128], strides = [1, 1]} : vector<8x512xf32> to vector<8x128xf32>
    %479 = math.tanh %478 : vector<8x128xf32>
    %480 = vector.extract_strided_slice %465 {offsets = [0, 384], sizes = [8, 128], strides = [1, 1]} : vector<8x512xf32> to vector<8x128xf32>
    %481 = arith.negf %480 : vector<8x128xf32>
    %482 = math.exp %481 : vector<8x128xf32>
    %cst_154 = arith.constant 1.000000e+00 : f32
    %483 = vector.broadcast %cst_154 : f32 to vector<8x128xf32>
    %484 = arith.addf %483, %482 : vector<8x128xf32>
    %485 = arith.divf %483, %484 : vector<8x128xf32>
    %486 = arith.mulf %477, %458 : vector<8x128xf32>
    %487 = arith.mulf %471, %479 : vector<8x128xf32>
    %488 = arith.addf %486, %487 : vector<8x128xf32>
    %489 = math.tanh %488 : vector<8x128xf32>
    %490 = arith.mulf %485, %489 : vector<8x128xf32>
    %c120_155 = arith.constant 120 : index
    %c0_156 = arith.constant 0 : index
    %491 = vector.load %arg11[%c120_155, %c0_156] : memref<128x128xf32, #tpu.memory_space<vmem>>, vector<8x128xf32>
    tpu.vector_store %arg11[%c120_155, %c0_156], %490 {strides = array<i32>} : memref<128x128xf32, #tpu.memory_space<vmem>>, vector<8x128xf32>,
    %c0_157 = arith.constant 0 : index
    %c0_158 = arith.constant 0 : index
    %492 = vector.load %arg8[%c0_157, %c0_158] : memref<8x128xf32, #tpu.memory_space<vmem>>, vector<8x128xf32>
    tpu.vector_store %arg8[%c0_157, %c0_158], %490 {strides = array<i32>} : memref<8x128xf32, #tpu.memory_space<vmem>>, vector<8x128xf32>,
    %c0_159 = arith.constant 0 : index
    %c0_160 = arith.constant 0 : index
    %493 = vector.load %arg9[%c0_159, %c0_160] : memref<8x128xf32, #tpu.memory_space<vmem>>, vector<8x128xf32>
    tpu.vector_store %arg9[%c0_159, %c0_160], %488 {strides = array<i32>} : memref<8x128xf32, #tpu.memory_space<vmem>>, vector<8x128xf32>,
    %c0_161 = arith.constant 0 : index
    %c0_162 = arith.constant 0 : index
    %494 = vector.load %arg11[%c0_161, %c0_162] : memref<128x128xf32, #tpu.memory_space<vmem>>, vector<128x128xf32>
    %c0_163 = arith.constant 0 : index
    %c0_164 = arith.constant 0 : index
    %495 = vector.load %arg5[%c0_163, %c0_164] : memref<128x128xf32, #tpu.memory_space<vmem>>, vector<128x128xf32>
    %cst_165 = arith.constant dense<0.000000e+00> : vector<128x128xf32>
    %496 = tpu.matmul %494, %495, %cst_165 {dimension_numbers = #tpu.dot_dimension_numbers<[1], [0], [0], [1], [0, 0, 1, 1], [], []>} : vector<128x128xf32>, vector<128x128xf32>, vector<128x128xf32> -> vector<128x128xf32>
    %c0_166 = arith.constant 0 : index
    %c0_167 = arith.constant 0 : index
    %497 = vector.load %arg6[%c0_166, %c0_167] : memref<1x128xf32, #tpu.memory_space<vmem>>, vector<1x128xf32>
    %498 = vector.broadcast %497 : vector<1x128xf32> to vector<128x128xf32>
    %499 = arith.addf %496, %498 : vector<128x128xf32>
    %c0_168 = arith.constant 0 : index
    %c0_169 = arith.constant 0 : index
    %500 = vector.load %arg7[%c0_168, %c0_169] : memref<128x128xf32, #tpu.memory_space<vmem>>, vector<128x128xf32>
    tpu.vector_store %arg7[%c0_168, %c0_169], %499 {strides = array<i32>} : memref<128x128xf32, #tpu.memory_space<vmem>>, vector<128x128xf32>,
    return
  }
  func.func @transform_0(%arg0: i32) -> (i32, i32) {
    %c0_i32 = arith.constant 0 : i32
    %c0_i32_0 = arith.constant 0 : i32
    return %arg0, %c0_i32 : i32, i32
  }
  func.func @transform_1(%arg0: i32) -> (i32, i32) {
    %c0_i32 = arith.constant 0 : i32
    %c0_i32_0 = arith.constant 0 : i32
    %c0_i32_1 = arith.constant 0 : i32
    return %c0_i32, %c0_i32_0 : i32, i32
  }
  func.func @transform_2(%arg0: i32) -> (i32, i32) {
    %c0_i32 = arith.constant 0 : i32
    %c0_i32_0 = arith.constant 0 : i32
    %c0_i32_1 = arith.constant 0 : i32
    return %c0_i32, %c0_i32_0 : i32, i32
  }
  func.func @transform_3(%arg0: i32) -> (i32, i32) {
    %c0_i32 = arith.constant 0 : i32
    %c0_i32_0 = arith.constant 0 : i32
    %c0_i32_1 = arith.constant 0 : i32
    return %c0_i32, %c0_i32_0 : i32, i32
  }
  func.func @transform_4(%arg0: i32) -> (i32, i32) {
    %c0_i32 = arith.constant 0 : i32
    %c0_i32_0 = arith.constant 0 : i32
    %c0_i32_1 = arith.constant 0 : i32
    return %c0_i32, %c0_i32_0 : i32, i32
  }
  func.func @transform_5(%arg0: i32) -> (i32, i32) {
    %c0_i32 = arith.constant 0 : i32
    %c0_i32_0 = arith.constant 0 : i32
    %c0_i32_1 = arith.constant 0 : i32
    return %c0_i32, %c0_i32_0 : i32, i32
  }
  func.func @transform_6(%arg0: i32) -> (i32, i32) {
    %c0_i32 = arith.constant 0 : i32
    %c0_i32_0 = arith.constant 0 : i32
    return %arg0, %c0_i32 : i32, i32
  }
}

</mosaic_0001>

<bundles_post_ra>
// kernel: tpu_custom_call.1
= control target key start
LH: loop header
LB: loop body
LE: loop exit
PB: predicated region body
PF: predicated region fallthrough
CT: control target
= control target key end

     0   :  { %11 = vsyncpa [#allocation7], 0  ;;  %s7626_s0 = inlined_call_operand.vmem [shape: f32[128,16], index: 0, kind: input, shape index: {}]   ;;  %s7627_s1 = inlined_call_operand.hbm [shape: f32[16,512], index: 1, kind: input, shape index: {}]   ;;  %s7628_s2 = inlined_call_operand.vmem [shape: f32[1,512], index: 2, kind: input, shape index: {}]   ;;  %s7629_s3 = inlined_call_operand.hbm [shape: f32[128,512], index: 3, kind: input, shape index: {}]   ;;  %s7630_s4 = inlined_call_operand.vmem [shape: f32[128,128], index: 4, kind: input, shape index: {}]   ;;  %s7631_s5 = inlined_call_operand.vmem [shape: f32[1,128], index: 5, kind: input, shape index: {}]   ;;  %s7632_s6 = inlined_call_operand.hbm [shape: f32[128,128], index: 6, kind: output, shape index: {}]  }
   0x1   :  { %12 = vsyncpa [#allocation10], 0 }
   0x2   :  { %13 = vsyncpa [#allocation8], 0  ;;  %s6284_s21 = smov [#allocation6]   ;;  %s6212_s25 = scalar_lea.hbm %s7627_s1, 1024 }
   0x3   :  { %s21_s22 = sshll.u32 %s6284_s21, 4  ;;  %p6213_p0 = scmp.ne.s32.totalorder %s7627_s1, %s6212_s25  ;;  %s22_s22 = int_to_ptr.vmem [resolvable:$true] %s21_s22 }
   0x4   :  { %p6216_p1 = scmp.lt.u32.totalorder %s6212_s25, %s7627_s1 }
   0x6   :  { %p6218_p2 = pnand %p6216_p1, %p6213_p0 }
   0x8   :  { %6221 = shalt.err (!%p6218_p2)
}
   0x9   :  { %s6222_s30 = scalar_lea.vmem %s22_s22, 1024  ;;  %p6227_p4 = scmp.lt.s32.totalorder %s22_s22, %s22_s22 }
   0xa   :  { %p6223_p3 = scmp.ne.s32.totalorder %s22_s22, %s6222_s30  ;;  %p6228_p5 = scmp.lt.s32.totalorder %s6222_s30, %s6222_s30 }
   0xc   :  { %p6229_p6 = por %p6228_p5, %p6227_p4 }
   0xe   :  { %p6230_p7 = pnand %p6229_p6, %p6223_p3 }
  0x10   :  { %6233 = shalt.err (!%p6230_p7)
}
  0x11   :  { %s6285_s7 = smov 512   ;;  %s6286_s8 = smov 32  }
  0x12   :  { %27 = dma.hbm_to_vmem [thread:$0]  %s7627_s1, 1024, %s22_s22, [#allocation7], %s6285_s7, %s6285_s7, %s6286_s8  }
  0x13   :  { %s6287_s11 = smov [#allocation9]   ;;  %s6234_s15 = scalar_lea.hbm %s7629_s3, 8192 }
  0x14   :  { %s35_s12 = sshll.u32 %s6287_s11, 4  ;;  %p6235_p8 = scmp.ne.s32.totalorder %s7629_s3, %s6234_s15  ;;  %s36_s12 = int_to_ptr.vmem [resolvable:$true] %s35_s12 }
  0x15   :  { %p6238_p9 = scmp.lt.u32.totalorder %s6234_s15, %s7629_s3 }
  0x17   :  { %p6240_p10 = pnand %p6238_p9, %p6235_p8 }
  0x19   :  { %6243 = shalt.err (!%p6240_p10)
}
  0x1a   :  { %s6244_s20 = scalar_lea.vmem %s36_s12, 8192  ;;  %p6249_p12 = scmp.lt.s32.totalorder %s36_s12, %s36_s12 }
  0x1b   :  { %p6245_p11 = scmp.ne.s32.totalorder %s36_s12, %s6244_s20  ;;  %p6250_p13 = scmp.lt.s32.totalorder %s6244_s20, %s6244_s20 }
  0x1d   :  { %p6251_p0 = por %p6250_p13, %p6249_p12 }
  0x1f   :  { %p6252_p1 = pnand %p6251_p0, %p6245_p11 }
  0x21   :  { %6255 = shalt.err (!%p6252_p1)
}
  0x22   :  { %41 = dma.hbm_to_vmem [thread:$0]  %s7629_s3, 8192, %s36_s12, [#allocation10], %s6285_s7, %s6285_s7, %s6286_s8  }
  0x23   :  { %6278 = dma.done.wait [#allocation7], 1024  }
  0x24   :  { %6279 = vsyncadd [#allocation7], 4294966272 }
  0x25   :  { %6280 = dma.done.wait [#allocation10], 8192  }
  0x26   :  { %6281 = vsyncadd [#allocation10], 4294959104  ;;  %v7633_v0 = vmov 0.0   ;;  %v75_v1 = vld [vmem:[#allocation6 + $0x8] sm:$0xff]  ;;  %v74_v3 = vld [vmem:[#allocation6] sm:$0xff]  ;;  %vm104_vm0 = vcmask 130048  }
  0x27   :  { %265 = vmatprep.mubr.f32.mxu1 %v7633_v0  ;;  %217 = vmatprep.mubr.f32.mxu0 %v7633_v0  ;;  %v79_v2 = vld [vmem:[#allocation6 + $0x28] sm:$0xff]  ;;  %v78_v5 = vld [vmem:[#allocation6 + $0x20] sm:$0xff]  ;;  %v77_v6 = vld [vmem:[#allocation6 + $0x18] sm:$0xff] }
  0x28   :  { %v4754_v4 = vpack.c.bf16 %v79_v2, %v75_v1  ;;  %v4756_v7 = vpack.c.bf16 %v78_v5, %v74_v3  ;;  %v81_v8 = vld [vmem:[#allocation6 + $0x38] sm:$0xff]  ;;  %v76_v9 = vld [vmem:[#allocation6 + $0x10] sm:$0xff]  ;;  %v6356_v12 = vld [vmem:[%s7626_s0 + $0x40] sm:$0xff] }
  0x29   :  { %v80_v10 = vld [vmem:[#allocation6 + $0x30] sm:$0xff]  ;;  %v4758_v11 = vpack.c.bf16 %v81_v8, %v77_v6  ;;  %v6361_v14 = vld [vmem:[%s7626_s0] sm:$0xff]  ;;  %v546_v15 = vld [vmem:[#allocation9 + $0x8] sm:$0xff] }
  0x2a   :  { %5818 = vmatprep.subr.bf16.mxu1 %v4754_v4  ;;  %4755 = vmatprep.subr.bf16.mxu0 %v4754_v4  ;;  %v4760_v13 = vpack.c.bf16 %v80_v10, %v76_v9  ;;  %v550_v16 = vld [vmem:[#allocation9 + $0x28] sm:$0xff]  ;;  %v545_v17 = vld [vmem:[#allocation9] sm:$0xff]  ;;  %v6394_v31 = vld [vmem:[%s7626_s0 + $0x50] sm:$0xff] }
  0x2b   :  { %5819 = vmatpush1.bf16.msra.mxu1 %v4756_v7  ;;  %4757 = vmatpush1.bf16.msra.mxu0 %v4756_v7  ;;  %v549_v18 = vld [vmem:[#allocation9 + $0x20] sm:$0xff]  ;;  %v6363_v19 = vpack.c.bf16 %v550_v16, %v546_v15  ;;  %v554_v21 = vld [vmem:[#allocation9 + $0x48] sm:$0xff]  ;;  %v6403_v34 = vld [vmem:[%s7626_s0 + $0x10] sm:$0xff] }
  0x2c   :  { %4759 = vmatprep.subr.bf16.mxu1 %v4758_v11  ;;  %v6365_v20 = vpack.c.bf16 %v549_v18, %v545_v17  ;;  %v558_v22 = vld [vmem:[#allocation9 + $0x68] sm:$0xff]  ;;  %v553_v23 = vld [vmem:[#allocation9 + $0x40] sm:$0xff]  ;;  %v548_v36 = vld [vmem:[#allocation9 + $0x18] sm:$0xff] }
  0x2d   :  { %v557_v24 = vld [vmem:[#allocation9 + $0x60] sm:$0xff]  ;;  %v6375_v25 = vld [vmem:[%s7626_s0 + $0x48] sm:$0xff]  ;;  %v6382_v27 = vpack.c.bf16 %v558_v22, %v554_v21  ;;  %4763 = vmatprep.subr.bf16.mxu0 %v6363_v19  ;;  %v552_v37 = vld [vmem:[#allocation9 + $0x38] sm:$0xff] }
  0x2e   :  { %4593 = vmatmul.mubr.msk.f32.vlgmr.msra.gmra.mrb[0].mxu1 %vm104_vm0, %v6356_v12  ;;  %4585 = vmatmul.mubr.msk.f32.vlgmr.msra.gmra.mrb[0].mxu0 %vm104_vm0, %v6361_v14  ;;  %v6380_v26 = vld [vmem:[%s7626_s0 + $0x8] sm:$0xff]  ;;  %v6387_v30 = vpack.c.bf16 %v557_v24, %v553_v23  ;;  %v561_v32 = vld [vmem:[#allocation9 + $0x80] sm:$0xff]  ;;  %v6408_v40 = vpack.c.bf16 %v552_v37, %v548_v36  ;;  %v6421_v44 = vld [vmem:[%s7626_s0 + $0x58] sm:$0xff] }
  0x2f   :  { %4761 = vmatpush1.bf16.msra.mxu1 %v4760_v13  ;;  %271 = vmatprep.mubr.f32.mxu1 %v7633_v0  ;;  %v562_v28 = vld [vmem:[#allocation9 + $0x88] sm:$0xff]  ;;  %v565_v33 = vld [vmem:[#allocation9 + $0xa0] sm:$0xff]  ;;  %v6427_v45 = vld [vmem:[%s7626_s0 + $0x18] sm:$0xff] }
  0x30   :  { %223 = vmatprep.mubr.f32.mxu0 %v7633_v0  ;;  %v566_v29 = vld [vmem:[#allocation9 + $0xa8] sm:$0xff]  ;;  %4765 = vmatpush1.bf16.msra.mxu0 %v6365_v20  ;;  %v6411_v41 = vpack.c.bf16 %v565_v33, %v561_v32  ;;  %v569_v42 = vld [vmem:[#allocation9 + $0xc0] sm:$0xff]  ;;  %v6488_v5 = vld [vmem:[%s7626_s0 + $0x70] sm:$0xff] }
  0x31   :  { %4767 = vmatprep.subr.bf16.mxu0 %v6382_v27  ;;  %v6405_v35 = vpack.c.bf16 %v566_v29, %v562_v28  ;;  %v570_v38 = vld [vmem:[#allocation9 + $0xc8] sm:$0xff]  ;;  %v573_v43 = vld [vmem:[#allocation9 + $0xe0] sm:$0xff]  ;;  %4795 = vmatprep.subr.bf16.mxu1 %v6408_v40  ;;  %v6494_v6 = vld [vmem:[%s7626_s0 + $0x30] sm:$0xff] }
  0x32   :  { %4594 = vmatmul.mubr.msk.f32.gmra.mrb[2].mxu1 %vm104_vm0, %v6375_v25  ;;  %4586 = vmatmul.mubr.msk.f32.gmra.mrb[2].mxu0 %vm104_vm0, %v6380_v26  ;;  %v574_v39 = vld [vmem:[#allocation9 + $0xe8] sm:$0xff]  ;;  %v6434_v49 = vpack.c.bf16 %v573_v43, %v569_v42  ;;  %v577_v50 = vld [vmem:[#allocation9 + $0x100] sm:$0xff]  ;;  %v6510_v15 = vld [vmem:[%s7626_s0 + $0x78] sm:$0xff] }
  0x33   :  { %277 = vmatprep.mubr.f32.mxu1 %v7633_v0  ;;  %229 = vmatprep.mubr.f32.mxu0 %v7633_v0  ;;  %v6429_v46 = vpack.c.bf16 %v574_v39, %v570_v38  ;;  %v578_v47 = vld [vmem:[#allocation9 + $0x108] sm:$0xff]  ;;  %v581_v51 = vld [vmem:[#allocation9 + $0x120] sm:$0xff]  ;;  %v6516_v16 = vld [vmem:[%s7626_s0 + $0x38] sm:$0xff] }
  0x34   :  { %4769 = vmatpush1.bf16.msra.mxu0 %v6387_v30  ;;  %v582_v48 = vld [vmem:[#allocation9 + $0x128] sm:$0xff]  ;;  %v6444_v52 = vld [vmem:[%s7626_s0 + $0x60] sm:$0xff]  ;;  %v6456_v57 = vpack.c.bf16 %v581_v51, %v577_v50  ;;  %v547_v18 = vld [vmem:[#allocation9 + $0x10] sm:$0xff] }
  0x35   :  { %4771 = vmatprep.subr.bf16.mxu0 %v6405_v35  ;;  %v6450_v53 = vld [vmem:[%s7626_s0 + $0x20] sm:$0xff]  ;;  %v6452_v54 = vpack.c.bf16 %v582_v48, %v578_v47  ;;  %v586_v55 = vld [vmem:[#allocation9 + $0x148] sm:$0xff]  ;;  %v551_v21 = vld [vmem:[#allocation9 + $0x30] sm:$0xff] }
  0x36   :  { %4595 = vmatmul.mubr.msk.f32.gmra.mrb[4].mxu1 %vm104_vm0, %v6394_v31  ;;  %4587 = vmatmul.mubr.msk.f32.gmra.mrb[4].mxu0 %vm104_vm0, %v6403_v34  ;;  %v590_v56 = vld [vmem:[#allocation9 + $0x168] sm:$0xff]  ;;  %v585_v58 = vld [vmem:[#allocation9 + $0x140] sm:$0xff]  ;;  %v556_v22 = vld [vmem:[#allocation9 + $0x58] sm:$0xff]  ;;  %v6529_v28 = vpack.c.bf16 %v551_v21, %v547_v18 }
  0x37   :  { %283 = vmatprep.mubr.f32.mxu1 %v7633_v0  ;;  %235 = vmatprep.mubr.f32.mxu0 %v7633_v0  ;;  %v589_v59 = vld [vmem:[#allocation9 + $0x160] sm:$0xff]  ;;  %v6466_v60 = vld [vmem:[%s7626_s0 + $0x68] sm:$0xff]  ;;  %v6474_v62 = vpack.c.bf16 %v590_v56, %v586_v55  ;;  %v560_v23 = vld [vmem:[#allocation9 + $0x78] sm:$0xff] }
  0x38   :  { %4773 = vmatpush1.bf16.msra.mxu0 %v6411_v41  ;;  %v6472_v61 = vld [vmem:[%s7626_s0 + $0x28] sm:$0xff]  ;;  %v6478_v2 = vpack.c.bf16 %v589_v59, %v585_v58  ;;  %v593_v3 = vld [vmem:[#allocation9 + $0x180] sm:$0xff]  ;;  %v6532_v29 = vpack.c.bf16 %v560_v23, %v556_v22  ;;  %v555_v32 = vld [vmem:[#allocation9 + $0x50] sm:$0xff] }
  0x39   :  { %4775 = vmatprep.subr.bf16.mxu0 %v6429_v46  ;;  %v594_v63 = vld [vmem:[#allocation9 + $0x188] sm:$0xff]  ;;  %v597_v4 = vld [vmem:[#allocation9 + $0x1a0] sm:$0xff]  ;;  %v559_v33 = vld [vmem:[#allocation9 + $0x70] sm:$0xff] }
  0x3a   :  { %4596 = vmatmul.mubr.msk.f32.gmra.mrb[6].mxu1 %vm104_vm0, %v6421_v44  ;;  %4588 = vmatmul.mubr.msk.f32.gmra.mrb[6].mxu0 %vm104_vm0, %v6427_v45  ;;  %v598_v1 = vld [vmem:[#allocation9 + $0x1a8] sm:$0xff]  ;;  %v6500_v10 = vpack.c.bf16 %v597_v4, %v593_v3  ;;  %v601_v11 = vld [vmem:[#allocation9 + $0x1c0] sm:$0xff]  ;;  %v564_v36 = vld [vmem:[#allocation9 + $0x98] sm:$0xff]  ;;  %v6541_v38 = vpack.c.bf16 %v559_v33, %v555_v32 }
  0x3b   :  { %289 = vmatprep.mubr.f32.mxu1 %v7633_v0  ;;  %241 = vmatprep.mubr.f32.mxu0 %v7633_v0  ;;  %v6496_v7 = vpack.c.bf16 %v598_v1, %v594_v63  ;;  %v602_v8 = vld [vmem:[#allocation9 + $0x1c8] sm:$0xff]  ;;  %v605_v13 = vld [vmem:[#allocation9 + $0x1e0] sm:$0xff]  ;;  %v568_v37 = vld [vmem:[#allocation9 + $0xb8] sm:$0xff] }
  0x3c   :  { %4777 = vmatpush1.bf16.msra.mxu0 %v6434_v49  ;;  %v606_v9 = vld [vmem:[#allocation9 + $0x1e8] sm:$0xff]  ;;  %v6522_v24 = vpack.c.bf16 %v605_v13, %v601_v11  ;;  %v6544_v39 = vpack.c.bf16 %v568_v37, %v564_v36  ;;  %v563_v42 = vld [vmem:[#allocation9 + $0x90] sm:$0xff]  ;;  %v572_v47 = vld [vmem:[#allocation9 + $0xd8] sm:$0xff] }
  0x3d   :  { %4779 = vmatprep.subr.bf16.mxu0 %v6452_v54  ;;  %v6518_v17 = vpack.c.bf16 %v606_v9, %v602_v8  ;;  %v567_v43 = vld [vmem:[#allocation9 + $0xb0] sm:$0xff]  ;;  %v576_v48 = vld [vmem:[#allocation9 + $0xf8] sm:$0xff] }
  0x3e   :  { %4597 = vmatmul.mubr.msk.f32.gmra.mrb[8].mxu1 %vm104_vm0, %v6444_v52  ;;  %4589 = vmatmul.mubr.msk.f32.gmra.mrb[8].mxu0 %vm104_vm0, %v6450_v53  ;;  %v6557_v50 = vpack.c.bf16 %v576_v48, %v572_v47  ;;  %v571_v51 = vld [vmem:[#allocation9 + $0xd0] sm:$0xff]  ;;  %v580_v56 = vld [vmem:[#allocation9 + $0x118] sm:$0xff] }
  0x3f   :  { %295 = vmatprep.mubr.f32.mxu1 %v7633_v0  ;;  %247 = vmatprep.mubr.f32.mxu0 %v7633_v0  ;;  %v575_v55 = vld [vmem:[#allocation9 + $0xf0] sm:$0xff]  ;;  %v584_v58 = vld [vmem:[#allocation9 + $0x138] sm:$0xff] }
  0x40   :  { %4781 = vmatpush1.bf16.msra.mxu0 %v6456_v57  ;;  %v6568_v59 = vpack.c.bf16 %v584_v58, %v580_v56  ;;  %v579_v63 = vld [vmem:[#allocation9 + $0x110] sm:$0xff]  ;;  %v588_v3 = vld [vmem:[#allocation9 + $0x158] sm:$0xff]  ;;  %v84_v58 = vlaneseq }
  0x41   :  { %4783 = vmatprep.subr.bf16.mxu0 %v6474_v62  ;;  %v583_v1 = vld [vmem:[#allocation9 + $0x130] sm:$0xff]  ;;  %v592_v4 = vld [vmem:[#allocation9 + $0x178] sm:$0xff] }
  0x42   :  { %4598 = vmatmul.mubr.msk.f32.gmra.mrb[10].mxu1 %vm104_vm0, %v6466_v60  ;;  %4590 = vmatmul.mubr.msk.f32.gmra.mrb[10].mxu0 %vm104_vm0, %v6472_v61  ;;  %v6579_v8 = vpack.c.bf16 %v592_v4, %v588_v3  ;;  %v587_v9 = vld [vmem:[#allocation9 + $0x150] sm:$0xff]  ;;  %v596_v13 = vld [vmem:[#allocation9 + $0x198] sm:$0xff]  ;;  %v82_v3 = vld [vmem:[%s7628_s2] sm:$0xf] }
  0x43   :  { %301 = vmatprep.mubr.f32.mxu1 %v7633_v0  ;;  %253 = vmatprep.mubr.f32.mxu0 %v7633_v0  ;;  %v591_v11 = vld [vmem:[#allocation9 + $0x170] sm:$0xff]  ;;  %v600_v18 = vld [vmem:[#allocation9 + $0x1b8] sm:$0xff] }
  0x44   :  { %4785 = vmatpush1.bf16.msra.mxu0 %v6478_v2  ;;  %v6590_v21 = vpack.c.bf16 %v600_v18, %v596_v13  ;;  %v595_v22 = vld [vmem:[#allocation9 + $0x190] sm:$0xff]  ;;  %v604_v32 = vld [vmem:[#allocation9 + $0x1d8] sm:$0xff] }
  0x45   :  { %4787 = vmatprep.subr.bf16.mxu0 %v6496_v7  ;;  %v599_v23 = vld [vmem:[#allocation9 + $0x1b0] sm:$0xff]  ;;  %v608_v33 = vld [vmem:[#allocation9 + $0x1f8] sm:$0xff] }
  0x46   :  { %4599 = vmatmul.mubr.msk.f32.gmra.mrb[12].mxu1 %vm104_vm0, %v6488_v5  ;;  %4591 = vmatmul.mubr.msk.f32.gmra.mrb[12].mxu0 %vm104_vm0, %v6494_v6  ;;  %v6601_v36 = vpack.c.bf16 %v608_v33, %v604_v32  ;;  %v603_v37 = vld [vmem:[#allocation9 + $0x1d0] sm:$0xff] }
  0x47   :  { %307 = vmatprep.mubr.f32.mxu1 %v7633_v0  ;;  %259 = vmatprep.mubr.f32.mxu0 %v7633_v0 }
  0x48   :  { %4789 = vmatpush1.bf16.msra.mxu0 %v6500_v10 }
  0x49   :  { %4791 = vmatprep.subr.bf16.mxu0 %v6518_v17 }
  0x4a   :  { %4600 = vmatmul.mubr.msk.f32.gmra.mrb[14].mxu1 %vm104_vm0, %v6510_v15  ;;  %4592 = vmatmul.mubr.msk.f32.gmra.mrb[14].mxu0 %vm104_vm0, %v6516_v16 }
  0x4b   :  { %378 = vmatprep.mubr.f32.mxu1 %v7633_v0  ;;  %673 = vmatprep.mubr.f32.mxu0 %v7633_v0 }
  0x4c   :  { %4793 = vmatpush1.bf16.msra.mxu0 %v6522_v24 }
  0x4d   :  { %4827 = vmatprep.subr.bf16.mxu0 %v6363_v19 }
  0x4e   :  { %4601 = vmatmul.mubr.msk.f32.vlgmr.msra.gmra.mrb[16].mxu1 %vm104_vm0, %v6361_v14  ;;  %v6554_v14 = vpack.c.bf16 %v567_v43, %v563_v42  ;;  %v607_v42 = vld [vmem:[#allocation9 + $0x1f0] sm:$0xff] }
  0x4f   :  { %4797 = vmatpush1.bf16.msra.mxu1 %v6529_v28  ;;  %384 = vmatprep.mubr.f32.mxu1 %v7633_v0 }
  0x50   :  { %4799 = vmatprep.subr.bf16.mxu1 %v6532_v29  ;;  %674 = vmatmul.mubr.f32.vlgmr.msra.gmra.mrb[0].mxu0 %v7633_v0 }
  0x51   :  { %4829 = vmatpush1.bf16.msra.mxu0 %v6365_v20  ;;  %912 = vmatprep.mubr.f32.mxu0 %v7633_v0 }
  0x52   :  { %4602 = vmatmul.mubr.msk.f32.gmra.mrb[18].mxu1 %vm104_vm0, %v6380_v26  ;;  %4831 = vmatprep.subr.bf16.mxu0 %v6382_v27  ;;  %v6565_v26 = vpack.c.bf16 %v575_v55, %v571_v51 }
  0x53   :  { %390 = vmatprep.mubr.f32.mxu1 %v7633_v0  ;;  %4801 = vmatpush1.bf16.msra.mxu1 %v6541_v38 }
  0x54   :  { %4803 = vmatprep.subr.bf16.mxu1 %v6544_v39 }
  0x55   :  { %4833 = vmatpush1.bf16.msra.mxu0 %v6387_v30 }
  0x56   :  { %4603 = vmatmul.mubr.msk.f32.gmra.mrb[20].mxu1 %vm104_vm0, %v6403_v34  ;;  %4835 = vmatprep.subr.bf16.mxu0 %v6405_v35  ;;  %v6576_v34 = vpack.c.bf16 %v583_v1, %v579_v63  ;;  %v85_v63 = vshrl.u32 %v84_v58, 7 }
  0x57   :  { %396 = vmatprep.mubr.f32.mxu1 %v7633_v0  ;;  %4805 = vmatpush1.bf16.msra.mxu1 %v6554_v14 }
  0x58   :  { %4807 = vmatprep.subr.bf16.mxu1 %v6557_v50  ;;  %v90_v1 = vsub.s32 1, %v85_v63  ;;  %v86_v4 = vsub.s32 0, %v85_v63  ;;  %v94_v32 = vsub.s32 2, %v85_v63 }
  0x59   :  { %4837 = vmatpush1.bf16.msra.mxu0 %v6411_v41 }
  0x5a   :  { %4604 = vmatmul.mubr.msk.f32.gmra.mrb[22].mxu1 %vm104_vm0, %v6427_v45  ;;  %4839 = vmatprep.subr.bf16.mxu0 %v6429_v46  ;;  %v6587_v45 = vpack.c.bf16 %v591_v11, %v587_v9  ;;  %v6698_v9 = vrot.slane %v82_v3, %v90_v1  ;;  %v6700_v11 = vrot.slane %v82_v3, %v86_v4 }
  0x5b   :  { %402 = vmatprep.mubr.f32.mxu1 %v7633_v0  ;;  %4809 = vmatpush1.bf16.msra.mxu1 %v6565_v26 }
  0x5c   :  { %4811 = vmatprep.subr.bf16.mxu1 %v6568_v59 }
  0x5d   :  { %4841 = vmatpush1.bf16.msra.mxu0 %v6434_v49 }
  0x5e   :  { %4605 = vmatmul.mubr.msk.f32.gmra.mrb[24].mxu1 %vm104_vm0, %v6450_v53  ;;  %4843 = vmatprep.subr.bf16.mxu0 %v6452_v54  ;;  %v6598_v53 = vpack.c.bf16 %v599_v23, %v595_v22 }
  0x5f   :  { %408 = vmatprep.mubr.f32.mxu1 %v7633_v0  ;;  %4813 = vmatpush1.bf16.msra.mxu1 %v6576_v34 }
  0x60   :  { %4815 = vmatprep.subr.bf16.mxu1 %v6579_v8 }
  0x61   :  { %4845 = vmatpush1.bf16.msra.mxu0 %v6456_v57 }
  0x62   :  { %4606 = vmatmul.mubr.msk.f32.gmra.mrb[26].mxu1 %vm104_vm0, %v6472_v61  ;;  %4847 = vmatprep.subr.bf16.mxu0 %v6474_v62  ;;  %v6609_v61 = vpack.c.bf16 %v607_v42, %v603_v37  ;;  %v98_v37 = vsub.s32 3, %v85_v63 }
  0x63   :  { %414 = vmatprep.mubr.f32.mxu1 %v7633_v0  ;;  %4817 = vmatpush1.bf16.msra.mxu1 %v6587_v45 }
  0x64   :  { %4819 = vmatprep.subr.bf16.mxu1 %v6590_v21  ;;  %v6706_v1 = vrot.slane %v82_v3, %v98_v37 }
  0x65   :  { %4849 = vmatpush1.bf16.msra.mxu0 %v6478_v2 }
  0x66   :  { %4607 = vmatmul.mubr.msk.f32.gmra.mrb[28].mxu1 %vm104_vm0, %v6494_v6  ;;  %4851 = vmatprep.subr.bf16.mxu0 %v6496_v7 }
  0x67   :  { %420 = vmatprep.mubr.f32.mxu1 %v7633_v0  ;;  %4821 = vmatpush1.bf16.msra.mxu1 %v6598_v53 }
  0x68   :  { %4823 = vmatprep.subr.bf16.mxu1 %v6601_v36 }
  0x69   :  { %4853 = vmatpush1.bf16.msra.mxu0 %v6500_v10 }
  0x6a   :  { %4608 = vmatmul.mubr.msk.f32.gmra.mrb[30].mxu1 %vm104_vm0, %v6516_v16  ;;  %4855 = vmatprep.subr.bf16.mxu0 %v6518_v17 }
  0x6b   :  { %426 = vmatprep.mubr.f32.mxu1 %v7633_v0  ;;  %4825 = vmatpush1.bf16.msra.mxu1 %v6609_v61 }
  0x6c   :  { %4859 = vmatprep.subr.bf16.mxu1 %v6408_v40 }
  0x6d   :  { %4857 = vmatpush1.bf16.msra.mxu0 %v6522_v24 }
  0x6e   :  { %4609 = vmatmul.mubr.msk.f32.gmra.mrb[32].mxu1 %vm104_vm0, %v6356_v12  ;;  %4891 = vmatprep.subr.bf16.mxu0 %v6363_v19 }
  0x6f   :  { %432 = vmatprep.mubr.f32.mxu1 %v7633_v0 }
  0x72   :  { %4610 = vmatmul.mubr.msk.f32.gmra.mrb[34].mxu1 %vm104_vm0, %v6375_v25 }
  0x73   :  { %438 = vmatprep.mubr.f32.mxu1 %v7633_v0 }
  0x76   :  { %4611 = vmatmul.mubr.msk.f32.gmra.mrb[36].mxu1 %vm104_vm0, %v6394_v31 }
  0x77   :  { %444 = vmatprep.mubr.f32.mxu1 %v7633_v0 }
  0x7a   :  { %4612 = vmatmul.mubr.msk.f32.gmra.mrb[38].mxu1 %vm104_vm0, %v6421_v44 }
  0x7b   :  { %450 = vmatprep.mubr.f32.mxu1 %v7633_v0 }
  0x7e   :  { %4613 = vmatmul.mubr.msk.f32.gmra.mrb[40].mxu1 %vm104_vm0, %v6444_v52 }
  0x7f   :  { %456 = vmatprep.mubr.f32.mxu1 %v7633_v0 }
  0x82   :  { %4614 = vmatmul.mubr.msk.f32.gmra.mrb[42].mxu1 %vm104_vm0, %v6466_v60 }
  0x83   :  { %462 = vmatprep.mubr.f32.mxu1 %v7633_v0 }
  0x86   :  { %4615 = vmatmul.mubr.msk.f32.gmra.mrb[44].mxu1 %vm104_vm0, %v6488_v5 }
  0x87   :  { %468 = vmatprep.mubr.f32.mxu1 %v7633_v0 }
  0x8a   :  { %4616 = vmatmul.mubr.msk.f32.gmra.mrb[46].mxu1 %vm104_vm0, %v6510_v15 }
  0x8b   :  { %744 = vmatprep.mubr.f32.mxu1 %v7633_v0 }
  0x8e   :  { %745 = vmatmul.mubr.f32.vlgmr.msra.gmra.mrb[16].mxu1 %v7633_v0 }
  0x8f   :  { %4861 = vmatpush1.bf16.msra.mxu1 %v6529_v28  ;;  %983 = vmatprep.mubr.f32.mxu1 %v7633_v0  ;;  %v6704_v0 = vrot.slane %v82_v3, %v94_v32 }
  0x90   :  { %4863 = vmatprep.subr.bf16.mxu1 %v6532_v29 }
  0x93   :  { %4865 = vmatpush1.bf16.msra.mxu1 %v6541_v38 }
  0x94   :  { %4867 = vmatprep.subr.bf16.mxu1 %v6544_v39 }
  0x97   :  { %4869 = vmatpush1.bf16.msra.mxu1 %v6554_v14 }
  0x98   :  { %4871 = vmatprep.subr.bf16.mxu1 %v6557_v50 }
  0x9b   :  { %4873 = vmatpush1.bf16.msra.mxu1 %v6565_v26 }
  0x9c   :  { %4875 = vmatprep.subr.bf16.mxu1 %v6568_v59 }
  0x9f   :  { %4877 = vmatpush1.bf16.msra.mxu1 %v6576_v34 }
  0xa0   :  { %4879 = vmatprep.subr.bf16.mxu1 %v6579_v8 }
  0xa3   :  { %4881 = vmatpush1.bf16.msra.mxu1 %v6587_v45 }
  0xa4   :  { %4883 = vmatprep.subr.bf16.mxu1 %v6590_v21 }
  0xa7   :  { %4885 = vmatpush1.bf16.msra.mxu1 %v6598_v53 }
  0xa8   :  { %4887 = vmatprep.subr.bf16.mxu1 %v6601_v36 }
  0xab   :  { %4889 = vmatpush1.bf16.msra.mxu1 %v6609_v61 }
  0xac   :  { %4923 = vmatprep.subr.bf16.mxu1 %v6408_v40 }
 0x101   :  { %v6663_v12 = vpop.f32.mrb[0].mxu1 }
 0x102   :  { %v6665_v19 = vpop.f32.mrb[1].mxu1 }
 0x105   :  { %v6667_v25 = vpop.f32.mrb[2].mxu1 }
 0x106   :  { %v6669_v31 = vpop.f32.mrb[3].mxu1 }
 0x109   :  { %v6671_v44 = vpop.f32.mrb[4].mxu1 }
 0x10a   :  { %v6673_v52 = vpop.f32.mrb[5].mxu1 }
 0x10d   :  { %v6675_v60 = vpop.f32.mrb[6].mxu1 }
 0x10e   :  { %v6677_v5 = vpop.f32.mrb[7].mxu1 }
 0x111   :  { %v6679_v6 = vpop.f32.mrb[8].mxu1 }
 0x112   :  { %v6681_v15 = vpop.f32.mrb[9].mxu1 }
 0x115   :  { %v6683_v40 = vpop.f32.mrb[10].mxu1 }
 0x116   :  { %7642 = vst [vmem:[#allocation15_spill] sm:$0xff] %v6683_v40  ;;  %v6685_v16 = vpop.f32.mrb[11].mxu1 }
 0x117   :  { %7643 = vst [vmem:[#allocation16_spill] sm:$0xff] %v6685_v16 }
 0x119   :  { %v6687_v43 = vpop.f32.mrb[12].mxu1 }
 0x11a   :  { %7644 = vst [vmem:[#allocation17_spill] sm:$0xff] %v6687_v43  ;;  %v6689_v47 = vpop.f32.mrb[13].mxu1 }
 0x11b   :  { %7645 = vst [vmem:[#allocation18_spill] sm:$0xff] %v6689_v47 }
 0x11d   :  { %v6691_v48 = vpop.f32.mrb[14].mxu1 }
 0x11e   :  { %7646 = vst [vmem:[#allocation19_spill] sm:$0xff] %v6691_v48  ;;  %v6693_v51 = vpop.f32.mrb[15].mxu1 }
 0x11f   :  { %7647 = vst [vmem:[#allocation20_spill] sm:$0xff] %v6693_v51 }
 0x123   :  { %v675_v55 = vpop.f32.mrb[0].mxu0 }
 0x124   :  { %v677_v56 = vpop.f32.mrb[1].mxu0  ;;  %v5820_v18 = vadd.f32 %v675_v55, %v6700_v11 }
 0x125   :  { %v5821_v13 = vadd.f32 %v677_v56, %v6698_v9 }
 0x126   :  { %v4617_v23 = vmul.f32 -1.442695, %v5820_v18 }
 0x127   :  { %v4618_v22 = vmul.f32 -1.442695, %v5821_v13 }
 0x129   :  { %5956 = vpow2.f32 %v4618_v22 }
 0x12a   :  { %5958 = vpow2.f32 %v4617_v23 }
 0x133   :  { %v5957_v33 = vpop.eup %5956 }
 0x134   :  { %v5959_v42 = vpop.eup %5958  ;;  %v764_v58 = vadd.f32 1.0, %v5957_v33 }
 0x135   :  { %v758_v51 = vadd.f32 1.0, %v5959_v42 }
 0x136   :  { %5960 = vrcp.f32 %v764_v58 }
 0x137   :  { %5962 = vrcp.f32 %v758_v51 }
 0x140   :  { %v5961_v18 = vpop.eup %5960 }
 0x141   :  { %v5963_v63 = vpop.eup %5962  ;;  %v774_v23 = vmul.f32 0.0, %v5961_v18 }
 0x161   :  { %v746_v4 = vpop.f32.mrb[16].mxu1 }
 0x162   :  { %v5868_v56 = vadd.f32 %v746_v4, %v6704_v0  ;;  %v748_v48 = vpop.f32.mrb[17].mxu1 }
 0x163   :  { %v5869_v55 = vadd.f32 %v748_v48, %v6706_v1  ;;  %v7649_v48 = vmov 0.0  }
 0x164   :  { %5964 = vtanh.f32 %v5868_v56 }
 0x165   :  { %v4619_v13 = vmul.f32 -1.442695, %v5869_v55 }
 0x167   :  { %5966 = vpow2.f32 %v4619_v13 }
 0x16e   :  { %v5965_v22 = vpop.eup %5964 }
 0x16f   :  { %v775_v32 = vmul.f32 %v5965_v22, %v5963_v63 }
 0x171   :  { %v5967_v33 = vpop.eup %5966  ;;  %v6710_v42 = vadd.f32 %v775_v32, %v774_v23 }
 0x172   :  { %v771_v3 = vadd.f32 1.0, %v5967_v33  ;;  %v1263_v33 = vld [vmem:[#allocation9 + $0x8] sm:$0xff] }
 0x173   :  { %5968 = vtanh.f32 %v6710_v42 }
 0x174   :  { %5970 = vrcp.f32 %v771_v3  ;;  %v1267_v3 = vld [vmem:[#allocation9 + $0x28] sm:$0xff] }
 0x17d   :  { %v5969_v37 = vpop.eup %5968 }
 0x17e   :  { %v5971_v58 = vpop.eup %5970 }
 0x17f   :  { %v6713_v51 = vmul.f32 %v5971_v58, %v5969_v37  ;;  %v6763_v37 = vpack.c.bf16 %v1267_v3, %v1263_v33  ;;  %v1269_v58 = vld [vmem:[#allocation9 + $0x38] sm:$0xff]  ;;  %v1294_v3 = vld [vmem:[#allocation9 + $0x100] sm:$0xff] }
 0x181   :  { %7648 = vst [vmem:[#allocation21_spill] sm:$0xff] %v6713_v51  ;;  %913 = vmatmul.mubr.f32.vlgmr.msra.gmra.mrb[2].mxu0 %v6713_v51  ;;  %984 = vmatmul.mubr.f32.vlgmr.msra.gmra.mrb[18].mxu1 %v6713_v51 }
 0x182   :  { %4893 = vmatpush1.bf16.msra.mxu0 %v6365_v20  ;;  %4925 = vmatpush1.bf16.msra.mxu1 %v6529_v28 }
 0x183   :  { %4895 = vmatprep.subr.bf16.mxu0 %v6382_v27  ;;  %4927 = vmatprep.subr.bf16.mxu1 %v6532_v29 }
 0x184   :  { %1151 = vmatprep.mubr.f32.mxu0 %v7649_v48  ;;  %1222 = vmatprep.mubr.f32.mxu1 %v7649_v48 }
 0x186   :  { %4897 = vmatpush1.bf16.msra.mxu0 %v6387_v30  ;;  %4929 = vmatpush1.bf16.msra.mxu1 %v6541_v38 }
 0x187   :  { %4899 = vmatprep.subr.bf16.mxu0 %v6405_v35  ;;  %4931 = vmatprep.subr.bf16.mxu1 %v6544_v39 }
 0x18a   :  { %4901 = vmatpush1.bf16.msra.mxu0 %v6411_v41  ;;  %4933 = vmatpush1.bf16.msra.mxu1 %v6554_v14 }
 0x18b   :  { %4903 = vmatprep.subr.bf16.mxu0 %v6429_v46  ;;  %4935 = vmatprep.subr.bf16.mxu1 %v6557_v50 }
 0x18e   :  { %4905 = vmatpush1.bf16.msra.mxu0 %v6434_v49  ;;  %4937 = vmatpush1.bf16.msra.mxu1 %v6565_v26 }
 0x18f   :  { %4907 = vmatprep.subr.bf16.mxu0 %v6452_v54  ;;  %4939 = vmatprep.subr.bf16.mxu1 %v6568_v59 }
 0x192   :  { %4909 = vmatpush1.bf16.msra.mxu0 %v6456_v57  ;;  %4941 = vmatpush1.bf16.msra.mxu1 %v6576_v34 }
 0x193   :  { %4911 = vmatprep.subr.bf16.mxu0 %v6474_v62  ;;  %4943 = vmatprep.subr.bf16.mxu1 %v6579_v8 }
 0x196   :  { %4913 = vmatpush1.bf16.msra.mxu0 %v6478_v2  ;;  %4945 = vmatpush1.bf16.msra.mxu1 %v6587_v45 }
 0x197   :  { %4915 = vmatprep.subr.bf16.mxu0 %v6496_v7  ;;  %4947 = vmatprep.subr.bf16.mxu1 %v6590_v21 }
 0x19a   :  { %4917 = vmatpush1.bf16.msra.mxu0 %v6500_v10  ;;  %4949 = vmatpush1.bf16.msra.mxu1 %v6598_v53 }
 0x19b   :  { %4919 = vmatprep.subr.bf16.mxu0 %v6518_v17  ;;  %4951 = vmatprep.subr.bf16.mxu1 %v6601_v36 }
 0x19e   :  { %4921 = vmatpush1.bf16.msra.mxu0 %v6522_v24  ;;  %4953 = vmatpush1.bf16.msra.mxu1 %v6609_v61 }
 0x19f   :  { %4955 = vmatprep.subr.bf16.mxu0 %v6763_v37 }
 0x254   :  { %v914_v20 = vpop.f32.mrb[2].mxu0  ;;  %v985_v27 = vpop.f32.mrb[18].mxu1 }
 0x255   :  { %v5822_v30 = vadd.f32 %v914_v20, %v6700_v11  ;;  %v916_v35 = vpop.f32.mrb[3].mxu0  ;;  %v987_v41 = vpop.f32.mrb[19].mxu1  ;;  %v5870_v2 = vadd.f32 %v985_v27, %v6704_v0  ;;  %v1262_v20 = vld [vmem:[#allocation9] sm:$0xff] }
 0x256   :  { %v5823_v46 = vadd.f32 %v916_v35, %v6698_v9  ;;  %v5871_v57 = vadd.f32 %v987_v41, %v6706_v1  ;;  %v1266_v27 = vld [vmem:[#allocation9 + $0x20] sm:$0xff]  ;;  %v1264_v41 = vld [vmem:[#allocation9 + $0x10] sm:$0xff] }
 0x257   :  { %v4620_v49 = vmul.f32 -1.442695, %v5822_v30  ;;  %v6767_v35 = vpack.c.bf16 %v1266_v27, %v1262_v20  ;;  %v1302_v20 = vld [vmem:[#allocation9 + $0x140] sm:$0xff] }
 0x258   :  { %v4621_v54 = vmul.f32 -1.442695, %v5823_v46  ;;  %v4622_v62 = vmul.f32 -1.442695, %v5871_v57  ;;  %v1268_v46 = vld [vmem:[#allocation9 + $0x30] sm:$0xff]  ;;  %v1275_v57 = vld [vmem:[#allocation9 + $0x68] sm:$0xff] }
 0x259   :  { %5972 = vpow2.f32 %v4620_v49  ;;  %v6770_v49 = vpack.c.bf16 %v1268_v46, %v1264_v41  ;;  %v1306_v41 = vld [vmem:[#allocation9 + $0x160] sm:$0xff]  ;;  %v1311_v46 = vld [vmem:[#allocation9 + $0x188] sm:$0xff] }
 0x25a   :  { %5974 = vpow2.f32 %v4621_v54  ;;  %v1271_v54 = vld [vmem:[#allocation9 + $0x48] sm:$0xff] }
 0x25b   :  { %5976 = vpow2.f32 %v4622_v62  ;;  %v6775_v62 = vpack.c.bf16 %v1275_v57, %v1271_v54  ;;  %v6809_v54 = vpack.c.bf16 %v1306_v41, %v1302_v20 }
 0x25c   :  { %5978 = vtanh.f32 %v5870_v2  ;;  %v1270_v2 = vld [vmem:[#allocation9 + $0x40] sm:$0xff] }
 0x263   :  { %v5973_v7 = vpop.eup %5972 }
 0x264   :  { %v5975_v10 = vpop.eup %5974  ;;  %v997_v17 = vadd.f32 1.0, %v5973_v7  ;;  %v1274_v7 = vld [vmem:[#allocation9 + $0x60] sm:$0xff] }
 0x265   :  { %v1003_v24 = vadd.f32 1.0, %v5975_v10  ;;  %v5977_v28 = vpop.eup %5976  ;;  %v6778_v10 = vpack.c.bf16 %v1274_v7, %v1270_v2  ;;  %v1314_v2 = vld [vmem:[#allocation9 + $0x1a0] sm:$0xff]  ;;  %v1319_v7 = vld [vmem:[#allocation9 + $0x1c8] sm:$0xff] }
 0x266   :  { %5980 = vrcp.f32 %v997_v17  ;;  %v5979_v61 = vpop.eup %5978  ;;  %v1010_v13 = vadd.f32 1.0, %v5977_v28  ;;  %v1279_v17 = vld [vmem:[#allocation9 + $0x88] sm:$0xff] }
 0x267   :  { %5982 = vrcp.f32 %v1003_v24  ;;  %v1283_v24 = vld [vmem:[#allocation9 + $0xa8] sm:$0xff] }
 0x268   :  { %5984 = vrcp.f32 %v1010_v13  ;;  %v6783_v28 = vpack.c.bf16 %v1283_v24, %v1279_v17  ;;  %v1323_v17 = vld [vmem:[#allocation9 + $0x1e8] sm:$0xff] }
 0x270   :  { %v5981_v4 = vpop.eup %5980 }
 0x271   :  { %v5983_v56 = vpop.eup %5982  ;;  %v1014_v55 = vmul.f32 %v5981_v4, %v5979_v61  ;;  %v1278_v61 = vld [vmem:[#allocation9 + $0x80] sm:$0xff] }
 0x272   :  { %v1013_v18 = vmul.f32 %v5983_v56, %v6710_v42  ;;  %v5985_v22 = vpop.eup %5984  ;;  %v1265_v42 = vld [vmem:[#allocation9 + $0x18] sm:$0xff]  ;;  %v1282_v4 = vld [vmem:[#allocation9 + $0xa0] sm:$0xff] }
 0x273   :  { %v6765_v30 = vpack.c.bf16 %v1269_v58, %v1265_v42  ;;  %v6786_v56 = vpack.c.bf16 %v1282_v4, %v1278_v61  ;;  %v1307_v58 = vld [vmem:[#allocation9 + $0x168] sm:$0xff]  ;;  %v1318_v61 = vld [vmem:[#allocation9 + $0x1c0] sm:$0xff] }
 0x274   :  { %v6754_v63 = vadd.f32 %v1014_v55, %v1013_v18  ;;  %v1291_v55 = vld [vmem:[#allocation9 + $0xe8] sm:$0xff]  ;;  %v1286_v18 = vld [vmem:[#allocation9 + $0xc0] sm:$0xff] }
 0x275   :  { %4987 = vmatprep.subr.bf16.mxu1 %v6765_v30  ;;  %v1322_v4 = vld [vmem:[#allocation9 + $0x1e0] sm:$0xff] }
 0x276   :  { %5986 = vtanh.f32 %v6754_v63 }
 0x280   :  { %v5987_v23 = vpop.eup %5986 }
 0x281   :  { %v6757_v32 = vmul.f32 %v5987_v23, %v5985_v22  ;;  %v1299_v23 = vld [vmem:[#allocation9 + $0x128] sm:$0xff] }
 0x283   :  { %7650 = vst [vmem:[#allocation22_spill] sm:$0xff] %v6757_v32  ;;  %1152 = vmatmul.mubr.f32.vlgmr.msra.gmra.mrb[4].mxu0 %v6757_v32  ;;  %1223 = vmatmul.mubr.f32.vlgmr.msra.gmra.mrb[20].mxu1 %v6757_v32 }
 0x284   :  { %1390 = vmatprep.mubr.f32.mxu0 %v7649_v48  ;;  %1461 = vmatprep.mubr.f32.mxu1 %v7649_v48 }
 0x285   :  { %4957 = vmatpush1.bf16.msra.mxu0 %v6767_v35  ;;  %4989 = vmatpush1.bf16.msra.mxu1 %v6770_v49 }
 0x286   :  { %4991 = vmatprep.subr.bf16.mxu1 %v6532_v29  ;;  %4959 = vmatprep.subr.bf16.mxu0 %v6775_v62  ;;  %v1287_v29 = vld [vmem:[#allocation9 + $0xc8] sm:$0xff] }
 0x287   :  { %v6791_v13 = vpack.c.bf16 %v1291_v55, %v1287_v29  ;;  %v1320_v29 = vld [vmem:[#allocation9 + $0x1d0] sm:$0xff] }
 0x288   :  { %v1324_v55 = vld [vmem:[#allocation9 + $0x1f0] sm:$0xff] }
 0x289   :  { %4961 = vmatpush1.bf16.msra.mxu0 %v6778_v10  ;;  %4993 = vmatpush1.bf16.msra.mxu1 %v6541_v38  ;;  %v1290_v38 = vld [vmem:[#allocation9 + $0xe0] sm:$0xff] }
 0x28a   :  { %4995 = vmatprep.subr.bf16.mxu1 %v6544_v39  ;;  %4963 = vmatprep.subr.bf16.mxu0 %v6783_v28  ;;  %v6794_v22 = vpack.c.bf16 %v1290_v38, %v1286_v18  ;;  %v1295_v39 = vld [vmem:[#allocation9 + $0x108] sm:$0xff]  ;;  %v6828_v18 = vpack.c.bf16 %v1324_v55, %v1320_v29 }
 0x28b   :  { %v6799_v33 = vpack.c.bf16 %v1299_v23, %v1295_v39 }
 0x28d   :  { %4965 = vmatpush1.bf16.msra.mxu0 %v6786_v56  ;;  %4997 = vmatpush1.bf16.msra.mxu1 %v6554_v14  ;;  %v1298_v14 = vld [vmem:[#allocation9 + $0x120] sm:$0xff] }
 0x28e   :  { %4999 = vmatprep.subr.bf16.mxu1 %v6557_v50  ;;  %4967 = vmatprep.subr.bf16.mxu0 %v6791_v13  ;;  %v6802_v42 = vpack.c.bf16 %v1298_v14, %v1294_v3  ;;  %v1303_v50 = vld [vmem:[#allocation9 + $0x148] sm:$0xff] }
 0x28f   :  { %v6806_v27 = vpack.c.bf16 %v1307_v58, %v1303_v50 }
 0x291   :  { %4969 = vmatpush1.bf16.msra.mxu0 %v6794_v22  ;;  %5001 = vmatpush1.bf16.msra.mxu1 %v6565_v26  ;;  %v1315_v26 = vld [vmem:[#allocation9 + $0x1a8] sm:$0xff] }
 0x292   :  { %5003 = vmatprep.subr.bf16.mxu1 %v6568_v59  ;;  %4971 = vmatprep.subr.bf16.mxu0 %v6799_v33  ;;  %v6811_v57 = vpack.c.bf16 %v1315_v26, %v1311_v46  ;;  %v1310_v59 = vld [vmem:[#allocation9 + $0x180] sm:$0xff] }
 0x293   :  { %v6816_v24 = vpack.c.bf16 %v1314_v2, %v1310_v59 }
 0x295   :  { %4973 = vmatpush1.bf16.msra.mxu0 %v6802_v42  ;;  %5005 = vmatpush1.bf16.msra.mxu1 %v6576_v34  ;;  %v6820_v34 = vpack.c.bf16 %v1323_v17, %v1319_v7 }
 0x296   :  { %4975 = vmatprep.subr.bf16.mxu0 %v6806_v27  ;;  %5007 = vmatprep.subr.bf16.mxu1 %v6579_v8  ;;  %v6824_v8 = vpack.c.bf16 %v1322_v4, %v1318_v61 }
 0x299   :  { %4977 = vmatpush1.bf16.msra.mxu0 %v6809_v54  ;;  %5009 = vmatpush1.bf16.msra.mxu1 %v6587_v45 }
 0x29a   :  { %4979 = vmatprep.subr.bf16.mxu0 %v6811_v57  ;;  %5011 = vmatprep.subr.bf16.mxu1 %v6590_v21 }
 0x29d   :  { %4981 = vmatpush1.bf16.msra.mxu0 %v6816_v24  ;;  %5013 = vmatpush1.bf16.msra.mxu1 %v6598_v53 }
 0x29e   :  { %4983 = vmatprep.subr.bf16.mxu0 %v6820_v34  ;;  %5015 = vmatprep.subr.bf16.mxu1 %v6601_v36 }
 0x2a1   :  { %4985 = vmatpush1.bf16.msra.mxu0 %v6824_v8  ;;  %5017 = vmatpush1.bf16.msra.mxu1 %v6828_v18 }
 0x2a2   :  { %5019 = vmatprep.subr.bf16.mxu0 %v6763_v37  ;;  %5051 = vmatprep.subr.bf16.mxu1 %v6765_v30 }
 0x356   :  { %v1153_v45 = vpop.f32.mrb[4].mxu0  ;;  %v1224_v21 = vpop.f32.mrb[20].mxu1 }
 0x357   :  { %v5824_v38 = vadd.f32 %v1153_v45, %v6700_v11  ;;  %v1155_v39 = vpop.f32.mrb[5].mxu0  ;;  %v1226_v53 = vpop.f32.mrb[21].mxu1  ;;  %v5872_v58 = vadd.f32 %v1224_v21, %v6704_v0 }
 0x358   :  { %v5825_v23 = vadd.f32 %v1155_v39, %v6698_v9  ;;  %v5873_v36 = vadd.f32 %v1226_v53, %v6706_v1  ;;  %v1516_v39 = vld [vmem:[#allocation9 + $0x78] sm:$0xff] }
 0x359   :  { %v4623_v3 = vmul.f32 -1.442695, %v5824_v38 }
 0x35a   :  { %v4624_v14 = vmul.f32 -1.442695, %v5825_v23  ;;  %v4625_v50 = vmul.f32 -1.442695, %v5873_v36  ;;  %v1511_v23 = vld [vmem:[#allocation9 + $0x50] sm:$0xff]  ;;  %v1520_v36 = vld [vmem:[#allocation9 + $0x98] sm:$0xff] }
 0x35b   :  { %5988 = vpow2.f32 %v4623_v3  ;;  %v1515_v3 = vld [vmem:[#allocation9 + $0x70] sm:$0xff] }
 0x35c   :  { %5990 = vpow2.f32 %v4624_v14  ;;  %v6868_v14 = vpack.c.bf16 %v1515_v3, %v1511_v23  ;;  %v1544_v23 = vld [vmem:[#allocation9 + $0x158] sm:$0xff] }
 0x35d   :  { %5992 = vpow2.f32 %v4625_v50  ;;  %v1524_v50 = vld [vmem:[#allocation9 + $0xb8] sm:$0xff] }
 0x35e   :  { %5994 = vtanh.f32 %v5872_v58  ;;  %v6872_v58 = vpack.c.bf16 %v1524_v50, %v1520_v36  ;;  %v1548_v3 = vld [vmem:[#allocation9 + $0x178] sm:$0xff]  ;;  %v1543_v36 = vld [vmem:[#allocation9 + $0x150] sm:$0xff] }
 0x35f   :  { %v6890_v50 = vpack.c.bf16 %v1548_v3, %v1544_v23 }
 0x365   :  { %v5989_v20 = vpop.eup %5988 }
 0x366   :  { %v5991_v41 = vpop.eup %5990  ;;  %v1236_v46 = vadd.f32 1.0, %v5989_v20  ;;  %v1519_v20 = vld [vmem:[#allocation9 + $0x90] sm:$0xff] }
 0x367   :  { %v1242_v26 = vadd.f32 1.0, %v5991_v41  ;;  %v5993_v59 = vpop.eup %5992  ;;  %v1523_v41 = vld [vmem:[#allocation9 + $0xb0] sm:$0xff] }
 0x368   :  { %5996 = vrcp.f32 %v1236_v46  ;;  %v5995_v2 = vpop.eup %5994  ;;  %v1249_v4 = vadd.f32 1.0, %v5993_v59  ;;  %v6874_v46 = vpack.c.bf16 %v1523_v41, %v1519_v20  ;;  %v1532_v59 = vld [vmem:[#allocation9 + $0xf8] sm:$0xff]  ;;  %v1547_v20 = vld [vmem:[#allocation9 + $0x170] sm:$0xff] }
 0x369   :  { %5998 = vrcp.f32 %v1242_v26  ;;  %v1528_v26 = vld [vmem:[#allocation9 + $0xd8] sm:$0xff] }
 0x36a   :  { %6000 = vrcp.f32 %v1249_v4  ;;  %v1536_v4 = vld [vmem:[#allocation9 + $0x118] sm:$0xff] }
 0x36b   :  { %v1552_v41 = vld [vmem:[#allocation9 + $0x198] sm:$0xff] }
 0x372   :  { %v5997_v7 = vpop.eup %5996 }
 0x373   :  { %v5999_v17 = vpop.eup %5998  ;;  %v1253_v61 = vmul.f32 %v5997_v7, %v5995_v2  ;;  %v6878_v2 = vpack.c.bf16 %v1532_v59, %v1528_v26  ;;  %v1527_v7 = vld [vmem:[#allocation9 + $0xd0] sm:$0xff]  ;;  %v1556_v26 = vld [vmem:[#allocation9 + $0x1b8] sm:$0xff]  ;;  %v6892_v59 = vpack.c.bf16 %v1547_v20, %v1543_v36 }
 0x374   :  { %v1252_v29 = vmul.f32 %v5999_v17, %v6754_v63  ;;  %v6001_v45 = vpop.eup %6000  ;;  %v1512_v63 = vld [vmem:[#allocation9 + $0x58] sm:$0xff]  ;;  %v1531_v17 = vld [vmem:[#allocation9 + $0xf0] sm:$0xff] }
 0x375   :  { %v6866_v53 = vpack.c.bf16 %v1516_v39, %v1512_v63  ;;  %v1539_v63 = vld [vmem:[#allocation9 + $0x130] sm:$0xff] }
 0x376   :  { %v6840_v55 = vadd.f32 %v1253_v61, %v1252_v29  ;;  %v6880_v61 = vpack.c.bf16 %v1531_v17, %v1527_v7  ;;  %v1540_v29 = vld [vmem:[#allocation9 + $0x138] sm:$0xff]  ;;  %v6894_v7 = vpack.c.bf16 %v1556_v26, %v1552_v41  ;;  %v1551_v17 = vld [vmem:[#allocation9 + $0x190] sm:$0xff] }
 0x378   :  { %6002 = vtanh.f32 %v6840_v55 }
 0x382   :  { %v6003_v21 = vpop.eup %6002 }
 0x383   :  { %v6843_v38 = vmul.f32 %v6003_v21, %v6001_v45  ;;  %v6884_v45 = vpack.c.bf16 %v1540_v29, %v1536_v4  ;;  %v1535_v21 = vld [vmem:[#allocation9 + $0x110] sm:$0xff]  ;;  %v1560_v29 = vld [vmem:[#allocation9 + $0x1d8] sm:$0xff] }
 0x384   :  { %v6886_v39 = vpack.c.bf16 %v1539_v63, %v1535_v21  ;;  %v1555_v4 = vld [vmem:[#allocation9 + $0x1b0] sm:$0xff]  ;;  %v1564_v21 = vld [vmem:[#allocation9 + $0x1f8] sm:$0xff] }
 0x385   :  { %7651 = vst [vmem:[#allocation23_spill] sm:$0xff] %v6843_v38  ;;  %1391 = vmatmul.mubr.f32.vlgmr.msra.gmra.mrb[6].mxu0 %v6843_v38  ;;  %1462 = vmatmul.mubr.f32.vlgmr.msra.gmra.mrb[22].mxu1 %v6843_v38  ;;  %v6898_v63 = vpack.c.bf16 %v1555_v4, %v1551_v17  ;;  %v6901_v23 = vpack.c.bf16 %v1564_v21, %v1560_v29 }
 0x386   :  { %5021 = vmatpush1.bf16.msra.mxu0 %v6767_v35  ;;  %5053 = vmatpush1.bf16.msra.mxu1 %v6770_v49 }
 0x387   :  { %5023 = vmatprep.subr.bf16.mxu0 %v6775_v62  ;;  %1629 = vmatprep.mubr.f32.mxu0 %v7649_v48 }
 0x388   :  { %1700 = vmatprep.mubr.f32.mxu1 %v7649_v48  ;;  %5055 = vmatprep.subr.bf16.mxu1 %v6866_v53 }
 0x38a   :  { %5025 = vmatpush1.bf16.msra.mxu0 %v6778_v10  ;;  %5057 = vmatpush1.bf16.msra.mxu1 %v6868_v14 }
 0x38b   :  { %5027 = vmatprep.subr.bf16.mxu0 %v6783_v28  ;;  %5059 = vmatprep.subr.bf16.mxu1 %v6872_v58 }
 0x38e   :  { %5029 = vmatpush1.bf16.msra.mxu0 %v6786_v56  ;;  %5061 = vmatpush1.bf16.msra.mxu1 %v6874_v46 }
 0x38f   :  { %5031 = vmatprep.subr.bf16.mxu0 %v6791_v13  ;;  %5063 = vmatprep.subr.bf16.mxu1 %v6878_v2 }
 0x392   :  { %5033 = vmatpush1.bf16.msra.mxu0 %v6794_v22  ;;  %5065 = vmatpush1.bf16.msra.mxu1 %v6880_v61 }
 0x393   :  { %5035 = vmatprep.subr.bf16.mxu0 %v6799_v33  ;;  %5067 = vmatprep.subr.bf16.mxu1 %v6884_v45 }
 0x396   :  { %5037 = vmatpush1.bf16.msra.mxu0 %v6802_v42  ;;  %5069 = vmatpush1.bf16.msra.mxu1 %v6886_v39 }
 0x397   :  { %5039 = vmatprep.subr.bf16.mxu0 %v6806_v27  ;;  %5071 = vmatprep.subr.bf16.mxu1 %v6890_v50 }
 0x39a   :  { %5041 = vmatpush1.bf16.msra.mxu0 %v6809_v54  ;;  %5073 = vmatpush1.bf16.msra.mxu1 %v6892_v59 }
 0x39b   :  { %5043 = vmatprep.subr.bf16.mxu0 %v6811_v57  ;;  %5075 = vmatprep.subr.bf16.mxu1 %v6894_v7 }
 0x39e   :  { %5045 = vmatpush1.bf16.msra.mxu0 %v6816_v24  ;;  %5077 = vmatpush1.bf16.msra.mxu1 %v6898_v63 }
 0x39f   :  { %5047 = vmatprep.subr.bf16.mxu0 %v6820_v34  ;;  %5079 = vmatprep.subr.bf16.mxu1 %v6901_v23 }
 0x3a2   :  { %5049 = vmatpush1.bf16.msra.mxu0 %v6824_v8  ;;  %5081 = vmatpush1.bf16.msra.mxu1 %v6828_v18 }
 0x3a3   :  { %5083 = vmatprep.subr.bf16.mxu0 %v6763_v37  ;;  %5115 = vmatprep.subr.bf16.mxu1 %v6765_v30 }
 0x458   :  { %v1392_v3 = vpop.f32.mrb[6].mxu0  ;;  %v1463_v36 = vpop.f32.mrb[22].mxu1 }
 0x459   :  { %v5826_v20 = vadd.f32 %v1392_v3, %v6700_v11  ;;  %v1394_v41 = vpop.f32.mrb[7].mxu0  ;;  %v1465_v26 = vpop.f32.mrb[23].mxu1  ;;  %v5874_v32 = vadd.f32 %v1463_v36, %v6704_v0 }
 0x45a   :  { %v5827_v17 = vadd.f32 %v1394_v41, %v6698_v9  ;;  %v5875_v29 = vadd.f32 %v1465_v26, %v6706_v1 }
 0x45b   :  { %v4626_v4 = vmul.f32 -1.442695, %v5826_v20 }
 0x45c   :  { %v4627_v38 = vmul.f32 -1.442695, %v5827_v17  ;;  %v4628_v21 = vmul.f32 -1.442695, %v5875_v29 }
 0x45d   :  { %6004 = vpow2.f32 %v4626_v4 }
 0x45e   :  { %6006 = vpow2.f32 %v4627_v38 }
 0x45f   :  { %6008 = vpow2.f32 %v4628_v21 }
 0x460   :  { %6010 = vtanh.f32 %v5874_v32 }
 0x467   :  { %v6005_v51 = vpop.eup %6004 }
 0x468   :  { %v6007_v47 = vpop.eup %6006  ;;  %v1475_v43 = vadd.f32 1.0, %v6005_v51 }
 0x469   :  { %v1481_v16 = vadd.f32 1.0, %v6007_v47  ;;  %v6009_v3 = vpop.eup %6008 }
 0x46a   :  { %6012 = vrcp.f32 %v1475_v43  ;;  %v6011_v40 = vpop.eup %6010  ;;  %v1488_v4 = vadd.f32 1.0, %v6009_v3 }
 0x46b   :  { %6014 = vrcp.f32 %v1481_v16 }
 0x46c   :  { %6016 = vrcp.f32 %v1488_v4 }
 0x474   :  { %v6013_v41 = vpop.eup %6012 }
 0x475   :  { %v6015_v20 = vpop.eup %6014  ;;  %v1492_v17 = vmul.f32 %v6013_v41, %v6011_v40 }
 0x476   :  { %v1491_v38 = vmul.f32 %v6015_v20, %v6840_v55  ;;  %v6017_v36 = vpop.eup %6016 }
 0x478   :  { %v6912_v26 = vadd.f32 %v1492_v17, %v1491_v38 }
 0x47a   :  { %6018 = vtanh.f32 %v6912_v26 }
 0x484   :  { %v6019_v51 = vpop.eup %6018 }
 0x485   :  { %v6915_v29 = vmul.f32 %v6019_v51, %v6017_v36 }
 0x487   :  { %7652 = vst [vmem:[#allocation24_spill] sm:$0xff] %v6915_v29  ;;  %1630 = vmatmul.mubr.f32.vlgmr.msra.gmra.mrb[8].mxu0 %v6915_v29  ;;  %1701 = vmatmul.mubr.f32.vlgmr.msra.gmra.mrb[24].mxu1 %v6915_v29 }
 0x488   :  { %5085 = vmatpush1.bf16.msra.mxu0 %v6767_v35  ;;  %5117 = vmatpush1.bf16.msra.mxu1 %v6770_v49 }
 0x489   :  { %5087 = vmatprep.subr.bf16.mxu0 %v6775_v62  ;;  %5119 = vmatprep.subr.bf16.mxu1 %v6866_v53 }
 0x48a   :  { %1868 = vmatprep.mubr.f32.mxu0 %v7649_v48  ;;  %1939 = vmatprep.mubr.f32.mxu1 %v7649_v48 }
 0x48c   :  { %5089 = vmatpush1.bf16.msra.mxu0 %v6778_v10  ;;  %5121 = vmatpush1.bf16.msra.mxu1 %v6868_v14 }
 0x48d   :  { %5091 = vmatprep.subr.bf16.mxu0 %v6783_v28  ;;  %5123 = vmatprep.subr.bf16.mxu1 %v6872_v58 }
 0x490   :  { %5093 = vmatpush1.bf16.msra.mxu0 %v6786_v56  ;;  %5125 = vmatpush1.bf16.msra.mxu1 %v6874_v46 }
 0x491   :  { %5095 = vmatprep.subr.bf16.mxu0 %v6791_v13  ;;  %5127 = vmatprep.subr.bf16.mxu1 %v6878_v2 }
 0x494   :  { %5097 = vmatpush1.bf16.msra.mxu0 %v6794_v22  ;;  %5129 = vmatpush1.bf16.msra.mxu1 %v6880_v61 }
 0x495   :  { %5099 = vmatprep.subr.bf16.mxu0 %v6799_v33  ;;  %5131 = vmatprep.subr.bf16.mxu1 %v6884_v45 }
 0x498   :  { %5101 = vmatpush1.bf16.msra.mxu0 %v6802_v42  ;;  %5133 = vmatpush1.bf16.msra.mxu1 %v6886_v39 }
 0x499   :  { %5103 = vmatprep.subr.bf16.mxu0 %v6806_v27  ;;  %5135 = vmatprep.subr.bf16.mxu1 %v6890_v50 }
 0x49c   :  { %5105 = vmatpush1.bf16.msra.mxu0 %v6809_v54  ;;  %5137 = vmatpush1.bf16.msra.mxu1 %v6892_v59 }
 0x49d   :  { %5107 = vmatprep.subr.bf16.mxu0 %v6811_v57  ;;  %5139 = vmatprep.subr.bf16.mxu1 %v6894_v7 }
 0x4a0   :  { %5109 = vmatpush1.bf16.msra.mxu0 %v6816_v24  ;;  %5141 = vmatpush1.bf16.msra.mxu1 %v6898_v63 }
 0x4a1   :  { %5111 = vmatprep.subr.bf16.mxu0 %v6820_v34  ;;  %5143 = vmatprep.subr.bf16.mxu1 %v6901_v23 }
 0x4a4   :  { %5113 = vmatpush1.bf16.msra.mxu0 %v6824_v8  ;;  %5145 = vmatpush1.bf16.msra.mxu1 %v6828_v18 }
 0x4a5   :  { %5147 = vmatprep.subr.bf16.mxu0 %v6763_v37  ;;  %5179 = vmatprep.subr.bf16.mxu1 %v6765_v30 }
 0x55a   :  { %v1631_v40 = vpop.f32.mrb[8].mxu0  ;;  %v1702_v16 = vpop.f32.mrb[24].mxu1 }
 0x55b   :  { %v5828_v43 = vadd.f32 %v1631_v40, %v6700_v11  ;;  %v1633_v47 = vpop.f32.mrb[9].mxu0  ;;  %v1704_v32 = vpop.f32.mrb[25].mxu1  ;;  %v5876_v17 = vadd.f32 %v1702_v16, %v6704_v0 }
 0x55c   :  { %v5829_v55 = vadd.f32 %v1633_v47, %v6698_v9  ;;  %v5877_v41 = vadd.f32 %v1704_v32, %v6706_v1 }
 0x55d   :  { %v4629_v21 = vmul.f32 -1.442695, %v5828_v43 }
 0x55e   :  { %v4630_v3 = vmul.f32 -1.442695, %v5829_v55  ;;  %v4631_v20 = vmul.f32 -1.442695, %v5877_v41 }
 0x55f   :  { %6020 = vpow2.f32 %v4629_v21 }
 0x560   :  { %6022 = vpow2.f32 %v4630_v3 }
 0x561   :  { %6024 = vpow2.f32 %v4631_v20 }
 0x562   :  { %6026 = vtanh.f32 %v5876_v17 }
 0x569   :  { %v6021_v37 = vpop.eup %6020 }
 0x56a   :  { %v6023_v4 = vpop.eup %6022  ;;  %v1714_v30 = vadd.f32 1.0, %v6021_v37 }
 0x56b   :  { %v1720_v38 = vadd.f32 1.0, %v6023_v4  ;;  %v6025_v36 = vpop.eup %6024 }
 0x56c   :  { %6028 = vrcp.f32 %v1714_v30  ;;  %v6027_v51 = vpop.eup %6026  ;;  %v1727_v55 = vadd.f32 1.0, %v6025_v36 }
 0x56d   :  { %6030 = vrcp.f32 %v1720_v38 }
 0x56e   :  { %6032 = vrcp.f32 %v1727_v55 }
 0x576   :  { %v6029_v40 = vpop.eup %6028 }
 0x577   :  { %v6031_v43 = vpop.eup %6030  ;;  %v1731_v47 = vmul.f32 %v6029_v40, %v6027_v51  ;;  %v2219_v40 = vld [vmem:[#allocation9 + $0x8] sm:$0xff] }
 0x578   :  { %v1730_v21 = vmul.f32 %v6031_v43, %v6912_v26  ;;  %v6033_v16 = vpop.eup %6032  ;;  %v2223_v43 = vld [vmem:[#allocation9 + $0x28] sm:$0xff] }
 0x579   :  { %v7011_v55 = vpack.c.bf16 %v2223_v43, %v2219_v40  ;;  %v2263_v40 = vld [vmem:[#allocation9 + $0x168] sm:$0xff]  ;;  %v2258_v43 = vld [vmem:[#allocation9 + $0x140] sm:$0xff] }
 0x57a   :  { %v6958_v32 = vadd.f32 %v1731_v47, %v1730_v21  ;;  %v2221_v47 = vld [vmem:[#allocation9 + $0x18] sm:$0xff] }
 0x57b   :  { %v2225_v21 = vld [vmem:[#allocation9 + $0x38] sm:$0xff] }
 0x57c   :  { %6034 = vtanh.f32 %v6958_v32 }
 0x586   :  { %v6035_v3 = vpop.eup %6034 }
 0x587   :  { %v6961_v41 = vmul.f32 %v6035_v3, %v6033_v16  ;;  %v2222_v16 = vld [vmem:[#allocation9 + $0x20] sm:$0xff]  ;;  %v7013_v3 = vpack.c.bf16 %v2225_v21, %v2221_v47 }
 0x588   :  { %v2262_v21 = vld [vmem:[#allocation9 + $0x160] sm:$0xff] }
 0x589   :  { %7653 = vst [vmem:[#allocation25_spill] sm:$0xff] %v6961_v41  ;;  %1869 = vmatmul.mubr.f32.vlgmr.msra.gmra.mrb[10].mxu0 %v6961_v41  ;;  %1940 = vmatmul.mubr.f32.vlgmr.msra.gmra.mrb[26].mxu1 %v6961_v41 }
 0x58a   :  { %5149 = vmatpush1.bf16.msra.mxu0 %v6767_v35  ;;  %5181 = vmatpush1.bf16.msra.mxu1 %v6770_v49 }
 0x58b   :  { %5151 = vmatprep.subr.bf16.mxu0 %v6775_v62  ;;  %5183 = vmatprep.subr.bf16.mxu1 %v6866_v53 }
 0x58c   :  { %2107 = vmatprep.mubr.f32.mxu0 %v7649_v48  ;;  %2178 = vmatprep.mubr.f32.mxu1 %v7649_v48 }
 0x58e   :  { %5153 = vmatpush1.bf16.msra.mxu0 %v6778_v10  ;;  %5185 = vmatpush1.bf16.msra.mxu1 %v6868_v14 }
 0x58f   :  { %5155 = vmatprep.subr.bf16.mxu0 %v6783_v28  ;;  %5187 = vmatprep.subr.bf16.mxu1 %v6872_v58 }
 0x592   :  { %5157 = vmatpush1.bf16.msra.mxu0 %v6786_v56  ;;  %5189 = vmatpush1.bf16.msra.mxu1 %v6874_v46 }
 0x593   :  { %5159 = vmatprep.subr.bf16.mxu0 %v6791_v13  ;;  %5191 = vmatprep.subr.bf16.mxu1 %v6878_v2 }
 0x596   :  { %5161 = vmatpush1.bf16.msra.mxu0 %v6794_v22  ;;  %5193 = vmatpush1.bf16.msra.mxu1 %v6880_v61 }
 0x597   :  { %5163 = vmatprep.subr.bf16.mxu0 %v6799_v33  ;;  %5195 = vmatprep.subr.bf16.mxu1 %v6884_v45 }
 0x59a   :  { %5165 = vmatpush1.bf16.msra.mxu0 %v6802_v42  ;;  %5197 = vmatpush1.bf16.msra.mxu1 %v6886_v39 }
 0x59b   :  { %5167 = vmatprep.subr.bf16.mxu0 %v6806_v27  ;;  %5199 = vmatprep.subr.bf16.mxu1 %v6890_v50 }
 0x59e   :  { %5169 = vmatpush1.bf16.msra.mxu0 %v6809_v54  ;;  %5201 = vmatpush1.bf16.msra.mxu1 %v6892_v59 }
 0x59f   :  { %5171 = vmatprep.subr.bf16.mxu0 %v6811_v57  ;;  %5203 = vmatprep.subr.bf16.mxu1 %v6894_v7 }
 0x5a2   :  { %5173 = vmatpush1.bf16.msra.mxu0 %v6816_v24  ;;  %5205 = vmatpush1.bf16.msra.mxu1 %v6898_v63 }
 0x5a3   :  { %5175 = vmatprep.subr.bf16.mxu0 %v6820_v34  ;;  %5207 = vmatprep.subr.bf16.mxu1 %v6901_v23 }
 0x5a6   :  { %5177 = vmatpush1.bf16.msra.mxu0 %v6824_v8  ;;  %5209 = vmatpush1.bf16.msra.mxu1 %v6828_v18 }
 0x5a7   :  { %5211 = vmatprep.subr.bf16.mxu0 %v7011_v55  ;;  %5243 = vmatprep.subr.bf16.mxu1 %v7013_v3 }
 0x65c   :  { %v1870_v35 = vpop.f32.mrb[10].mxu0  ;;  %v1941_v49 = vpop.f32.mrb[26].mxu1 }
 0x65d   :  { %v5830_v62 = vadd.f32 %v1870_v35, %v6700_v11  ;;  %v1872_v10 = vpop.f32.mrb[11].mxu0  ;;  %v1943_v28 = vpop.f32.mrb[27].mxu1  ;;  %v5878_v27 = vadd.f32 %v1941_v49, %v6704_v0  ;;  %v2220_v49 = vld [vmem:[#allocation9 + $0x10] sm:$0xff] }
 0x65e   :  { %v5831_v56 = vadd.f32 %v1872_v10, %v6698_v9  ;;  %v5879_v33 = vadd.f32 %v1943_v28, %v6706_v1  ;;  %v2227_v28 = vld [vmem:[#allocation9 + $0x48] sm:$0xff] }
 0x65f   :  { %v4632_v13 = vmul.f32 -1.442695, %v5830_v62  ;;  %v2224_v62 = vld [vmem:[#allocation9 + $0x30] sm:$0xff] }
 0x660   :  { %v4633_v22 = vmul.f32 -1.442695, %v5831_v56  ;;  %v4634_v42 = vmul.f32 -1.442695, %v5879_v33  ;;  %v7018_v10 = vpack.c.bf16 %v2224_v62, %v2220_v49  ;;  %v2231_v56 = vld [vmem:[#allocation9 + $0x68] sm:$0xff]  ;;  %v2230_v33 = vld [vmem:[#allocation9 + $0x60] sm:$0xff] }
 0x661   :  { %6036 = vpow2.f32 %v4632_v13  ;;  %v7023_v13 = vpack.c.bf16 %v2231_v56, %v2227_v28  ;;  %v2270_v62 = vld [vmem:[#allocation9 + $0x1a0] sm:$0xff]  ;;  %v2275_v28 = vld [vmem:[#allocation9 + $0x1c8] sm:$0xff] }
 0x662   :  { %6038 = vpow2.f32 %v4633_v22  ;;  %v2226_v22 = vld [vmem:[#allocation9 + $0x40] sm:$0xff]  ;;  %v2279_v56 = vld [vmem:[#allocation9 + $0x1e8] sm:$0xff] }
 0x663   :  { %6040 = vpow2.f32 %v4634_v42  ;;  %v7026_v42 = vpack.c.bf16 %v2230_v33, %v2226_v22  ;;  %v2274_v33 = vld [vmem:[#allocation9 + $0x1c0] sm:$0xff] }
 0x664   :  { %6042 = vtanh.f32 %v5878_v27  ;;  %v2235_v27 = vld [vmem:[#allocation9 + $0x88] sm:$0xff] }
 0x66b   :  { %v6037_v54 = vpop.eup %6036 }
 0x66c   :  { %v6039_v57 = vpop.eup %6038  ;;  %v1953_v24 = vadd.f32 1.0, %v6037_v54  ;;  %v2239_v54 = vld [vmem:[#allocation9 + $0xa8] sm:$0xff] }
 0x66d   :  { %v1959_v34 = vadd.f32 1.0, %v6039_v57  ;;  %v6041_v8 = vpop.eup %6040  ;;  %v7031_v57 = vpack.c.bf16 %v2239_v54, %v2235_v27  ;;  %v2278_v27 = vld [vmem:[#allocation9 + $0x1e0] sm:$0xff]  ;;  %v2276_v54 = vld [vmem:[#allocation9 + $0x1d0] sm:$0xff] }
 0x66e   :  { %6044 = vrcp.f32 %v1953_v24  ;;  %v6043_v18 = vpop.eup %6042  ;;  %v1966_v37 = vadd.f32 1.0, %v6041_v8  ;;  %v2234_v24 = vld [vmem:[#allocation9 + $0x80] sm:$0xff] }
 0x66f   :  { %6046 = vrcp.f32 %v1959_v34  ;;  %v2238_v34 = vld [vmem:[#allocation9 + $0xa0] sm:$0xff] }
 0x670   :  { %6048 = vrcp.f32 %v1966_v37  ;;  %v7034_v8 = vpack.c.bf16 %v2238_v34, %v2234_v24  ;;  %v2255_v37 = vld [vmem:[#allocation9 + $0x128] sm:$0xff]  ;;  %v2280_v24 = vld [vmem:[#allocation9 + $0x1f0] sm:$0xff] }
 0x671   :  { %v7076_v34 = vpack.c.bf16 %v2280_v24, %v2276_v54 }
 0x678   :  { %v6045_v26 = vpop.eup %6044 }
 0x679   :  { %v6047_v20 = vpop.eup %6046  ;;  %v1970_v17 = vmul.f32 %v6045_v26, %v6043_v18  ;;  %v2247_v18 = vld [vmem:[#allocation9 + $0xe8] sm:$0xff] }
 0x67a   :  { %v1969_v4 = vmul.f32 %v6047_v20, %v6958_v32  ;;  %v6049_v38 = vpop.eup %6048  ;;  %v2218_v32 = vld [vmem:[#allocation9] sm:$0xff] }
 0x67b   :  { %v7015_v35 = vpack.c.bf16 %v2222_v16, %v2218_v32  ;;  %v2242_v20 = vld [vmem:[#allocation9 + $0xc0] sm:$0xff]  ;;  %v2267_v32 = vld [vmem:[#allocation9 + $0x188] sm:$0xff]  ;;  %v7057_v16 = vpack.c.bf16 %v2262_v21, %v2258_v43 }
 0x67c   :  { %v7002_v30 = vadd.f32 %v1970_v17, %v1969_v4 }
 0x67e   :  { %6050 = vtanh.f32 %v7002_v30 }
 0x688   :  { %v6051_v36 = vpop.eup %6050 }
 0x689   :  { %v7005_v51 = vmul.f32 %v6051_v36, %v6049_v38  ;;  %v2250_v38 = vld [vmem:[#allocation9 + $0x100] sm:$0xff] }
 0x68b   :  { %7654 = vst [vmem:[#allocation26_spill] sm:$0xff] %v7005_v51  ;;  %2108 = vmatmul.mubr.f32.vlgmr.msra.gmra.mrb[12].mxu0 %v7005_v51  ;;  %2179 = vmatmul.mubr.f32.vlgmr.msra.gmra.mrb[28].mxu1 %v7005_v51 }
 0x68c   :  { %2346 = vmatprep.mubr.f32.mxu0 %v7649_v48  ;;  %2417 = vmatprep.mubr.f32.mxu1 %v7649_v48 }
 0x68d   :  { %5213 = vmatpush1.bf16.msra.mxu0 %v7015_v35  ;;  %5245 = vmatpush1.bf16.msra.mxu1 %v7018_v10 }
 0x68e   :  { %5247 = vmatprep.subr.bf16.mxu1 %v6866_v53  ;;  %5215 = vmatprep.subr.bf16.mxu0 %v7023_v13  ;;  %v2243_v53 = vld [vmem:[#allocation9 + $0xc8] sm:$0xff] }
 0x68f   :  { %v7039_v26 = vpack.c.bf16 %v2247_v18, %v2243_v53 }
 0x691   :  { %5217 = vmatpush1.bf16.msra.mxu0 %v7026_v42  ;;  %5249 = vmatpush1.bf16.msra.mxu1 %v6868_v14  ;;  %v2246_v14 = vld [vmem:[#allocation9 + $0xe0] sm:$0xff] }
 0x692   :  { %5251 = vmatprep.subr.bf16.mxu1 %v6872_v58  ;;  %5219 = vmatprep.subr.bf16.mxu0 %v7031_v57  ;;  %v7042_v17 = vpack.c.bf16 %v2246_v14, %v2242_v20  ;;  %v2251_v58 = vld [vmem:[#allocation9 + $0x108] sm:$0xff] }
 0x693   :  { %v7047_v4 = vpack.c.bf16 %v2255_v37, %v2251_v58 }
 0x695   :  { %5221 = vmatpush1.bf16.msra.mxu0 %v7034_v8  ;;  %5253 = vmatpush1.bf16.msra.mxu1 %v6874_v46  ;;  %v2254_v46 = vld [vmem:[#allocation9 + $0x120] sm:$0xff] }
 0x696   :  { %5255 = vmatprep.subr.bf16.mxu1 %v6878_v2  ;;  %5223 = vmatprep.subr.bf16.mxu0 %v7039_v26  ;;  %v7050_v36 = vpack.c.bf16 %v2254_v46, %v2250_v38  ;;  %v2259_v2 = vld [vmem:[#allocation9 + $0x148] sm:$0xff] }
 0x697   :  { %v7054_v47 = vpack.c.bf16 %v2263_v40, %v2259_v2 }
 0x699   :  { %5225 = vmatpush1.bf16.msra.mxu0 %v7042_v17  ;;  %5257 = vmatpush1.bf16.msra.mxu1 %v6880_v61  ;;  %v2271_v61 = vld [vmem:[#allocation9 + $0x1a8] sm:$0xff] }
 0x69a   :  { %5259 = vmatprep.subr.bf16.mxu1 %v6884_v45  ;;  %5227 = vmatprep.subr.bf16.mxu0 %v7047_v4  ;;  %v7059_v49 = vpack.c.bf16 %v2271_v61, %v2267_v32  ;;  %v2266_v45 = vld [vmem:[#allocation9 + $0x180] sm:$0xff] }
 0x69b   :  { %v7064_v22 = vpack.c.bf16 %v2270_v62, %v2266_v45 }
 0x69d   :  { %5229 = vmatpush1.bf16.msra.mxu0 %v7050_v36  ;;  %5261 = vmatpush1.bf16.msra.mxu1 %v6886_v39  ;;  %v7068_v39 = vpack.c.bf16 %v2279_v56, %v2275_v28 }
 0x69e   :  { %5231 = vmatprep.subr.bf16.mxu0 %v7054_v47  ;;  %5263 = vmatprep.subr.bf16.mxu1 %v6890_v50  ;;  %v7072_v50 = vpack.c.bf16 %v2278_v27, %v2274_v33 }
 0x6a1   :  { %5233 = vmatpush1.bf16.msra.mxu0 %v7057_v16  ;;  %5265 = vmatpush1.bf16.msra.mxu1 %v6892_v59 }
 0x6a2   :  { %5235 = vmatprep.subr.bf16.mxu0 %v7059_v49  ;;  %5267 = vmatprep.subr.bf16.mxu1 %v6894_v7 }
 0x6a5   :  { %5237 = vmatpush1.bf16.msra.mxu0 %v7064_v22  ;;  %5269 = vmatpush1.bf16.msra.mxu1 %v6898_v63 }
 0x6a6   :  { %5239 = vmatprep.subr.bf16.mxu0 %v7068_v39  ;;  %5271 = vmatprep.subr.bf16.mxu1 %v6901_v23 }
 0x6a9   :  { %5241 = vmatpush1.bf16.msra.mxu0 %v7072_v50  ;;  %5273 = vmatpush1.bf16.msra.mxu1 %v7076_v34 }
 0x6aa   :  { %5275 = vmatprep.subr.bf16.mxu0 %v7011_v55  ;;  %5307 = vmatprep.subr.bf16.mxu1 %v7013_v3 }
 0x75e   :  { %v2109_v59 = vpop.f32.mrb[12].mxu0  ;;  %v2180_v7 = vpop.f32.mrb[28].mxu1 }
 0x75f   :  { %v5832_v53 = vadd.f32 %v2109_v59, %v6700_v11  ;;  %v2111_v18 = vpop.f32.mrb[13].mxu0  ;;  %v2182_v63 = vpop.f32.mrb[29].mxu1  ;;  %v5880_v38 = vadd.f32 %v2180_v7, %v6704_v0  ;;  %v2472_v59 = vld [vmem:[#allocation9 + $0x78] sm:$0xff] }
 0x760   :  { %v5833_v20 = vadd.f32 %v2111_v18, %v6698_v9  ;;  %v5881_v23 = vadd.f32 %v2182_v63, %v6706_v1  ;;  %v2471_v18 = vld [vmem:[#allocation9 + $0x70] sm:$0xff] }
 0x761   :  { %v4635_v14 = vmul.f32 -1.442695, %v5832_v53  ;;  %v2467_v53 = vld [vmem:[#allocation9 + $0x50] sm:$0xff] }
 0x762   :  { %v4636_v58 = vmul.f32 -1.442695, %v5833_v20  ;;  %v4637_v37 = vmul.f32 -1.442695, %v5881_v23  ;;  %v7116_v63 = vpack.c.bf16 %v2471_v18, %v2467_v53  ;;  %v2476_v20 = vld [vmem:[#allocation9 + $0x98] sm:$0xff]  ;;  %v2475_v23 = vld [vmem:[#allocation9 + $0x90] sm:$0xff] }
 0x763   :  { %6052 = vpow2.f32 %v4635_v14  ;;  %v2480_v14 = vld [vmem:[#allocation9 + $0xb8] sm:$0xff]  ;;  %v2503_v18 = vld [vmem:[#allocation9 + $0x170] sm:$0xff] }
 0x764   :  { %6054 = vpow2.f32 %v4636_v58  ;;  %v7120_v58 = vpack.c.bf16 %v2480_v14, %v2476_v20  ;;  %v2508_v20 = vld [vmem:[#allocation9 + $0x198] sm:$0xff] }
 0x765   :  { %6056 = vpow2.f32 %v4637_v37  ;;  %v2479_v37 = vld [vmem:[#allocation9 + $0xb0] sm:$0xff]  ;;  %v2512_v14 = vld [vmem:[#allocation9 + $0x1b8] sm:$0xff] }
 0x766   :  { %6058 = vtanh.f32 %v5880_v38  ;;  %v7122_v38 = vpack.c.bf16 %v2479_v37, %v2475_v23  ;;  %v7142_v37 = vpack.c.bf16 %v2512_v14, %v2508_v20 }
 0x76d   :  { %v6053_v46 = vpop.eup %6052 }
 0x76e   :  { %v6055_v2 = vpop.eup %6054  ;;  %v2192_v40 = vadd.f32 1.0, %v6053_v46  ;;  %v2484_v46 = vld [vmem:[#allocation9 + $0xd8] sm:$0xff] }
 0x76f   :  { %v2198_v43 = vadd.f32 1.0, %v6055_v2  ;;  %v6057_v21 = vpop.eup %6056  ;;  %v2488_v2 = vld [vmem:[#allocation9 + $0xf8] sm:$0xff] }
 0x770   :  { %6060 = vrcp.f32 %v2192_v40  ;;  %v6059_v32 = vpop.eup %6058  ;;  %v2205_v28 = vadd.f32 1.0, %v6057_v21  ;;  %v7126_v40 = vpack.c.bf16 %v2488_v2, %v2484_v46  ;;  %v2487_v21 = vld [vmem:[#allocation9 + $0xf0] sm:$0xff] }
 0x771   :  { %6062 = vrcp.f32 %v2198_v43  ;;  %v2483_v43 = vld [vmem:[#allocation9 + $0xd0] sm:$0xff] }
 0x772   :  { %6064 = vrcp.f32 %v2205_v28  ;;  %v2491_v28 = vld [vmem:[#allocation9 + $0x110] sm:$0xff] }
 0x773   :  { %v2507_v46 = vld [vmem:[#allocation9 + $0x190] sm:$0xff] }
 0x774   :  { %v2511_v2 = vld [vmem:[#allocation9 + $0x1b0] sm:$0xff] }
 0x77a   :  { %v6061_v61 = vpop.eup %6060 }
 0x77b   :  { %v6063_v45 = vpop.eup %6062  ;;  %v2209_v62 = vmul.f32 %v6061_v61, %v6059_v32  ;;  %v7128_v32 = vpack.c.bf16 %v2487_v21, %v2483_v43  ;;  %v2492_v61 = vld [vmem:[#allocation9 + $0x118] sm:$0xff] }
 0x77c   :  { %v2208_v56 = vmul.f32 %v6063_v45, %v7002_v30  ;;  %v6065_v27 = vpop.eup %6064  ;;  %v2468_v30 = vld [vmem:[#allocation9 + $0x58] sm:$0xff] }
 0x77d   :  { %v7114_v7 = vpack.c.bf16 %v2472_v59, %v2468_v30  ;;  %v2496_v45 = vld [vmem:[#allocation9 + $0x138] sm:$0xff]  ;;  %v2499_v59 = vld [vmem:[#allocation9 + $0x150] sm:$0xff] }
 0x77e   :  { %v7088_v33 = vadd.f32 %v2209_v62, %v2208_v56  ;;  %v7132_v62 = vpack.c.bf16 %v2496_v45, %v2492_v61  ;;  %v2495_v56 = vld [vmem:[#allocation9 + $0x130] sm:$0xff]  ;;  %v2504_v30 = vld [vmem:[#allocation9 + $0x178] sm:$0xff]  ;;  %v7140_v23 = vpack.c.bf16 %v2503_v18, %v2499_v59  ;;  %v7146_v61 = vpack.c.bf16 %v2511_v2, %v2507_v46 }
 0x77f   :  { %v2516_v43 = vld [vmem:[#allocation9 + $0x1d8] sm:$0xff] }
 0x780   :  { %6066 = vtanh.f32 %v7088_v33  ;;  %v2520_v21 = vld [vmem:[#allocation9 + $0x1f8] sm:$0xff] }
 0x781   :  { %v7149_v45 = vpack.c.bf16 %v2520_v21, %v2516_v43 }
 0x78a   :  { %v6067_v54 = vpop.eup %6066 }
 0x78b   :  { %v7091_v24 = vmul.f32 %v6067_v54, %v6065_v27  ;;  %v7134_v27 = vpack.c.bf16 %v2495_v56, %v2491_v28  ;;  %v2500_v54 = vld [vmem:[#allocation9 + $0x158] sm:$0xff] }
 0x78c   :  { %v7138_v53 = vpack.c.bf16 %v2504_v30, %v2500_v54 }
 0x78d   :  { %7655 = vst [vmem:[#allocation27_spill] sm:$0xff] %v7091_v24  ;;  %2347 = vmatmul.mubr.f32.vlgmr.msra.gmra.mrb[14].mxu0 %v7091_v24  ;;  %2418 = vmatmul.mubr.f32.vlgmr.msra.gmra.mrb[30].mxu1 %v7091_v24 }
 0x78e   :  { %5277 = vmatpush1.bf16.msra.mxu0 %v7015_v35  ;;  %5309 = vmatpush1.bf16.msra.mxu1 %v7018_v10 }
 0x78f   :  { %5279 = vmatprep.subr.bf16.mxu0 %v7023_v13  ;;  %2585 = vmatprep.mubr.f32.mxu0 %v7649_v48 }
 0x790   :  { %2656 = vmatprep.mubr.f32.mxu1 %v7649_v48  ;;  %5311 = vmatprep.subr.bf16.mxu1 %v7114_v7 }
 0x792   :  { %5281 = vmatpush1.bf16.msra.mxu0 %v7026_v42  ;;  %5313 = vmatpush1.bf16.msra.mxu1 %v7116_v63 }
 0x793   :  { %5283 = vmatprep.subr.bf16.mxu0 %v7031_v57  ;;  %5315 = vmatprep.subr.bf16.mxu1 %v7120_v58 }
 0x796   :  { %5285 = vmatpush1.bf16.msra.mxu0 %v7034_v8  ;;  %5317 = vmatpush1.bf16.msra.mxu1 %v7122_v38 }
 0x797   :  { %5287 = vmatprep.subr.bf16.mxu0 %v7039_v26  ;;  %5319 = vmatprep.subr.bf16.mxu1 %v7126_v40 }
 0x79a   :  { %5289 = vmatpush1.bf16.msra.mxu0 %v7042_v17  ;;  %5321 = vmatpush1.bf16.msra.mxu1 %v7128_v32 }
 0x79b   :  { %5291 = vmatprep.subr.bf16.mxu0 %v7047_v4  ;;  %5323 = vmatprep.subr.bf16.mxu1 %v7132_v62 }
 0x79e   :  { %5293 = vmatpush1.bf16.msra.mxu0 %v7050_v36  ;;  %5325 = vmatpush1.bf16.msra.mxu1 %v7134_v27 }
 0x79f   :  { %5295 = vmatprep.subr.bf16.mxu0 %v7054_v47  ;;  %5327 = vmatprep.subr.bf16.mxu1 %v7138_v53 }
 0x7a2   :  { %5297 = vmatpush1.bf16.msra.mxu0 %v7057_v16  ;;  %5329 = vmatpush1.bf16.msra.mxu1 %v7140_v23 }
 0x7a3   :  { %5299 = vmatprep.subr.bf16.mxu0 %v7059_v49  ;;  %5331 = vmatprep.subr.bf16.mxu1 %v7142_v37 }
 0x7a6   :  { %5301 = vmatpush1.bf16.msra.mxu0 %v7064_v22  ;;  %5333 = vmatpush1.bf16.msra.mxu1 %v7146_v61 }
 0x7a7   :  { %5303 = vmatprep.subr.bf16.mxu0 %v7068_v39  ;;  %5335 = vmatprep.subr.bf16.mxu1 %v7149_v45 }
 0x7aa   :  { %5305 = vmatpush1.bf16.msra.mxu0 %v7072_v50  ;;  %5337 = vmatpush1.bf16.msra.mxu1 %v7076_v34 }
 0x7ab   :  { %5339 = vmatprep.subr.bf16.mxu0 %v7011_v55  ;;  %5371 = vmatprep.subr.bf16.mxu1 %v7013_v3 }
 0x860   :  { %v2348_v28 = vpop.f32.mrb[14].mxu0  ;;  %v2419_v56 = vpop.f32.mrb[30].mxu1 }
 0x861   :  { %v5834_v54 = vadd.f32 %v2348_v28, %v6700_v11  ;;  %v2350_v30 = vpop.f32.mrb[15].mxu0  ;;  %v2421_v59 = vpop.f32.mrb[31].mxu1  ;;  %v5882_v43 = vadd.f32 %v2419_v56, %v6704_v0 }
 0x862   :  { %v5835_v18 = vadd.f32 %v2350_v30, %v6698_v9  ;;  %v5883_v46 = vadd.f32 %v2421_v59, %v6706_v1 }
 0x863   :  { %v4638_v20 = vmul.f32 -1.442695, %v5834_v54 }
 0x864   :  { %v4639_v14 = vmul.f32 -1.442695, %v5835_v18  ;;  %v4640_v2 = vmul.f32 -1.442695, %v5883_v46 }
 0x865   :  { %6068 = vpow2.f32 %v4638_v20 }
 0x866   :  { %6070 = vpow2.f32 %v4639_v14 }
 0x867   :  { %6072 = vpow2.f32 %v4640_v2 }
 0x868   :  { %6074 = vtanh.f32 %v5882_v43 }
 0x86f   :  { %v6069_v21 = vpop.eup %6068 }
 0x870   :  { %v6071_v24 = vpop.eup %6070  ;;  %v2431_v51 = vadd.f32 1.0, %v6069_v21 }
 0x871   :  { %v2437_v41 = vadd.f32 1.0, %v6071_v24  ;;  %v6073_v28 = vpop.eup %6072 }
 0x872   :  { %6076 = vrcp.f32 %v2431_v51  ;;  %v6075_v29 = vpop.eup %6074  ;;  %v2444_v20 = vadd.f32 1.0, %v6073_v28 }
 0x873   :  { %6078 = vrcp.f32 %v2437_v41  ;;  %v270_v41 = vadd.f32 %v6665_v19, %v6698_v9 }
 0x874   :  { %6080 = vrcp.f32 %v2444_v20 }
 0x87c   :  { %v6077_v30 = vpop.eup %6076 }
 0x87d   :  { %v6079_v54 = vpop.eup %6078  ;;  %v2448_v18 = vmul.f32 %v6077_v30, %v6075_v29  ;;  %v268_v29 = vadd.f32 %v6663_v12, %v6700_v11 }
 0x87e   :  { %v2447_v14 = vmul.f32 %v6079_v54, %v7088_v33  ;;  %v6081_v56 = vpop.eup %6080 }
 0x880   :  { %v7160_v59 = vadd.f32 %v2448_v18, %v2447_v14 }
 0x882   :  { %6082 = vtanh.f32 %v7160_v59 }
 0x88c   :  { %v6083_v46 = vpop.eup %6082 }
 0x88d   :  { %v7163_v2 = vmul.f32 %v6083_v46, %v6081_v56 }
 0x88f   :  { %2586 = vmatmul.mubr.f32.vlgmr.msra.gmra.mrb[16].mxu0 %v7163_v2  ;;  %2657 = vmatmul.mubr.f32.vlgmr.msra.gmra.mrb[32].mxu1 %v7163_v2 }
 0x890   :  { %5341 = vmatpush1.bf16.msra.mxu0 %v7015_v35  ;;  %5373 = vmatpush1.bf16.msra.mxu1 %v7018_v10 }
 0x891   :  { %5343 = vmatprep.subr.bf16.mxu0 %v7023_v13  ;;  %5375 = vmatprep.subr.bf16.mxu1 %v7114_v7 }
 0x892   :  { %2824 = vmatprep.mubr.f32.mxu0 %v7649_v48  ;;  %2895 = vmatprep.mubr.f32.mxu1 %v7649_v48 }
 0x894   :  { %5345 = vmatpush1.bf16.msra.mxu0 %v7026_v42  ;;  %5377 = vmatpush1.bf16.msra.mxu1 %v7116_v63 }
 0x895   :  { %5347 = vmatprep.subr.bf16.mxu0 %v7031_v57  ;;  %5379 = vmatprep.subr.bf16.mxu1 %v7120_v58 }
 0x898   :  { %5349 = vmatpush1.bf16.msra.mxu0 %v7034_v8  ;;  %5381 = vmatpush1.bf16.msra.mxu1 %v7122_v38 }
 0x899   :  { %5351 = vmatprep.subr.bf16.mxu0 %v7039_v26  ;;  %5383 = vmatprep.subr.bf16.mxu1 %v7126_v40 }
 0x89c   :  { %5353 = vmatpush1.bf16.msra.mxu0 %v7042_v17  ;;  %5385 = vmatpush1.bf16.msra.mxu1 %v7128_v32 }
 0x89d   :  { %5355 = vmatprep.subr.bf16.mxu0 %v7047_v4  ;;  %5387 = vmatprep.subr.bf16.mxu1 %v7132_v62 }
 0x8a0   :  { %5357 = vmatpush1.bf16.msra.mxu0 %v7050_v36  ;;  %5389 = vmatpush1.bf16.msra.mxu1 %v7134_v27 }
 0x8a1   :  { %5359 = vmatprep.subr.bf16.mxu0 %v7054_v47  ;;  %5391 = vmatprep.subr.bf16.mxu1 %v7138_v53 }
 0x8a4   :  { %5361 = vmatpush1.bf16.msra.mxu0 %v7057_v16  ;;  %5393 = vmatpush1.bf16.msra.mxu1 %v7140_v23 }
 0x8a5   :  { %5363 = vmatprep.subr.bf16.mxu0 %v7059_v49  ;;  %5395 = vmatprep.subr.bf16.mxu1 %v7142_v37 }
 0x8a8   :  { %5365 = vmatpush1.bf16.msra.mxu0 %v7064_v22  ;;  %5397 = vmatpush1.bf16.msra.mxu1 %v7146_v61 }
 0x8a9   :  { %5367 = vmatprep.subr.bf16.mxu0 %v7068_v39  ;;  %5399 = vmatprep.subr.bf16.mxu1 %v7149_v45 }
 0x8ac   :  { %5369 = vmatpush1.bf16.msra.mxu0 %v7072_v50  ;;  %5401 = vmatpush1.bf16.msra.mxu1 %v7076_v34 }
 0x8ad   :  { %5403 = vmatprep.subr.bf16.mxu0 %v7011_v55  ;;  %5435 = vmatprep.subr.bf16.mxu1 %v7013_v3 }
 0x962   :  { %v2587_v51 = vpop.f32.mrb[16].mxu0  ;;  %v2658_v33 = vpop.f32.mrb[32].mxu1 }
 0x963   :  { %v2663_v24 = vadd.f32 %v2587_v51, %v268_v29  ;;  %v2589_v43 = vpop.f32.mrb[17].mxu0  ;;  %v2660_v21 = vpop.f32.mrb[33].mxu1  ;;  %v5884_v3 = vadd.f32 %v2658_v33, %v6704_v0 }
 0x964   :  { %v2664_v28 = vadd.f32 %v2589_v43, %v270_v41  ;;  %v5885_v55 = vadd.f32 %v2660_v21, %v6706_v1 }
 0x965   :  { %v4641_v30 = vmul.f32 -1.442695, %v2663_v24 }
 0x966   :  { %v4642_v54 = vmul.f32 -1.442695, %v2664_v28  ;;  %v4643_v18 = vmul.f32 -1.442695, %v5885_v55 }
 0x967   :  { %6084 = vpow2.f32 %v4641_v30 }
 0x968   :  { %6086 = vpow2.f32 %v4642_v54 }
 0x969   :  { %6088 = vpow2.f32 %v4643_v18 }
 0x96a   :  { %6090 = vtanh.f32 %v5884_v3 }
 0x971   :  { %v6085_v20 = vpop.eup %6084 }
 0x972   :  { %v6087_v12 = vpop.eup %6086  ;;  %v2670_v14 = vadd.f32 1.0, %v6085_v20 }
 0x973   :  { %v2676_v19 = vadd.f32 1.0, %v6087_v12  ;;  %v6089_v56 = vpop.eup %6088 }
 0x974   :  { %6092 = vrcp.f32 %v2670_v14  ;;  %v6091_v46 = vpop.eup %6090  ;;  %v2683_v24 = vadd.f32 1.0, %v6089_v56  ;;  %v3175_v56 = vld [vmem:[#allocation9 + $0x8] sm:$0xff] }
 0x975   :  { %6094 = vrcp.f32 %v2676_v19 }
 0x976   :  { %6096 = vrcp.f32 %v2683_v24  ;;  %v3174_v24 = vld [vmem:[#allocation9] sm:$0xff] }
 0x97e   :  { %v6093_v29 = vpop.eup %6092 }
 0x97f   :  { %v6095_v41 = vpop.eup %6094  ;;  %v2687_v51 = vmul.f32 %v6093_v29, %v6091_v46  ;;  %v3179_v46 = vld [vmem:[#allocation9 + $0x28] sm:$0xff]  ;;  %v3177_v29 = vld [vmem:[#allocation9 + $0x18] sm:$0xff] }
 0x980   :  { %v2686_v43 = vmul.f32 %v6095_v41, %v7160_v59  ;;  %v6097_v33 = vpop.eup %6096  ;;  %v7263_v41 = vpack.c.bf16 %v3179_v46, %v3175_v56  ;;  %v3223_v56 = vld [vmem:[#allocation9 + $0x188] sm:$0xff] }
 0x982   :  { %v7208_v21 = vadd.f32 %v2687_v51, %v2686_v43  ;;  %v3181_v51 = vld [vmem:[#allocation9 + $0x38] sm:$0xff]  ;;  %v3178_v43 = vld [vmem:[#allocation9 + $0x20] sm:$0xff] }
 0x984   :  { %6098 = vtanh.f32 %v7208_v21 }
 0x98e   :  { %v6099_v28 = vpop.eup %6098 }
 0x98f   :  { %v7211_v30 = vmul.f32 %v6099_v28, %v6097_v33  ;;  %v7267_v33 = vpack.c.bf16 %v3178_v43, %v3174_v24  ;;  %v3176_v28 = vld [vmem:[#allocation9 + $0x10] sm:$0xff]  ;;  %v3231_v24 = vld [vmem:[#allocation9 + $0x1c8] sm:$0xff] }
 0x990   :  { %v3235_v43 = vld [vmem:[#allocation9 + $0x1e8] sm:$0xff] }
 0x991   :  { %2825 = vmatmul.mubr.f32.vlgmr.msra.gmra.mrb[18].mxu0 %v7211_v30  ;;  %2896 = vmatmul.mubr.f32.vlgmr.msra.gmra.mrb[34].mxu1 %v7211_v30 }
 0x992   :  { %5405 = vmatpush1.bf16.msra.mxu0 %v7015_v35  ;;  %5437 = vmatpush1.bf16.msra.mxu1 %v7018_v10  ;;  %v274_v35 = vadd.f32 %v6667_v25, %v6700_v11  ;;  %v276_v10 = vadd.f32 %v6669_v31, %v6698_v9 }
 0x993   :  { %5407 = vmatprep.subr.bf16.mxu0 %v7023_v13  ;;  %5439 = vmatprep.subr.bf16.mxu1 %v7114_v7 }
 0x994   :  { %3063 = vmatprep.mubr.f32.mxu0 %v7649_v48  ;;  %3134 = vmatprep.mubr.f32.mxu1 %v7649_v48 }
 0x996   :  { %5409 = vmatpush1.bf16.msra.mxu0 %v7026_v42  ;;  %5441 = vmatpush1.bf16.msra.mxu1 %v7116_v63 }
 0x997   :  { %5411 = vmatprep.subr.bf16.mxu0 %v7031_v57  ;;  %5443 = vmatprep.subr.bf16.mxu1 %v7120_v58 }
 0x99a   :  { %5413 = vmatpush1.bf16.msra.mxu0 %v7034_v8  ;;  %5445 = vmatpush1.bf16.msra.mxu1 %v7122_v38 }
 0x99b   :  { %5415 = vmatprep.subr.bf16.mxu0 %v7039_v26  ;;  %5447 = vmatprep.subr.bf16.mxu1 %v7126_v40 }
 0x99e   :  { %5417 = vmatpush1.bf16.msra.mxu0 %v7042_v17  ;;  %5449 = vmatpush1.bf16.msra.mxu1 %v7128_v32 }
 0x99f   :  { %5419 = vmatprep.subr.bf16.mxu0 %v7047_v4  ;;  %5451 = vmatprep.subr.bf16.mxu1 %v7132_v62 }
 0x9a2   :  { %5421 = vmatpush1.bf16.msra.mxu0 %v7050_v36  ;;  %5453 = vmatpush1.bf16.msra.mxu1 %v7134_v27 }
 0x9a3   :  { %5423 = vmatprep.subr.bf16.mxu0 %v7054_v47  ;;  %5455 = vmatprep.subr.bf16.mxu1 %v7138_v53 }
 0x9a6   :  { %5425 = vmatpush1.bf16.msra.mxu0 %v7057_v16  ;;  %5457 = vmatpush1.bf16.msra.mxu1 %v7140_v23 }
 0x9a7   :  { %5427 = vmatprep.subr.bf16.mxu0 %v7059_v49  ;;  %5459 = vmatprep.subr.bf16.mxu1 %v7142_v37 }
 0x9aa   :  { %5429 = vmatpush1.bf16.msra.mxu0 %v7064_v22  ;;  %5461 = vmatpush1.bf16.msra.mxu1 %v7146_v61 }
 0x9ab   :  { %5431 = vmatprep.subr.bf16.mxu0 %v7068_v39  ;;  %5463 = vmatprep.subr.bf16.mxu1 %v7149_v45 }
 0x9ae   :  { %5433 = vmatpush1.bf16.msra.mxu0 %v7072_v50  ;;  %5465 = vmatpush1.bf16.msra.mxu1 %v7076_v34 }
 0x9af   :  { %5467 = vmatprep.subr.bf16.mxu0 %v7263_v41 }
 0xa64   :  { %v2826_v13 = vpop.f32.mrb[18].mxu0  ;;  %v2897_v42 = vpop.f32.mrb[34].mxu1 }
 0xa65   :  { %v2902_v57 = vadd.f32 %v2826_v13, %v274_v35  ;;  %v2828_v8 = vpop.f32.mrb[19].mxu0  ;;  %v2899_v26 = vpop.f32.mrb[35].mxu1  ;;  %v5886_v49 = vadd.f32 %v2897_v42, %v6704_v0  ;;  %v3180_v35 = vld [vmem:[#allocation9 + $0x30] sm:$0xff]  ;;  %v3183_v13 = vld [vmem:[#allocation9 + $0x48] sm:$0xff] }
 0xa66   :  { %v2903_v17 = vadd.f32 %v2828_v8, %v276_v10  ;;  %v5887_v47 = vadd.f32 %v2899_v26, %v6706_v1  ;;  %v7270_v10 = vpack.c.bf16 %v3180_v35, %v3176_v28  ;;  %v3187_v42 = vld [vmem:[#allocation9 + $0x68] sm:$0xff]  ;;  %v3182_v8 = vld [vmem:[#allocation9 + $0x40] sm:$0xff] }
 0xa67   :  { %v4644_v4 = vmul.f32 -1.442695, %v2902_v57  ;;  %v7275_v57 = vpack.c.bf16 %v3187_v42, %v3183_v13  ;;  %v3186_v26 = vld [vmem:[#allocation9 + $0x60] sm:$0xff]  ;;  %v3232_v42 = vld [vmem:[#allocation9 + $0x1d0] sm:$0xff] }
 0xa68   :  { %v4645_v36 = vmul.f32 -1.442695, %v2903_v17  ;;  %v4646_v16 = vmul.f32 -1.442695, %v5887_v47  ;;  %v7278_v17 = vpack.c.bf16 %v3186_v26, %v3182_v8  ;;  %v3230_v35 = vld [vmem:[#allocation9 + $0x1c0] sm:$0xff]  ;;  %v3236_v8 = vld [vmem:[#allocation9 + $0x1f0] sm:$0xff] }
 0xa69   :  { %6100 = vpow2.f32 %v4644_v4  ;;  %v3191_v4 = vld [vmem:[#allocation9 + $0x88] sm:$0xff]  ;;  %v3234_v13 = vld [vmem:[#allocation9 + $0x1e0] sm:$0xff]  ;;  %v7328_v26 = vpack.c.bf16 %v3236_v8, %v3232_v42  ;;  %v3423_v42 = vld [vmem:[#allocation9 + $0x50] sm:$0xff] }
 0xa6a   :  { %6102 = vpow2.f32 %v4645_v36  ;;  %v3195_v36 = vld [vmem:[#allocation9 + $0xa8] sm:$0xff]  ;;  %v3427_v8 = vld [vmem:[#allocation9 + $0x70] sm:$0xff] }
 0xa6b   :  { %6104 = vpow2.f32 %v4646_v16  ;;  %v7283_v47 = vpack.c.bf16 %v3195_v36, %v3191_v4  ;;  %v3190_v16 = vld [vmem:[#allocation9 + $0x80] sm:$0xff] }
 0xa6c   :  { %6106 = vtanh.f32 %v5886_v49  ;;  %v3194_v49 = vld [vmem:[#allocation9 + $0xa0] sm:$0xff] }
 0xa73   :  { %v6101_v22 = vpop.eup %6100 }
 0xa74   :  { %v6103_v25 = vpop.eup %6102  ;;  %v2909_v39 = vadd.f32 1.0, %v6101_v22  ;;  %v7286_v22 = vpack.c.bf16 %v3194_v49, %v3190_v16 }
 0xa75   :  { %v2915_v31 = vadd.f32 1.0, %v6103_v25  ;;  %v6105_v50 = vpop.eup %6104  ;;  %v3203_v25 = vld [vmem:[#allocation9 + $0xe8] sm:$0xff] }
 0xa76   :  { %6108 = vrcp.f32 %v2909_v39  ;;  %v6107_v34 = vpop.eup %6106  ;;  %v2922_v18 = vadd.f32 1.0, %v6105_v50 }
 0xa77   :  { %6110 = vrcp.f32 %v2915_v31  ;;  %v3198_v31 = vld [vmem:[#allocation9 + $0xc0] sm:$0xff] }
 0xa78   :  { %6112 = vrcp.f32 %v2922_v18  ;;  %v3219_v18 = vld [vmem:[#allocation9 + $0x168] sm:$0xff] }
 0xa80   :  { %v6109_v59 = vpop.eup %6108 }
 0xa81   :  { %v6111_v54 = vpop.eup %6110  ;;  %v2926_v55 = vmul.f32 %v6109_v59, %v6107_v34  ;;  %v3211_v34 = vld [vmem:[#allocation9 + $0x128] sm:$0xff] }
 0xa82   :  { %v2925_v3 = vmul.f32 %v6111_v54, %v7208_v21  ;;  %v6113_v12 = vpop.eup %6112  ;;  %v7265_v21 = vpack.c.bf16 %v3181_v51, %v3177_v29  ;;  %v3206_v54 = vld [vmem:[#allocation9 + $0x100] sm:$0xff] }
 0xa83   :  { %v3226_v51 = vld [vmem:[#allocation9 + $0x1a0] sm:$0xff] }
 0xa84   :  { %v7254_v20 = vadd.f32 %v2926_v55, %v2925_v3  ;;  %5499 = vmatprep.subr.bf16.mxu1 %v7265_v21  ;;  %v3214_v3 = vld [vmem:[#allocation9 + $0x140] sm:$0xff] }
 0xa86   :  { %6114 = vtanh.f32 %v7254_v20 }
 0xa90   :  { %v6115_v14 = vpop.eup %6114 }
 0xa91   :  { %v7257_v19 = vmul.f32 %v6115_v14, %v6113_v12  ;;  %v3218_v14 = vld [vmem:[#allocation9 + $0x160] sm:$0xff] }
 0xa92   :  { %v7309_v46 = vpack.c.bf16 %v3218_v14, %v3214_v3 }
 0xa93   :  { %3064 = vmatmul.mubr.f32.vlgmr.msra.gmra.mrb[20].mxu0 %v7257_v19  ;;  %3135 = vmatmul.mubr.f32.vlgmr.msra.gmra.mrb[36].mxu1 %v7257_v19 }
 0xa94   :  { %3302 = vmatprep.mubr.f32.mxu0 %v7649_v48  ;;  %3373 = vmatprep.mubr.f32.mxu1 %v7649_v48 }
 0xa95   :  { %5469 = vmatpush1.bf16.msra.mxu0 %v7267_v33  ;;  %5501 = vmatpush1.bf16.msra.mxu1 %v7270_v10 }
 0xa96   :  { %5503 = vmatprep.subr.bf16.mxu1 %v7114_v7  ;;  %5471 = vmatprep.subr.bf16.mxu0 %v7275_v57  ;;  %v3199_v7 = vld [vmem:[#allocation9 + $0xc8] sm:$0xff] }
 0xa97   :  { %v7291_v39 = vpack.c.bf16 %v3203_v25, %v3199_v7 }
 0xa99   :  { %5473 = vmatpush1.bf16.msra.mxu0 %v7278_v17  ;;  %5505 = vmatpush1.bf16.msra.mxu1 %v7116_v63  ;;  %v3202_v63 = vld [vmem:[#allocation9 + $0xe0] sm:$0xff] }
 0xa9a   :  { %5507 = vmatprep.subr.bf16.mxu1 %v7120_v58  ;;  %5475 = vmatprep.subr.bf16.mxu0 %v7283_v47  ;;  %v7294_v50 = vpack.c.bf16 %v3202_v63, %v3198_v31  ;;  %v3207_v58 = vld [vmem:[#allocation9 + $0x108] sm:$0xff] }
 0xa9b   :  { %v7299_v59 = vpack.c.bf16 %v3211_v34, %v3207_v58 }
 0xa9d   :  { %5477 = vmatpush1.bf16.msra.mxu0 %v7286_v22  ;;  %5509 = vmatpush1.bf16.msra.mxu1 %v7122_v38  ;;  %v3210_v38 = vld [vmem:[#allocation9 + $0x120] sm:$0xff] }
 0xa9e   :  { %5511 = vmatprep.subr.bf16.mxu1 %v7126_v40  ;;  %5479 = vmatprep.subr.bf16.mxu0 %v7291_v39  ;;  %v7302_v55 = vpack.c.bf16 %v3210_v38, %v3206_v54  ;;  %v3215_v40 = vld [vmem:[#allocation9 + $0x148] sm:$0xff] }
 0xa9f   :  { %v7306_v12 = vpack.c.bf16 %v3219_v18, %v3215_v40 }
 0xaa1   :  { %5481 = vmatpush1.bf16.msra.mxu0 %v7294_v50  ;;  %5513 = vmatpush1.bf16.msra.mxu1 %v7128_v32  ;;  %v3227_v32 = vld [vmem:[#allocation9 + $0x1a8] sm:$0xff] }
 0xaa2   :  { %5515 = vmatprep.subr.bf16.mxu1 %v7132_v62  ;;  %5483 = vmatprep.subr.bf16.mxu0 %v7299_v59  ;;  %v7311_v29 = vpack.c.bf16 %v3227_v32, %v3223_v56  ;;  %v3222_v62 = vld [vmem:[#allocation9 + $0x180] sm:$0xff] }
 0xaa3   :  { %v7316_v28 = vpack.c.bf16 %v3226_v51, %v3222_v62 }
 0xaa5   :  { %5485 = vmatpush1.bf16.msra.mxu0 %v7302_v55  ;;  %5517 = vmatpush1.bf16.msra.mxu1 %v7134_v27  ;;  %v7320_v27 = vpack.c.bf16 %v3235_v43, %v3231_v24 }
 0xaa6   :  { %5487 = vmatprep.subr.bf16.mxu0 %v7306_v12  ;;  %5519 = vmatprep.subr.bf16.mxu1 %v7138_v53  ;;  %v7324_v53 = vpack.c.bf16 %v3234_v13, %v3230_v35  ;;  %v3428_v35 = vld [vmem:[#allocation9 + $0x78] sm:$0xff] }
 0xaa9   :  { %5489 = vmatpush1.bf16.msra.mxu0 %v7309_v46  ;;  %5521 = vmatpush1.bf16.msra.mxu1 %v7140_v23  ;;  %v280_v23 = vadd.f32 %v6671_v44, %v6700_v11 }
 0xaaa   :  { %5491 = vmatprep.subr.bf16.mxu0 %v7311_v29  ;;  %5523 = vmatprep.subr.bf16.mxu1 %v7142_v37  ;;  %v282_v37 = vadd.f32 %v6673_v52, %v6698_v9 }
 0xaad   :  { %5493 = vmatpush1.bf16.msra.mxu0 %v7316_v28  ;;  %5525 = vmatpush1.bf16.msra.mxu1 %v7146_v61 }
 0xaae   :  { %5495 = vmatprep.subr.bf16.mxu0 %v7320_v27  ;;  %5527 = vmatprep.subr.bf16.mxu1 %v7149_v45 }
 0xab1   :  { %5497 = vmatpush1.bf16.msra.mxu0 %v7324_v53  ;;  %5529 = vmatpush1.bf16.msra.mxu1 %v7328_v26 }
 0xab2   :  { %5531 = vmatprep.subr.bf16.mxu0 %v7263_v41  ;;  %5563 = vmatprep.subr.bf16.mxu1 %v7265_v21 }
 0xb66   :  { %v3065_v61 = vpop.f32.mrb[20].mxu0  ;;  %v3136_v4 = vpop.f32.mrb[36].mxu1 }
 0xb67   :  { %v3141_v36 = vadd.f32 %v3065_v61, %v280_v23  ;;  %v3067_v16 = vpop.f32.mrb[21].mxu0  ;;  %v3138_v49 = vpop.f32.mrb[37].mxu1  ;;  %v5888_v58 = vadd.f32 %v3136_v4, %v6704_v0  ;;  %v7370_v23 = vpack.c.bf16 %v3427_v8, %v3423_v42  ;;  %v3436_v61 = vld [vmem:[#allocation9 + $0xb8] sm:$0xff]  ;;  %v3463_v42 = vld [vmem:[#allocation9 + $0x190] sm:$0xff] }
 0xb68   :  { %v3142_v45 = vadd.f32 %v3067_v16, %v282_v37  ;;  %v5889_v31 = vadd.f32 %v3138_v49, %v6706_v1  ;;  %v3432_v37 = vld [vmem:[#allocation9 + $0x98] sm:$0xff]  ;;  %v3435_v16 = vld [vmem:[#allocation9 + $0xb0] sm:$0xff] }
 0xb69   :  { %v4647_v7 = vmul.f32 -1.442695, %v3141_v36  ;;  %v7374_v4 = vpack.c.bf16 %v3436_v61, %v3432_v37  ;;  %v3431_v36 = vld [vmem:[#allocation9 + $0x90] sm:$0xff]  ;;  %v3472_v37 = vld [vmem:[#allocation9 + $0x1d8] sm:$0xff] }
 0xb6a   :  { %v4648_v25 = vmul.f32 -1.442695, %v3142_v45  ;;  %v4649_v63 = vmul.f32 -1.442695, %v5889_v31  ;;  %v7376_v49 = vpack.c.bf16 %v3435_v16, %v3431_v36  ;;  %v3440_v45 = vld [vmem:[#allocation9 + $0xd8] sm:$0xff]  ;;  %v3439_v31 = vld [vmem:[#allocation9 + $0xd0] sm:$0xff] }
 0xb6b   :  { %6116 = vpow2.f32 %v4647_v7  ;;  %v3444_v7 = vld [vmem:[#allocation9 + $0xf8] sm:$0xff]  ;;  %v3467_v8 = vld [vmem:[#allocation9 + $0x1b0] sm:$0xff] }
 0xb6c   :  { %6118 = vpow2.f32 %v4648_v25  ;;  %v7380_v25 = vpack.c.bf16 %v3444_v7, %v3440_v45  ;;  %v3476_v61 = vld [vmem:[#allocation9 + $0x1f8] sm:$0xff]  ;;  %v7400_v36 = vpack.c.bf16 %v3467_v8, %v3463_v42  ;;  %v286_v45 = vadd.f32 %v6675_v60, %v6700_v11 }
 0xb6d   :  { %6120 = vpow2.f32 %v4649_v63  ;;  %v3443_v63 = vld [vmem:[#allocation9 + $0xf0] sm:$0xff]  ;;  %v7403_v16 = vpack.c.bf16 %v3476_v61, %v3472_v37  ;;  %v288_v7 = vadd.f32 %v6677_v5, %v6698_v9 }
 0xb6e   :  { %6122 = vtanh.f32 %v5888_v58  ;;  %v7382_v58 = vpack.c.bf16 %v3443_v63, %v3439_v31 }
 0xb75   :  { %v6117_v34 = vpop.eup %6116 }
 0xb76   :  { %v6119_v44 = vpop.eup %6118  ;;  %v3148_v54 = vadd.f32 1.0, %v6117_v34  ;;  %v3448_v34 = vld [vmem:[#allocation9 + $0x118] sm:$0xff] }
 0xb77   :  { %v3154_v52 = vadd.f32 1.0, %v6119_v44  ;;  %v6121_v38 = vpop.eup %6120  ;;  %v3452_v44 = vld [vmem:[#allocation9 + $0x138] sm:$0xff] }
 0xb78   :  { %6124 = vrcp.f32 %v3148_v54  ;;  %v6123_v40 = vpop.eup %6122  ;;  %v3161_v56 = vadd.f32 1.0, %v6121_v38  ;;  %v7386_v54 = vpack.c.bf16 %v3452_v44, %v3448_v34  ;;  %v3451_v38 = vld [vmem:[#allocation9 + $0x130] sm:$0xff] }
 0xb79   :  { %6126 = vrcp.f32 %v3154_v52  ;;  %v3447_v52 = vld [vmem:[#allocation9 + $0x110] sm:$0xff] }
 0xb7a   :  { %6128 = vrcp.f32 %v3161_v56 }
 0xb82   :  { %v6125_v18 = vpop.eup %6124 }
 0xb83   :  { %v6127_v3 = vpop.eup %6126  ;;  %v3165_v14 = vmul.f32 %v6125_v18, %v6123_v40  ;;  %v7388_v40 = vpack.c.bf16 %v3451_v38, %v3447_v52  ;;  %v3456_v18 = vld [vmem:[#allocation9 + $0x158] sm:$0xff] }
 0xb84   :  { %v3164_v32 = vmul.f32 %v6127_v3, %v7254_v20  ;;  %v6129_v51 = vpop.eup %6128  ;;  %v3424_v20 = vld [vmem:[#allocation9 + $0x58] sm:$0xff] }
 0xb85   :  { %v7368_v13 = vpack.c.bf16 %v3428_v35, %v3424_v20  ;;  %v3460_v3 = vld [vmem:[#allocation9 + $0x178] sm:$0xff] }
 0xb86   :  { %v7342_v62 = vadd.f32 %v3165_v14, %v3164_v32  ;;  %v3455_v14 = vld [vmem:[#allocation9 + $0x150] sm:$0xff]  ;;  %v7392_v56 = vpack.c.bf16 %v3460_v3, %v3456_v18 }
 0xb87   :  { %v3459_v32 = vld [vmem:[#allocation9 + $0x170] sm:$0xff] }
 0xb88   :  { %6130 = vtanh.f32 %v7342_v62  ;;  %v7394_v20 = vpack.c.bf16 %v3459_v32, %v3455_v14 }
 0xb92   :  { %v6131_v24 = vpop.eup %6130 }
 0xb93   :  { %v7345_v43 = vmul.f32 %v6131_v24, %v6129_v51  ;;  %v3464_v51 = vld [vmem:[#allocation9 + $0x198] sm:$0xff] }
 0xb94   :  { %v3468_v24 = vld [vmem:[#allocation9 + $0x1b8] sm:$0xff] }
 0xb95   :  { %3303 = vmatmul.mubr.f32.vlgmr.msra.gmra.mrb[22].mxu0 %v7345_v43  ;;  %3374 = vmatmul.mubr.f32.vlgmr.msra.gmra.mrb[38].mxu1 %v7345_v43  ;;  %v7396_v35 = vpack.c.bf16 %v3468_v24, %v3464_v51 }
 0xb96   :  { %5533 = vmatpush1.bf16.msra.mxu0 %v7267_v33  ;;  %5565 = vmatpush1.bf16.msra.mxu1 %v7270_v10 }
 0xb97   :  { %5535 = vmatprep.subr.bf16.mxu0 %v7275_v57  ;;  %3541 = vmatprep.mubr.f32.mxu0 %v7649_v48 }
 0xb98   :  { %3612 = vmatprep.mubr.f32.mxu1 %v7649_v48  ;;  %5567 = vmatprep.subr.bf16.mxu1 %v7368_v13 }
 0xb9a   :  { %5537 = vmatpush1.bf16.msra.mxu0 %v7278_v17  ;;  %5569 = vmatpush1.bf16.msra.mxu1 %v7370_v23 }
 0xb9b   :  { %5539 = vmatprep.subr.bf16.mxu0 %v7283_v47  ;;  %5571 = vmatprep.subr.bf16.mxu1 %v7374_v4 }
 0xb9e   :  { %5541 = vmatpush1.bf16.msra.mxu0 %v7286_v22  ;;  %5573 = vmatpush1.bf16.msra.mxu1 %v7376_v49 }
 0xb9f   :  { %5543 = vmatprep.subr.bf16.mxu0 %v7291_v39  ;;  %5575 = vmatprep.subr.bf16.mxu1 %v7380_v25 }
 0xba2   :  { %5545 = vmatpush1.bf16.msra.mxu0 %v7294_v50  ;;  %5577 = vmatpush1.bf16.msra.mxu1 %v7382_v58 }
 0xba3   :  { %5547 = vmatprep.subr.bf16.mxu0 %v7299_v59  ;;  %5579 = vmatprep.subr.bf16.mxu1 %v7386_v54 }
 0xba6   :  { %5549 = vmatpush1.bf16.msra.mxu0 %v7302_v55  ;;  %5581 = vmatpush1.bf16.msra.mxu1 %v7388_v40 }
 0xba7   :  { %5551 = vmatprep.subr.bf16.mxu0 %v7306_v12  ;;  %5583 = vmatprep.subr.bf16.mxu1 %v7392_v56 }
 0xbaa   :  { %5553 = vmatpush1.bf16.msra.mxu0 %v7309_v46  ;;  %5585 = vmatpush1.bf16.msra.mxu1 %v7394_v20 }
 0xbab   :  { %5555 = vmatprep.subr.bf16.mxu0 %v7311_v29  ;;  %5587 = vmatprep.subr.bf16.mxu1 %v7396_v35 }
 0xbae   :  { %5557 = vmatpush1.bf16.msra.mxu0 %v7316_v28  ;;  %5589 = vmatpush1.bf16.msra.mxu1 %v7400_v36 }
 0xbaf   :  { %5559 = vmatprep.subr.bf16.mxu0 %v7320_v27  ;;  %5591 = vmatprep.subr.bf16.mxu1 %v7403_v16 }
 0xbb2   :  { %5561 = vmatpush1.bf16.msra.mxu0 %v7324_v53  ;;  %5593 = vmatpush1.bf16.msra.mxu1 %v7328_v26 }
 0xbb3   :  { %5595 = vmatprep.subr.bf16.mxu0 %v7263_v41  ;;  %5627 = vmatprep.subr.bf16.mxu1 %v7265_v21 }
 0xc68   :  { %v3304_v31 = vpop.f32.mrb[22].mxu0  ;;  %v3375_v63 = vpop.f32.mrb[38].mxu1 }
 0xc69   :  { %v3380_v34 = vadd.f32 %v3304_v31, %v286_v45  ;;  %v3306_v44 = vpop.f32.mrb[23].mxu0  ;;  %v3377_v52 = vpop.f32.mrb[39].mxu1  ;;  %v5890_v51 = vadd.f32 %v3375_v63, %v6704_v0 }
 0xc6a   :  { %v3381_v38 = vadd.f32 %v3306_v44, %v288_v7  ;;  %v5891_v14 = vadd.f32 %v3377_v52, %v6706_v1 }
 0xc6b   :  { %v4650_v18 = vmul.f32 -1.442695, %v3380_v34 }
 0xc6c   :  { %v4651_v3 = vmul.f32 -1.442695, %v3381_v38  ;;  %v4652_v32 = vmul.f32 -1.442695, %v5891_v14 }
 0xc6d   :  { %6132 = vpow2.f32 %v4650_v18  ;;  %v294_v18 = vadd.f32 %v6681_v15, %v6698_v9 }
 0xc6e   :  { %6134 = vpow2.f32 %v4651_v3 }
 0xc6f   :  { %6136 = vpow2.f32 %v4652_v32 }
 0xc70   :  { %6138 = vtanh.f32 %v5890_v51 }
 0xc77   :  { %v6133_v24 = vpop.eup %6132 }
 0xc78   :  { %v6135_v60 = vpop.eup %6134  ;;  %v3387_v42 = vadd.f32 1.0, %v6133_v24 }
 0xc79   :  { %v3393_v5 = vadd.f32 1.0, %v6135_v60  ;;  %v6137_v8 = vpop.eup %6136 }
 0xc7a   :  { %6140 = vrcp.f32 %v3387_v42  ;;  %v6139_v37 = vpop.eup %6138  ;;  %v3400_v31 = vadd.f32 1.0, %v6137_v8 }
 0xc7b   :  { %6142 = vrcp.f32 %v3393_v5 }
 0xc7c   :  { %6144 = vrcp.f32 %v3400_v31 }
 0xc84   :  { %v6141_v61 = vpop.eup %6140 }
 0xc85   :  { %v6143_v45 = vpop.eup %6142  ;;  %v3404_v7 = vmul.f32 %v6141_v61, %v6139_v37 }
 0xc86   :  { %v3403_v34 = vmul.f32 %v6143_v45, %v7342_v62  ;;  %v6145_v63 = vpop.eup %6144  ;;  %v292_v62 = vadd.f32 %v6679_v6, %v6700_v11 }
 0xc88   :  { %v7416_v44 = vadd.f32 %v3404_v7, %v3403_v34 }
 0xc8a   :  { %6146 = vtanh.f32 %v7416_v44 }
 0xc94   :  { %v6147_v52 = vpop.eup %6146 }
 0xc95   :  { %v7419_v38 = vmul.f32 %v6147_v52, %v6145_v63 }
 0xc97   :  { %3542 = vmatmul.mubr.f32.vlgmr.msra.gmra.mrb[24].mxu0 %v7419_v38  ;;  %3613 = vmatmul.mubr.f32.vlgmr.msra.gmra.mrb[40].mxu1 %v7419_v38 }
 0xc98   :  { %5597 = vmatpush1.bf16.msra.mxu0 %v7267_v33  ;;  %5629 = vmatpush1.bf16.msra.mxu1 %v7270_v10 }
 0xc99   :  { %5599 = vmatprep.subr.bf16.mxu0 %v7275_v57  ;;  %5631 = vmatprep.subr.bf16.mxu1 %v7368_v13 }
 0xc9a   :  { %3780 = vmatprep.mubr.f32.mxu0 %v7649_v48  ;;  %3851 = vmatprep.mubr.f32.mxu1 %v7649_v48 }
 0xc9c   :  { %5601 = vmatpush1.bf16.msra.mxu0 %v7278_v17  ;;  %5633 = vmatpush1.bf16.msra.mxu1 %v7370_v23 }
 0xc9d   :  { %5603 = vmatprep.subr.bf16.mxu0 %v7283_v47  ;;  %5635 = vmatprep.subr.bf16.mxu1 %v7374_v4 }
 0xca0   :  { %5605 = vmatpush1.bf16.msra.mxu0 %v7286_v22  ;;  %5637 = vmatpush1.bf16.msra.mxu1 %v7376_v49 }
 0xca1   :  { %5607 = vmatprep.subr.bf16.mxu0 %v7291_v39  ;;  %5639 = vmatprep.subr.bf16.mxu1 %v7380_v25 }
 0xca4   :  { %5609 = vmatpush1.bf16.msra.mxu0 %v7294_v50  ;;  %5641 = vmatpush1.bf16.msra.mxu1 %v7382_v58 }
 0xca5   :  { %5611 = vmatprep.subr.bf16.mxu0 %v7299_v59  ;;  %5643 = vmatprep.subr.bf16.mxu1 %v7386_v54 }
 0xca8   :  { %5613 = vmatpush1.bf16.msra.mxu0 %v7302_v55  ;;  %5645 = vmatpush1.bf16.msra.mxu1 %v7388_v40 }
 0xca9   :  { %5615 = vmatprep.subr.bf16.mxu0 %v7306_v12  ;;  %5647 = vmatprep.subr.bf16.mxu1 %v7392_v56 }
 0xcac   :  { %5617 = vmatpush1.bf16.msra.mxu0 %v7309_v46  ;;  %5649 = vmatpush1.bf16.msra.mxu1 %v7394_v20 }
 0xcad   :  { %5619 = vmatprep.subr.bf16.mxu0 %v7311_v29  ;;  %5651 = vmatprep.subr.bf16.mxu1 %v7396_v35 }
 0xcb0   :  { %5621 = vmatpush1.bf16.msra.mxu0 %v7316_v28  ;;  %5653 = vmatpush1.bf16.msra.mxu1 %v7400_v36 }
 0xcb1   :  { %5623 = vmatprep.subr.bf16.mxu0 %v7320_v27  ;;  %5655 = vmatprep.subr.bf16.mxu1 %v7403_v16 }
 0xcb4   :  { %5625 = vmatpush1.bf16.msra.mxu0 %v7324_v53  ;;  %5657 = vmatpush1.bf16.msra.mxu1 %v7328_v26 }
 0xcb5   :  { %5659 = vmatprep.subr.bf16.mxu0 %v7263_v41  ;;  %5691 = vmatprep.subr.bf16.mxu1 %v7265_v21 }
 0xd6a   :  { %v3543_v3 = vpop.f32.mrb[24].mxu0  ;;  %v3614_v14 = vpop.f32.mrb[40].mxu1 }
 0xd6b   :  { %v3619_v32 = vadd.f32 %v3543_v3, %v292_v62  ;;  %v3545_v51 = vpop.f32.mrb[25].mxu0  ;;  %v3616_v24 = vpop.f32.mrb[41].mxu1  ;;  %v5892_v21 = vadd.f32 %v3614_v14, %v6704_v0 }
 0xd6c   :  { %v3620_v60 = vadd.f32 %v3545_v51, %v294_v18  ;;  %v5893_v41 = vadd.f32 %v3616_v24, %v6706_v1 }
 0xd6d   :  { %v4653_v42 = vmul.f32 -1.442695, %v3619_v32 }
 0xd6e   :  { %v4654_v5 = vmul.f32 -1.442695, %v3620_v60  ;;  %v4655_v8 = vmul.f32 -1.442695, %v5893_v41 }
 0xd6f   :  { %6148 = vpow2.f32 %v4653_v42 }
 0xd70   :  { %6150 = vpow2.f32 %v4654_v5 }
 0xd71   :  { %6152 = vpow2.f32 %v4655_v8 }
 0xd72   :  { %6154 = vtanh.f32 %v5892_v21 }
 0xd79   :  { %v6149_v37 = vpop.eup %6148 }
 0xd7a   :  { %v6151_v6 = vpop.eup %6150  ;;  %v3626_v61 = vadd.f32 1.0, %v6149_v37 }
 0xd7b   :  { %v3632_v15 = vadd.f32 1.0, %v6151_v6  ;;  %v6153_v45 = vpop.eup %6152 }
 0xd7c   :  { %6156 = vrcp.f32 %v3626_v61  ;;  %v6155_v7 = vpop.eup %6154  ;;  %v3639_v52 = vadd.f32 1.0, %v6153_v45  ;;  %v4131_v45 = vld [vmem:[#allocation9 + $0x8] sm:$0xff] }
 0xd7d   :  { %6158 = vrcp.f32 %v3632_v15 }
 0xd7e   :  { %6160 = vrcp.f32 %v3639_v52  ;;  %v4133_v52 = vld [vmem:[#allocation9 + $0x18] sm:$0xff] }
 0xd86   :  { %v6157_v31 = vpop.eup %6156 }
 0xd87   :  { %v6159_v34 = vpop.eup %6158  ;;  %v3643_v63 = vmul.f32 %v6157_v31, %v6155_v7  ;;  %v4135_v7 = vld [vmem:[#allocation9 + $0x28] sm:$0xff] }
 0xd88   :  { %v3642_v62 = vmul.f32 %v6159_v34, %v7416_v44  ;;  %v6161_v3 = vpop.eup %6160  ;;  %v5722_v31 = vpack.c.bf16 %v4135_v7, %v4131_v45  ;;  %v4130_v34 = vld [vmem:[#allocation9] sm:$0xff] }
 0xd89   :  { %v4178_v7 = vld [vmem:[#allocation9 + $0x180] sm:$0xff] }
 0xd8a   :  { %v7464_v18 = vadd.f32 %v3643_v63, %v3642_v62  ;;  %v4134_v63 = vld [vmem:[#allocation9 + $0x20] sm:$0xff] }
 0xd8b   :  { %v5724_v62 = vpack.c.bf16 %v4134_v63, %v4130_v34  ;;  %v4187_v34 = vld [vmem:[#allocation9 + $0x1c8] sm:$0xff] }
 0xd8c   :  { %6162 = vtanh.f32 %v7464_v18 }
 0xd96   :  { %v6163_v14 = vpop.eup %6162 }
 0xd97   :  { %v7467_v32 = vmul.f32 %v6163_v14, %v6161_v3  ;;  %v4132_v3 = vld [vmem:[#allocation9 + $0x10] sm:$0xff] }
 0xd98   :  { %v4136_v14 = vld [vmem:[#allocation9 + $0x30] sm:$0xff] }
 0xd99   :  { %3781 = vmatmul.mubr.f32.vlgmr.msra.gmra.mrb[26].mxu0 %v7467_v32  ;;  %3852 = vmatmul.mubr.f32.vlgmr.msra.gmra.mrb[42].mxu1 %v7467_v32 }
 0xd9a   :  { %5661 = vmatpush1.bf16.msra.mxu0 %v7267_v33  ;;  %5693 = vmatpush1.bf16.msra.mxu1 %v7270_v10  ;;  %v7656_v33 = vld [vmem:[#allocation15_spill] sm:$0xff] }
 0xd9b   :  { %5663 = vmatprep.subr.bf16.mxu0 %v7275_v57  ;;  %5695 = vmatprep.subr.bf16.mxu1 %v7368_v13  ;;  %v298_v10 = vadd.f32 %v7656_v33, %v6700_v11  ;;  %v7657_v57 = vld [vmem:[#allocation16_spill] sm:$0xff] }
 0xd9c   :  { %4019 = vmatprep.mubr.f32.mxu0 %v7649_v48  ;;  %4090 = vmatprep.mubr.f32.mxu1 %v7649_v48 }
 0xd9e   :  { %5665 = vmatpush1.bf16.msra.mxu0 %v7278_v17  ;;  %5697 = vmatpush1.bf16.msra.mxu1 %v7370_v23  ;;  %v300_v17 = vadd.f32 %v7657_v57, %v6698_v9  ;;  %v4139_v57 = vld [vmem:[#allocation9 + $0x48] sm:$0xff] }
 0xd9f   :  { %5667 = vmatprep.subr.bf16.mxu0 %v7283_v47  ;;  %5699 = vmatprep.subr.bf16.mxu1 %v7374_v4 }
 0xda2   :  { %5669 = vmatpush1.bf16.msra.mxu0 %v7286_v22  ;;  %5701 = vmatpush1.bf16.msra.mxu1 %v7376_v49 }
 0xda3   :  { %5671 = vmatprep.subr.bf16.mxu0 %v7291_v39  ;;  %5703 = vmatprep.subr.bf16.mxu1 %v7380_v25 }
 0xda6   :  { %5673 = vmatpush1.bf16.msra.mxu0 %v7294_v50  ;;  %5705 = vmatpush1.bf16.msra.mxu1 %v7382_v58 }
 0xda7   :  { %5675 = vmatprep.subr.bf16.mxu0 %v7299_v59  ;;  %5707 = vmatprep.subr.bf16.mxu1 %v7386_v54 }
 0xdaa   :  { %5677 = vmatpush1.bf16.msra.mxu0 %v7302_v55  ;;  %5709 = vmatpush1.bf16.msra.mxu1 %v7388_v40 }
 0xdab   :  { %5679 = vmatprep.subr.bf16.mxu0 %v7306_v12  ;;  %5711 = vmatprep.subr.bf16.mxu1 %v7392_v56 }
 0xdae   :  { %5681 = vmatpush1.bf16.msra.mxu0 %v7309_v46  ;;  %5713 = vmatpush1.bf16.msra.mxu1 %v7394_v20 }
 0xdaf   :  { %5683 = vmatprep.subr.bf16.mxu0 %v7311_v29  ;;  %5715 = vmatprep.subr.bf16.mxu1 %v7396_v35 }
 0xdb2   :  { %5685 = vmatpush1.bf16.msra.mxu0 %v7316_v28  ;;  %5717 = vmatpush1.bf16.msra.mxu1 %v7400_v36 }
 0xdb3   :  { %5687 = vmatprep.subr.bf16.mxu0 %v7320_v27  ;;  %5719 = vmatprep.subr.bf16.mxu1 %v7403_v16 }
 0xdb6   :  { %5689 = vmatpush1.bf16.msra.mxu0 %v7324_v53  ;;  %5721 = vmatpush1.bf16.msra.mxu1 %v7328_v26 }
 0xdb7   :  { %5723 = vmatprep.subr.bf16.mxu0 %v5722_v31  ;;  %v4182_v31 = vld [vmem:[#allocation9 + $0x1a0] sm:$0xff] }
 0xe6c   :  { %v3782_v47 = vpop.f32.mrb[26].mxu0  ;;  %v3853_v22 = vpop.f32.mrb[42].mxu1 }
 0xe6d   :  { %v3858_v39 = vadd.f32 %v3782_v47, %v298_v10  ;;  %v3784_v50 = vpop.f32.mrb[27].mxu0  ;;  %v3855_v59 = vpop.f32.mrb[43].mxu1  ;;  %v5894_v27 = vadd.f32 %v3853_v22, %v6704_v0  ;;  %v5756_v10 = vpack.c.bf16 %v4136_v14, %v4132_v3  ;;  %v4138_v22 = vld [vmem:[#allocation9 + $0x40] sm:$0xff]  ;;  %v4192_v3 = vld [vmem:[#allocation9 + $0x1f0] sm:$0xff] }
 0xe6e   :  { %v3859_v55 = vadd.f32 %v3784_v50, %v300_v17  ;;  %v5895_v29 = vadd.f32 %v3855_v59, %v6706_v1  ;;  %v4143_v17 = vld [vmem:[#allocation9 + $0x68] sm:$0xff] }
 0xe6f   :  { %v4656_v12 = vmul.f32 -1.442695, %v3858_v39  ;;  %v5726_v47 = vpack.c.bf16 %v4143_v17, %v4139_v57  ;;  %v4147_v50 = vld [vmem:[#allocation9 + $0x88] sm:$0xff]  ;;  %v7659_v17 = vld [vmem:[#allocation18_spill] sm:$0xff] }
 0xe70   :  { %v4657_v46 = vmul.f32 -1.442695, %v3859_v55  ;;  %v4658_v28 = vmul.f32 -1.442695, %v5895_v29  ;;  %v4151_v59 = vld [vmem:[#allocation9 + $0xa8] sm:$0xff] }
 0xe71   :  { %6164 = vpow2.f32 %v4656_v12  ;;  %v5730_v55 = vpack.c.bf16 %v4151_v59, %v4147_v50  ;;  %v4146_v12 = vld [vmem:[#allocation9 + $0x80] sm:$0xff] }
 0xe72   :  { %6166 = vpow2.f32 %v4657_v46  ;;  %v4150_v46 = vld [vmem:[#allocation9 + $0xa0] sm:$0xff] }
 0xe73   :  { %6168 = vpow2.f32 %v4658_v28  ;;  %v5732_v29 = vpack.c.bf16 %v4150_v46, %v4146_v12  ;;  %v4155_v28 = vld [vmem:[#allocation9 + $0xc8] sm:$0xff] }
 0xe74   :  { %6170 = vtanh.f32 %v5894_v27  ;;  %v4159_v27 = vld [vmem:[#allocation9 + $0xe8] sm:$0xff] }
 0xe7b   :  { %v6165_v53 = vpop.eup %6164 }
 0xe7c   :  { %v6167_v26 = vpop.eup %6166  ;;  %v3865_v44 = vadd.f32 1.0, %v6165_v53  ;;  %v5734_v53 = vpack.c.bf16 %v4159_v27, %v4155_v28 }
 0xe7d   :  { %v3871_v51 = vadd.f32 1.0, %v6167_v26  ;;  %v6169_v24 = vpop.eup %6168  ;;  %v4154_v26 = vld [vmem:[#allocation9 + $0xc0] sm:$0xff] }
 0xe7e   :  { %6172 = vrcp.f32 %v3865_v44  ;;  %v6171_v60 = vpop.eup %6170  ;;  %v3878_v8 = vadd.f32 1.0, %v6169_v24  ;;  %v4158_v44 = vld [vmem:[#allocation9 + $0xe0] sm:$0xff]  ;;  %v4167_v24 = vld [vmem:[#allocation9 + $0x128] sm:$0xff] }
 0xe7f   :  { %6174 = vrcp.f32 %v3871_v51  ;;  %v4163_v51 = vld [vmem:[#allocation9 + $0x108] sm:$0xff] }
 0xe80   :  { %6176 = vrcp.f32 %v3878_v8 }
 0xe88   :  { %v6173_v42 = vpop.eup %6172 }
 0xe89   :  { %v6175_v5 = vpop.eup %6174  ;;  %v3882_v41 = vmul.f32 %v6173_v42, %v6171_v60  ;;  %v4162_v60 = vld [vmem:[#allocation9 + $0x100] sm:$0xff] }
 0xe8a   :  { %v3881_v21 = vmul.f32 %v6175_v5, %v7464_v18  ;;  %v6177_v6 = vpop.eup %6176  ;;  %v4137_v18 = vld [vmem:[#allocation9 + $0x38] sm:$0xff]  ;;  %v4166_v42 = vld [vmem:[#allocation9 + $0x120] sm:$0xff]  ;;  %v4171_v5 = vld [vmem:[#allocation9 + $0x148] sm:$0xff] }
 0xe8b   :  { %v5754_v33 = vpack.c.bf16 %v4137_v18, %v4133_v52  ;;  %v4186_v52 = vld [vmem:[#allocation9 + $0x1c0] sm:$0xff]  ;;  %v4384_v18 = vld [vmem:[%s7630_s4 + $0x8] sm:$0xff] }
 0xe8c   :  { %v7510_v37 = vadd.f32 %v3882_v41, %v3881_v21  ;;  %v4175_v41 = vld [vmem:[#allocation9 + $0x168] sm:$0xff]  ;;  %v4174_v21 = vld [vmem:[#allocation9 + $0x160] sm:$0xff] }
 0xe8d   :  { %5755 = vmatprep.subr.bf16.mxu1 %v5754_v33  ;;  %v5742_v8 = vpack.c.bf16 %v4175_v41, %v4171_v5  ;;  %v4386_v5 = vld [vmem:[%s7630_s4 + $0x18] sm:$0xff] }
 0xe8e   :  { %6178 = vtanh.f32 %v7510_v37 }
 0xe98   :  { %v6179_v61 = vpop.eup %6178 }
 0xe99   :  { %v7513_v15 = vmul.f32 %v6179_v61, %v6177_v6  ;;  %v4179_v6 = vld [vmem:[#allocation9 + $0x188] sm:$0xff] }
 0xe9b   :  { %4020 = vmatmul.mubr.f32.vlgmr.msra.gmra.mrb[28].mxu0 %v7513_v15  ;;  %4091 = vmatmul.mubr.f32.vlgmr.msra.gmra.mrb[44].mxu1 %v7513_v15 }
 0xe9c   :  { %4258 = vmatprep.mubr.f32.mxu0 %v7649_v48  ;;  %4329 = vmatprep.mubr.f32.mxu1 %v7649_v48  ;;  %v4142_v48 = vld [vmem:[#allocation9 + $0x60] sm:$0xff] }
 0xe9d   :  { %5725 = vmatpush1.bf16.msra.mxu0 %v5724_v62  ;;  %5757 = vmatpush1.bf16.msra.mxu1 %v5756_v10  ;;  %v5728_v39 = vpack.c.bf16 %v4142_v48, %v4138_v22  ;;  %v4190_v62 = vld [vmem:[#allocation9 + $0x1e0] sm:$0xff] }
 0xe9e   :  { %5727 = vmatprep.subr.bf16.mxu0 %v5726_v47  ;;  %5759 = vmatprep.subr.bf16.mxu1 %v7368_v13  ;;  %v5736_v13 = vpack.c.bf16 %v4158_v44, %v4154_v26  ;;  %v5752_v14 = vpack.c.bf16 %v4190_v62, %v4186_v52  ;;  %v4394_v52 = vld [vmem:[%s7630_s4 + $0x58] sm:$0xff] }
 0xea1   :  { %5729 = vmatpush1.bf16.msra.mxu0 %v5728_v39  ;;  %5761 = vmatpush1.bf16.msra.mxu1 %v7370_v23  ;;  %v5738_v23 = vpack.c.bf16 %v4167_v24, %v4163_v51 }
 0xea2   :  { %5731 = vmatprep.subr.bf16.mxu0 %v5730_v55  ;;  %5763 = vmatprep.subr.bf16.mxu1 %v7374_v4  ;;  %v5740_v4 = vpack.c.bf16 %v4166_v42, %v4162_v60 }
 0xea5   :  { %5733 = vmatpush1.bf16.msra.mxu0 %v5732_v29  ;;  %5765 = vmatpush1.bf16.msra.mxu1 %v7376_v49  ;;  %v4170_v49 = vld [vmem:[#allocation9 + $0x140] sm:$0xff] }
 0xea6   :  { %5735 = vmatprep.subr.bf16.mxu0 %v5734_v53  ;;  %5767 = vmatprep.subr.bf16.mxu1 %v7380_v25  ;;  %v4183_v25 = vld [vmem:[#allocation9 + $0x1a8] sm:$0xff]  ;;  %v5744_v61 = vpack.c.bf16 %v4174_v21, %v4170_v49 }
 0xea7   :  { %v5746_v45 = vpack.c.bf16 %v4183_v25, %v4179_v6  ;;  %v4388_v6 = vld [vmem:[%s7630_s4 + $0x28] sm:$0xff]  ;;  %v7660_v25 = vld [vmem:[#allocation21_spill] sm:$0xff] }
 0xea9   :  { %5737 = vmatpush1.bf16.msra.mxu0 %v5736_v13  ;;  %5769 = vmatpush1.bf16.msra.mxu1 %v7382_v58  ;;  %v4191_v58 = vld [vmem:[#allocation9 + $0x1e8] sm:$0xff] }
 0xeaa   :  { %5739 = vmatprep.subr.bf16.mxu0 %v5738_v23  ;;  %5771 = vmatprep.subr.bf16.mxu1 %v7386_v54  ;;  %v5748_v54 = vpack.c.bf16 %v4182_v31, %v4178_v7  ;;  %v5750_v63 = vpack.c.bf16 %v4191_v58, %v4187_v34  ;;  %v4390_v7 = vld [vmem:[%s7630_s4 + $0x38] sm:$0xff]  ;;  %v4391_v34 = vld [vmem:[%s7630_s4 + $0x40] sm:$0xff]  ;;  %v4392_v58 = vld [vmem:[%s7630_s4 + $0x48] sm:$0xff] }
 0xead   :  { %5741 = vmatpush1.bf16.msra.mxu0 %v5740_v4  ;;  %5773 = vmatpush1.bf16.msra.mxu1 %v7388_v40  ;;  %v4383_v40 = vld [vmem:[%s7630_s4] sm:$0xff]  ;;  %v4385_v4 = vld [vmem:[%s7630_s4 + $0x10] sm:$0xff] }
 0xeae   :  { %5743 = vmatprep.subr.bf16.mxu0 %v5742_v8  ;;  %5775 = vmatprep.subr.bf16.mxu1 %v7392_v56  ;;  %v4188_v56 = vld [vmem:[#allocation9 + $0x1d0] sm:$0xff]  ;;  %v5786_v33 = vpack.c.bf16 %v4384_v18, %v4383_v40  ;;  %v5790_v21 = vpack.c.bf16 %v4386_v5, %v4385_v4  ;;  %v4395_v40 = vld [vmem:[%s7630_s4 + $0x60] sm:$0xff]  ;;  %v4396_v18 = vld [vmem:[%s7630_s4 + $0x68] sm:$0xff] }
 0xeaf   :  { %v5784_v10 = vpack.c.bf16 %v4192_v3, %v4188_v56  ;;  %v5810_v56 = vpack.c.bf16 %v4396_v18, %v4395_v40  ;;  %v4397_v3 = vld [vmem:[%s7630_s4 + $0x70] sm:$0xff] }
 0xeb1   :  { %5745 = vmatpush1.bf16.msra.mxu0 %v5744_v61  ;;  %5777 = vmatpush1.bf16.msra.mxu1 %v7394_v20  ;;  %v7658_v20 = vld [vmem:[#allocation17_spill] sm:$0xff] }
 0xeb2   :  { %5747 = vmatprep.subr.bf16.mxu0 %v5746_v45  ;;  %5779 = vmatprep.subr.bf16.mxu1 %v7396_v35  ;;  %v304_v57 = vadd.f32 %v7658_v20, %v6700_v11  ;;  %v306_v35 = vadd.f32 %v7659_v17, %v6698_v9  ;;  %v4389_v45 = vld [vmem:[%s7630_s4 + $0x30] sm:$0xff]  ;;  %v7662_v20 = vld [vmem:[#allocation23_spill] sm:$0xff] }
 0xeb3   :  { %v5798_v31 = vpack.c.bf16 %v4390_v7, %v4389_v45  ;;  %v7664_v17 = vld [vmem:[#allocation25_spill] sm:$0xff] }
 0xeb5   :  { %5749 = vmatpush1.bf16.msra.mxu0 %v5748_v54  ;;  %5781 = vmatpush1.bf16.msra.mxu1 %v7400_v36  ;;  %v5802_v54 = vpack.c.bf16 %v4392_v58, %v4391_v34 }
 0xeb6   :  { %5751 = vmatprep.subr.bf16.mxu0 %v5750_v63  ;;  %5783 = vmatprep.subr.bf16.mxu1 %v7403_v16  ;;  %v4393_v63 = vld [vmem:[%s7630_s4 + $0x50] sm:$0xff] }
 0xeb7   :  { %v5806_v62 = vpack.c.bf16 %v4394_v52, %v4393_v63 }
 0xeb9   :  { %5753 = vmatpush1.bf16.msra.mxu0 %v5752_v14  ;;  %5785 = vmatpush1.bf16.msra.mxu1 %v5784_v10  ;;  %v4398_v14 = vld [vmem:[%s7630_s4 + $0x78] sm:$0xff] }
 0xeba   :  { %5787 = vmatprep.subr.bf16.mxu0 %v5786_v33  ;;  %v7661_v10 = vld [vmem:[#allocation22_spill] sm:$0xff] }
 0xf6e   :  { %v4021_v47 = vpop.f32.mrb[28].mxu0  ;;  %v4092_v22 = vpop.f32.mrb[44].mxu1 }
 0xf6f   :  { %v4097_v48 = vadd.f32 %v4021_v47, %v304_v57  ;;  %v4023_v39 = vpop.f32.mrb[29].mxu0  ;;  %v4094_v50 = vpop.f32.mrb[45].mxu1  ;;  %v5896_v46 = vadd.f32 %v4092_v22, %v6704_v0  ;;  %v7663_v57 = vld [vmem:[#allocation24_spill] sm:$0xff]  ;;  %v7666_v47 = vld [vmem:[#allocation27_spill] sm:$0xff] }
 0xf70   :  { %v4098_v59 = vadd.f32 %v4023_v39, %v306_v35  ;;  %v5897_v16 = vadd.f32 %v4094_v50, %v6706_v1  ;;  %v7665_v35 = vld [vmem:[#allocation26_spill] sm:$0xff]  ;;  %v7667_v22 = vld [vmem:[#allocation19_spill] sm:$0xff]  ;;  %v7668_v39 = vld [vmem:[#allocation20_spill] sm:$0xff] }
 0xf71   :  { %v4659_v55 = vmul.f32 -1.442695, %v4097_v48  ;;  %v310_v48 = vadd.f32 %v7667_v22, %v6700_v11  ;;  %v312_v50 = vadd.f32 %v7668_v39, %v6698_v9 }
 0xf72   :  { %v4660_v36 = vmul.f32 -1.442695, %v4098_v59  ;;  %v4661_v12 = vmul.f32 -1.442695, %v5897_v16 }
 0xf73   :  { %6180 = vpow2.f32 %v4659_v55 }
 0xf74   :  { %6182 = vpow2.f32 %v4660_v36 }
 0xf75   :  { %6184 = vpow2.f32 %v4661_v12 }
 0xf76   :  { %6186 = vtanh.f32 %v5896_v46 }
 0xf7d   :  { %v6181_v29 = vpop.eup %6180 }
 0xf7e   :  { %v6183_v28 = vpop.eup %6182  ;;  %v4104_v27 = vadd.f32 1.0, %v6181_v29 }
 0xf7f   :  { %v4110_v53 = vadd.f32 1.0, %v6183_v28  ;;  %v6185_v26 = vpop.eup %6184 }
 0xf80   :  { %6188 = vrcp.f32 %v4104_v27  ;;  %v6187_v44 = vpop.eup %6186  ;;  %v4117_v23 = vadd.f32 1.0, %v6185_v26 }
 0xf81   :  { %6190 = vrcp.f32 %v4110_v53 }
 0xf82   :  { %6192 = vrcp.f32 %v4117_v23 }
 0xf8a   :  { %v6189_v13 = vpop.eup %6188 }
 0xf8b   :  { %v6191_v51 = vpop.eup %6190  ;;  %v4121_v24 = vmul.f32 %v6189_v13, %v6187_v44 }
 0xf8c   :  { %v4120_v60 = vmul.f32 %v6191_v51, %v7510_v37  ;;  %v6193_v41 = vpop.eup %6192  ;;  %v4387_v37 = vld [vmem:[%s7630_s4 + $0x20] sm:$0xff] }
 0xf8d   :  { %v5794_v61 = vpack.c.bf16 %v4388_v6, %v4387_v37 }
 0xf8e   :  { %v7545_v42 = vadd.f32 %v4121_v24, %v4120_v60 }
 0xf90   :  { %6194 = vtanh.f32 %v7545_v42 }
 0xf9a   :  { %v6195_v49 = vpop.eup %6194 }
 0xf9b   :  { %v4124_v8 = vmul.f32 %v6195_v49, %v6193_v41 }
 0xf9d   :  { %4259 = vmatmul.mubr.f32.vlgmr.msra.gmra.mrb[30].mxu0 %v4124_v8  ;;  %4330 = vmatmul.mubr.f32.vlgmr.msra.gmra.mrb[46].mxu1 %v4124_v8 }
 0xf9e   :  { %5789 = vmatpush3.bf16.msra.mxu0 %v5786_v33  ;;  %4730 = vmatprep.mubr.f32.mxu0 %v7660_v25  ;;  %v5814_v33 = vpack.c.bf16 %v4398_v14, %v4397_v3 }
 0xf9f   :  { %5791 = vmatprep.subr.bf16.mxu0 %v5790_v21 }
 0xfa2   :  { %5793 = vmatpush3.bf16.msra.mxu0 %v5790_v21 }
 0xfa3   :  { %5795 = vmatprep.subr.bf16.mxu0 %v5794_v61 }
 0xfa6   :  { %5797 = vmatpush3.bf16.msra.mxu0 %v5794_v61 }
 0xfa7   :  { %5799 = vmatprep.subr.bf16.mxu0 %v5798_v31 }
 0xfaa   :  { %5801 = vmatpush3.bf16.msra.mxu0 %v5798_v31 }
 0xfab   :  { %5803 = vmatprep.subr.bf16.mxu0 %v5802_v54 }
 0xfae   :  { %5805 = vmatpush3.bf16.msra.mxu0 %v5802_v54 }
 0xfaf   :  { %5807 = vmatprep.subr.bf16.mxu0 %v5806_v62 }
 0xfb2   :  { %5809 = vmatpush3.bf16.msra.mxu0 %v5806_v62 }
 0xfb3   :  { %5811 = vmatprep.subr.bf16.mxu0 %v5810_v56 }
 0xfb6   :  { %5813 = vmatpush3.bf16.msra.mxu0 %v5810_v56 }
 0xfb7   :  { %5815 = vmatprep.subr.bf16.mxu0 %v5814_v33 }
 0xfba   :  { %5817 = vmatpush3.bf16.msra.mxu0 %v5814_v33 }
 0xfbd   :  { %4731 = vmatmul.mubr.f32.vlgmr.msra.gmra.mrb[32].mxu0 %v7661_v10 }
 0xfbe   :  { %4733 = vmatprep.mubr.f32.mxu0 %v7662_v20 }
 0xfc1   :  { %4734 = vmatmul.mubr.f32.gmra.mrb[34].mxu0 %v7663_v57 }
 0xfc2   :  { %4736 = vmatprep.mubr.f32.mxu0 %v7664_v17 }
 0xfc5   :  { %4737 = vmatmul.mubr.f32.gmra.mrb[36].mxu0 %v7665_v35 }
 0xfc6   :  { %4739 = vmatprep.mubr.f32.mxu0 %v7666_v47 }
 0xfc9   :  { %4740 = vmatmul.mubr.f32.gmra.mrb[38].mxu0 %v7163_v2 }
 0xfca   :  { %4742 = vmatprep.mubr.f32.mxu0 %v7211_v30 }
 0xfcd   :  { %4743 = vmatmul.mubr.f32.gmra.mrb[40].mxu0 %v7257_v19 }
 0xfce   :  { %4745 = vmatprep.mubr.f32.mxu0 %v7345_v43 }
 0xfd1   :  { %4746 = vmatmul.mubr.f32.gmra.mrb[42].mxu0 %v7419_v38 }
 0xfd2   :  { %4748 = vmatprep.mubr.f32.mxu0 %v7467_v32 }
 0xfd5   :  { %4749 = vmatmul.mubr.f32.gmra.mrb[44].mxu0 %v7513_v15 }
 0xfd6   :  { %4751 = vmatprep.mubr.f32.mxu0 %v4124_v8 }
0x1070   :  { %v4260_v2 = vpop.f32.mrb[30].mxu0  ;;  %v4331_v59 = vpop.f32.mrb[46].mxu1 }
0x1071   :  { %v4336_v30 = vadd.f32 %v4260_v2, %v310_v48  ;;  %v4262_v55 = vpop.f32.mrb[31].mxu0  ;;  %v4333_v19 = vpop.f32.mrb[47].mxu1  ;;  %v5898_v15 = vadd.f32 %v4331_v59, %v6704_v0  ;;  %v4665_v0 = vld [vmem:[%s7631_s5] ss:$0 sm:$0xff]  ;;  %s6289_s5 = smov [#allocation11]  }
0x1072   :  { %v4337_v36 = vadd.f32 %v4262_v55, %v312_v50  ;;  %v5899_v38 = vadd.f32 %v4333_v19, %v6706_v1  ;;  %s4572_s8 = sshll.u32 %s6289_s5, 4  ;;  %s4573_s8 = int_to_ptr.vmem [resolvable:$true] %s4572_s8 }
0x1073   :  { %v4662_v43 = vmul.f32 -1.442695, %v4336_v30  ;;  %s6256_s9 = scalar_lea.vmem %s4573_s8, 2048  ;;  %p6261_p3 = scmp.lt.s32.totalorder %s4573_s8, %s4573_s8 }
0x1074   :  { %v4663_v16 = vmul.f32 -1.442695, %v4337_v36  ;;  %v4664_v32 = vmul.f32 -1.442695, %v5899_v38  ;;  %p6257_p2 = scmp.ne.s32.totalorder %s4573_s8, %s6256_s9  ;;  %p6262_p4 = scmp.lt.s32.totalorder %s6256_s9, %s6256_s9 }
0x1075   :  { %6196 = vpow2.f32 %v4662_v43 }
0x1076   :  { %6198 = vpow2.f32 %v4663_v16  ;;  %p6263_p5 = por %p6262_p4, %p6261_p3 }
0x1077   :  { %6200 = vpow2.f32 %v4664_v32 }
0x1078   :  { %6202 = vtanh.f32 %v5898_v15  ;;  %p6264_p6 = pnand %p6263_p5, %p6257_p2 }
0x107f   :  { %v6197_v12 = vpop.eup %6196 }
0x1080   :  { %v6199_v11 = vpop.eup %6198  ;;  %v4343_v46 = vadd.f32 1.0, %v6197_v12 }
0x1081   :  { %v4349_v9 = vadd.f32 1.0, %v6199_v11  ;;  %v6201_v29 = vpop.eup %6200 }
0x1082   :  { %6204 = vrcp.f32 %v4343_v46  ;;  %v6203_v28 = vpop.eup %6202  ;;  %v4356_v44 = vadd.f32 1.0, %v6201_v29 }
0x1083   :  { %6206 = vrcp.f32 %v4349_v9 }
0x1084   :  { %6208 = vrcp.f32 %v4356_v44 }
0x108c   :  { %v6205_v27 = vpop.eup %6204 }
0x108d   :  { %v6207_v53 = vpop.eup %6206  ;;  %v4360_v26 = vmul.f32 %v6205_v27, %v6203_v28 }
0x108e   :  { %v4359_v13 = vmul.f32 %v6207_v53, %v7545_v42  ;;  %v6209_v6 = vpop.eup %6208 }
0x1090   :  { %v4732_v1 = vpop.f32.mrb[32].mxu0  ;;  %v4361_v51 = vadd.f32 %v4360_v26, %v4359_v13 }
0x1091   :  { %v4478_v24 = vadd.f32 %v4732_v1, %v4665_v0  ;;  %v4472_v23 = vpop.f32.mrb[33].mxu0 }
0x1092   :  { %v4473_v60 = vadd.f32 %v4665_v0, %v4472_v23  ;;  %6210 = vtanh.f32 %v4361_v51 }
0x1093   :  { %4552 = vst [vmem:[#allocation11 + $0x8] sm:$0xff] %v4478_v24 }
0x1094   :  { %4551 = vst [vmem:[#allocation11] sm:$0xff] %v4473_v60  ;;  %v4735_v4 = vpop.f32.mrb[34].mxu0 }
0x1095   :  { %v4488_v5 = vadd.f32 %v4735_v4, %v4665_v0  ;;  %v4482_v41 = vpop.f32.mrb[35].mxu0 }
0x1096   :  { %v4483_v49 = vadd.f32 %v4665_v0, %v4482_v41 }
0x1097   :  { %4554 = vst [vmem:[#allocation11 + $0x18] sm:$0xff] %v4488_v5 }
0x1098   :  { %4553 = vst [vmem:[#allocation11 + $0x10] sm:$0xff] %v4483_v49  ;;  %v4738_v42 = vpop.f32.mrb[36].mxu0 }
0x1099   :  { %v4498_v8 = vadd.f32 %v4738_v42, %v4665_v0  ;;  %v4492_v21 = vpop.f32.mrb[37].mxu0 }
0x109a   :  { %v4493_v37 = vadd.f32 %v4665_v0, %v4492_v21 }
0x109b   :  { %4556 = vst [vmem:[#allocation11 + $0x28] sm:$0xff] %v4498_v8 }
0x109c   :  { %v6211_v25 = vpop.eup %6210  ;;  %4555 = vst [vmem:[#allocation11 + $0x20] sm:$0xff] %v4493_v37  ;;  %v4741_v61 = vpop.f32.mrb[38].mxu0 }
0x109d   :  { %v4508_v45 = vadd.f32 %v4741_v61, %v4665_v0  ;;  %v4502_v7 = vpop.f32.mrb[39].mxu0  ;;  %v4363_v31 = vmul.f32 %v6211_v25, %v6209_v6 }
0x109e   :  { %v4503_v34 = vadd.f32 %v4665_v0, %v4502_v7 }
0x109f   :  { %4558 = vst [vmem:[#allocation11 + $0x38] sm:$0xff] %v4508_v45  ;;  %4752 = vmatmul.mubr.f32.gmra.mrb[46].mxu0 %v4363_v31 }
0x10a0   :  { %4557 = vst [vmem:[#allocation11 + $0x30] sm:$0xff] %v4503_v34  ;;  %v4744_v58 = vpop.f32.mrb[40].mxu0 }
0x10a1   :  { %v4518_v54 = vadd.f32 %v4744_v58, %v4665_v0  ;;  %v4512_v63 = vpop.f32.mrb[41].mxu0 }
0x10a2   :  { %v4513_v52 = vadd.f32 %v4665_v0, %v4512_v63 }
0x10a3   :  { %4560 = vst [vmem:[#allocation11 + $0x48] sm:$0xff] %v4518_v54 }
0x10a4   :  { %4559 = vst [vmem:[#allocation11 + $0x40] sm:$0xff] %v4513_v52  ;;  %v4747_v62 = vpop.f32.mrb[42].mxu0 }
0x10a5   :  { %v4528_v40 = vadd.f32 %v4747_v62, %v4665_v0  ;;  %v4522_v18 = vpop.f32.mrb[43].mxu0 }
0x10a6   :  { %v4523_v56 = vadd.f32 %v4665_v0, %v4522_v18 }
0x10a7   :  { %4562 = vst [vmem:[#allocation11 + $0x58] sm:$0xff] %v4528_v40 }
0x10a8   :  { %4561 = vst [vmem:[#allocation11 + $0x50] sm:$0xff] %v4523_v56  ;;  %v4750_v3 = vpop.f32.mrb[44].mxu0 }
0x10a9   :  { %v4538_v14 = vadd.f32 %v4750_v3, %v4665_v0  ;;  %v4532_v33 = vpop.f32.mrb[45].mxu0 }
0x10aa   :  { %v4533_v10 = vadd.f32 %v4665_v0, %v4532_v33 }
0x10ab   :  { %4564 = vst [vmem:[#allocation11 + $0x68] sm:$0xff] %v4538_v14 }
0x10ac   :  { %4563 = vst [vmem:[#allocation11 + $0x60] sm:$0xff] %v4533_v10 }
0x1172   :  { %v4753_v20 = vpop.f32.mrb[46].mxu0 }
0x1173   :  { %v4548_v57 = vadd.f32 %v4753_v20, %v4665_v0  ;;  %v4542_v17 = vpop.f32.mrb[47].mxu0 }
0x1174   :  { %v4543_v35 = vadd.f32 %v4665_v0, %v4542_v17 }
0x1175   :  { %4566 = vst [vmem:[#allocation11 + $0x78] sm:$0xff] %v4548_v57 }
0x1176   :  { %4565 = vst [vmem:[#allocation11 + $0x70] sm:$0xff] %v4543_v35 }
0x1177   :  { %6267 = shalt.err (!%p6264_p6)
}
0x1178   :  { %s6268_s12 = scalar_lea.hbm %s7632_s6, 2048 }
0x1179   :  { %p6269_p7 = scmp.ne.s32.totalorder %s7632_s6, %s6268_s12  ;;  %p6272_p8 = scmp.lt.u32.totalorder %s6268_s12, %s7632_s6 }
0x117b   :  { %p6274_p9 = pnand %p6272_p8, %p6269_p7 }
0x117d   :  { %6277 = shalt.err (!%p6274_p9)
}
0x117e   :  { %s6290_s17 = smov 128   ;;  %s6291_s18 = smov 8  }
0x117f   :  { %4578 = dma.vmem_to_hbm [thread:$0]  %s4573_s8, 2048, %s7632_s6, [#allocation8], %s6290_s17, %s6290_s17, %s6291_s18  }
0x1180   :  { %6282 = dma.done.wait [#allocation8], 2048  }
0x1181   :  { %6283 = vsyncadd [#allocation8], 4294965248 }
0x1182   :  { %4582 = vsyncpa [#allocation7], 1 }
0x1183   :  { %4583 = vsyncpa [#allocation10], 1 }
0x1184   :  { %4584 = vsyncpa [#allocation8], 1 }

</bundles_post_ra>
